<compile_context>
chip_gen: v7x
topology: tpu7x:2x2x1
jax: 0.10.0
libtpu: 0.0.40
codegen_flags: <defaults>
</compile_context>

<pallas_src>
import functools
import math

import jax
import jax.numpy as jnp
from jax import lax
from jax.experimental import pallas as pl
from jax.experimental.pallas import tpu as pltpu

NUM_GROUPS = 32   # nn.GroupNorm(num_groups=32, ..., eps=1e-6, affine=True)
EPS = 1e-6


# ----------------------------- in-kernel helpers -----------------------------

def _group_norm(x2d, gamma, beta, num_groups):
    """Single-pass GroupNorm over an (HW, C) tile (f32).

    gamma and 1/sqrt(var) are folded into one per-channel scale + bias so the
    normalization is a single FMA per element. Variance is clamped at >= 0 to
    guard the E[x^2] - mean^2 cancellation."""
    hw, c = x2d.shape
    cg = c // num_groups
    n = hw * cg
    csum = jnp.sum(x2d, axis=0, keepdims=True)                                  # (1, C)
    csq = jnp.sum(x2d * x2d, axis=0, keepdims=True)                             # (1, C)
    gsum = jnp.sum(csum.reshape(1, num_groups, cg), axis=2, keepdims=True)      # (1, G, 1)
    gsq = jnp.sum(csq.reshape(1, num_groups, cg), axis=2, keepdims=True)        # (1, G, 1)
    mean = gsum / n
    var = jnp.maximum(gsq / n - mean * mean, 0.0)
    rstd = lax.rsqrt(var + EPS)
    mean_c = jnp.broadcast_to(mean, (1, num_groups, cg)).reshape(1, c)
    rstd_c = jnp.broadcast_to(rstd, (1, num_groups, cg)).reshape(1, c)
    scale = gamma * rstd_c
    bias = beta - mean_c * scale
    return x2d * scale + bias


# --------------------------------- kernel ------------------------------------

def _attn_block_kernel(x_ref, g_ref, b_ref, wqkv_ref, bqkv_ref, wp_ref, bp_ref,
                       out_ref,
                       k_scr, v_scr, m_scr, l_scr, acc_scr,
                       *, cp, tkv, n_kv, exp_dtype):
    # x arrives in bf16; GroupNorm stats, softmax state and the residual stay f32.
    x = x_ref[0].astype(jnp.float32)                       # (HW, C)

    h = _group_norm(x, g_ref[...], b_ref[...], NUM_GROUPS)
    hb = h.astype(jnp.bfloat16)

    # Fused q/k/v projection: one (HW, C) x (C, 3*Cp) MXU matmul (bf16 in, f32 acc).
    # Each projection's column group is padded to Cp (multiple of 128) so the
    # slices below are lane aligned; padded channels are exactly zero.
    # 1/sqrt(C) is already folded into the q columns / bias by the wrapper.
    qkv = jnp.dot(hb, wqkv_ref[...],
                  preferred_element_type=jnp.float32) + bqkv_ref[...]   # (HW, 3*Cp)
    qb = qkv[:, :cp].astype(jnp.bfloat16)                  # (HW, Cp)
    k_scr[...] = qkv[:, cp:2 * cp].astype(jnp.bfloat16)    # (HW, Cp)
    v_scr[...] = qkv[:, 2 * cp:].astype(jnp.bfloat16)      # (HW, Cp)

    # Online-softmax state (re-initialized each grid step / batch element).
    m_scr[...] = jnp.full_like(m_scr, -jnp.inf)
    l_scr[...] = jnp.zeros_like(l_scr)
    acc_scr[...] = jnp.zeros_like(acc_scr)

    # Flash-style loop over KV tiles: live attention state is (HW, TKV), never (HW, HW).
    @pl.loop(0, n_kv)
    def _(t):
        start = pl.multiple_of(t * tkv, tkv)
        kt = k_scr[pl.ds(start, tkv), :]                   # (TKV, Cp) bf16
        vt = v_scr[pl.ds(start, tkv), :]                   # (TKV, Cp) bf16
        # logits[i, j] = sum_c q[i, c] * k[j, c]   (A @ B^T without materializing B^T)
        logits = lax.dot_general(qb, kt, (((1,), (1,)), ((), ())),
                                 preferred_element_type=jnp.float32)    # (HW, TKV)
        m_prev = m_scr[...]
        m_new = jnp.maximum(m_prev, jnp.max(logits, axis=-1, keepdims=True))
        alpha = jnp.exp(m_prev - m_new)                    # rescale of old state
        # exp in bf16 when EUP-bound (small C) on v6e/v7x; exp_dtype=f32 on v5e.
        p = jnp.exp((logits - m_new).astype(exp_dtype))
        l_scr[...] = alpha * l_scr[...] + jnp.sum(p.astype(jnp.float32),
                                                  axis=-1, keepdims=True)
        acc_scr[...] = alpha * acc_scr[...] + jnp.dot(
            p.astype(jnp.bfloat16), vt, preferred_element_type=jnp.float32)
        m_scr[...] = m_new

    # Normalize AFTER the PV matmul: divide (HW, Cp) once instead of (HW, HW).
    ctx = acc_scr[...] * pl.reciprocal(l_scr[...], approx=True)

    # 1x1 output projection (padded Cp rows of wp are zero) + residual.
    proj = jnp.dot(ctx.astype(jnp.bfloat16), wp_ref[...],
                   preferred_element_type=jnp.float32) + bp_ref[...]    # (HW, C)
    out_ref[0] = (x + proj).astype(out_ref.dtype)


# -------------------------------- wrapper -------------------------------------

def _derive_vmem_limit(hw, c, cp, tkv):
    """Shape-derived scoped-VMEM budget (flat over-estimate with headroom).

    v5e/v6e have 128 MiB physical VMEM, v7x only 64 MiB; flash tiling + bf16 I/O
    keep realistic AttnBlock shapes well inside both, but we still cap at 96 MiB."""
    bf16, f32 = 2, 4
    io = 2 * 2 * hw * c * bf16                                   # x in + out, double-buffered
    weights = 2 * ((c * 3 * cp + cp * c) * bf16 + (3 * cp + 3 * c) * f32)
    scratch = 2 * hw * cp * bf16 + hw * cp * f32 + 2 * hw * 128 * f32
    transients = hw * 3 * cp * f32 + hw * cp * bf16 + 2 * hw * tkv * f32 + hw * c * f32
    est = int(1.4 * (io + weights + scratch + transients))
    return max(32 * 1024 * 1024, min(est, 96 * 1024 * 1024))


def attn_block_pallas(x, params, *, channels_last=False):
    """AttnBlock forward. Returns bf16 activations in the same data format as `x`."""
    if channels_last:
        n, h, w, c = x.shape
        x_nhwc = x
    else:
        n, c, h, w = x.shape
        # Full-tensor HBM round trip; prefer channels_last=True when the producer
        # can emit NHWC (see TODO at top of file).
        x_nhwc = jnp.transpose(x, (0, 2, 3, 1))
    hw = h * w
    assert c % NUM_GROUPS == 0, "GroupNorm(32) requires C % 32 == 0"

    x_flat = x_nhwc.reshape(n, hw, c).astype(jnp.bfloat16)

    # Lane-padded per-projection width (multiple of 128) -> aligned slices / matmuls.
    cp = ((c + 127) // 128) * 128

    # KV tile size for the online softmax: >=256 keeps the v6e/v7x 256-deep MXU fed,
    # and is a 128-multiple for the v5e 128-wide MXU. Fall back to a single tile
    # when HW is not a multiple of 128.
    tkv = hw
    for cand in (512, 256, 128):
        if hw % cand == 0:
            tkv = cand
            break
    n_kv = hw // tkv

    # bf16 exp on the (HW, TKV) probabilities when the EUP is the bottleneck
    # (small C). Set to jnp.float32 on v5e (no bf16 EUP) or when C >= 256.
    exp_dtype = jnp.bfloat16 if c <= 128 else jnp.float32

    def conv1x1_w(wt):  # torch (Cout, Cin, 1, 1) -> (Cin, Cout)
        return jnp.transpose(wt.reshape(c, c), (1, 0))

    def pad_cols(wm):   # (C, C) -> (C, Cp) with zero padding
        return jnp.pad(wm, ((0, 0), (0, cp - c)))

    def pad_bias(bv):   # (C,) -> (Cp,)
        return jnp.pad(bv, (0, cp - c))

    scale = float(c) ** (-0.5)
    # Fold the softmax scale into the q projection; pack q|k|v into one operand.
    wqkv = jnp.concatenate(
        [pad_cols(conv1x1_w(params["q_w"]) * scale),
         pad_cols(conv1x1_w(params["k_w"])),
         pad_cols(conv1x1_w(params["v_w"]))], axis=1).astype(jnp.bfloat16)     # (C, 3*Cp)
    bqkv = jnp.concatenate(
        [pad_bias(params["q_b"] * scale),
         pad_bias(params["k_b"]),
         pad_bias(params["v_b"])]).reshape(1, 3 * cp).astype(jnp.float32)
    wp = jnp.pad(conv1x1_w(params["proj_w"]),
                 ((0, cp - c), (0, 0))).astype(jnp.bfloat16)                    # (Cp, C)
    bp = params["proj_b"].reshape(1, c).astype(jnp.float32)
    gamma = params["norm_w"].reshape(1, c).astype(jnp.float32)
    beta = params["norm_b"].reshape(1, c).astype(jnp.float32)

    # Advisory cost hint so XLA overlaps the boundary transpose / casts.
    flops = n * (2 * hw * c * 3 * cp        # fused qkv projection
                 + 2 * hw * hw * cp         # q @ k^T
                 + 2 * hw * hw * cp         # p @ v
                 + 2 * hw * cp * c)         # output projection
    transcendentals = n * (hw * hw + 2 * hw * n_kv + hw)
    bytes_accessed = (2 * n * hw * c * 2                       # bf16 x in + out
                      + (c * 3 * cp + cp * c) * 2              # bf16 weights
                      + (3 * cp + 3 * c) * 4)                  # biases + affine params
    cost = pl.CostEstimate(flops=flops, transcendentals=transcendentals,
                           bytes_accessed=bytes_accessed)

    def const_spec(shape):
        nd = len(shape)
        return pl.BlockSpec(shape, lambda i: (0,) * nd)

    kernel = functools.partial(_attn_block_kernel, cp=cp, tkv=tkv, n_kv=n_kv,
                               exp_dtype=exp_dtype)

    # GroupNorm statistics and the softmax span the full H*W extent, so the input
    # block is the whole (HW, C) plane per batch element; only the attention
    # logits are tiled (inner KV loop).
    out = pl.pallas_call(
        kernel,
        out_shape=jax.ShapeDtypeStruct((n, hw, c), jnp.bfloat16),
        grid_spec=pltpu.PrefetchScalarGridSpec(
            num_scalar_prefetch=0,
            grid=(n,),
            in_specs=[
                pl.BlockSpec((1, hw, c), lambda i: (i, 0, 0)),   # x (bf16)
                const_spec((1, c)),                              # gn gamma
                const_spec((1, c)),                              # gn beta
                const_spec((c, 3 * cp)),                         # Wq*s | Wk | Wv (padded)
                const_spec((1, 3 * cp)),                         # bq*s | bk | bv (padded)
                const_spec((cp, c)),                             # Wproj (padded rows)
                const_spec((1, c)),                              # bproj
            ],
            out_specs=pl.BlockSpec((1, hw, c), lambda i: (i, 0, 0)),
            scratch_shapes=[
                pltpu.VMEM((hw, cp), jnp.bfloat16),   # k
                pltpu.VMEM((hw, cp), jnp.bfloat16),   # v
                pltpu.VMEM((hw, 1), jnp.float32),     # running max m
                pltpu.VMEM((hw, 1), jnp.float32),     # running denom l
                pltpu.VMEM((hw, cp), jnp.float32),    # output accumulator
            ],
        ),
        compiler_params=pltpu.CompilerParams(
            dimension_semantics=("parallel",),        # batch elements independent
            vmem_limit_bytes=_derive_vmem_limit(hw, c, cp, tkv),
        ),
        cost_estimate=cost,
    )(x_flat, gamma, beta, wqkv, bqkv, wp, bp)

    out = out.reshape(n, h, w, c)
    if channels_last:
        return out
    return jnp.transpose(out, (0, 3, 1, 2))   # back to NCHW


# ----------------------------- pure-JAX reference -----------------------------

def attn_block_ref(x, params):
    n, c, h, w = x.shape

    xg = x.reshape(n, NUM_GROUPS, c // NUM_GROUPS, h, w)
    mean = jnp.mean(xg, axis=(2, 3, 4), keepdims=True)
    var = jnp.mean((xg - mean) ** 2, axis=(2, 3, 4), keepdims=True)
    hn = ((xg - mean) / jnp.sqrt(var + EPS)).reshape(n, c, h, w)
    hn = hn * params["norm_w"].reshape(1, c, 1, 1) + params["norm_b"].reshape(1, c, 1, 1)

    def conv1x1(t, wt, bt):
        return jnp.einsum("nchw,oc->nohw", t, wt.reshape(c, c)) + bt.reshape(1, c, 1, 1)

    q = conv1x1(hn, params["q_w"], params["q_b"])
    k = conv1x1(hn, params["k_w"], params["k_b"])
    v = conv1x1(hn, params["v_w"], params["v_b"])

    hw = h * w
    q = q.reshape(n, c, hw).transpose(0, 2, 1)            # (n, hw, c)
    k = k.reshape(n, c, hw)                               # (n, c, hw)
    logits = jnp.einsum("nic,ncj->nij", q, k) * (c ** -0.5)
    attn = jax.nn.softmax(logits, axis=2)
    v = v.reshape(n, c, hw)
    ctx = jnp.einsum("ncj,nij->nci", v, attn)             # (n, c, hw)
    ctx = ctx.reshape(n, c, h, w)
    out = conv1x1(ctx, params["proj_w"], params["proj_b"])
    return x + out


# ----------------------------------- main --------------------------------------

if __name__ == "__main__":
    # C must be divisible by 32 (GroupNorm num_groups=32 in the PyTorch module).
    N, C, H, W = 2, 32, 16, 16
    key = jax.random.PRNGKey(0)
    ks = jax.random.split(key, 11)

    x = jax.random.normal(ks[0], (N, C, H, W), jnp.float32)
    params = {
        "norm_w": 1.0 + 0.1 * jax.random.normal(ks[1], (C,), jnp.float32),
        "norm_b": 0.1 * jax.random.normal(ks[2], (C,), jnp.float32),
        "q_w": 0.05 * jax.random.normal(ks[3], (C, C, 1, 1), jnp.float32),
        "q_b": 0.05 * jax.random.normal(ks[4], (C,), jnp.float32),
        "k_w": 0.05 * jax.random.normal(ks[5], (C, C, 1, 1), jnp.float32),
        "k_b": 0.05 * jax.random.normal(ks[6], (C,), jnp.float32),
        "v_w": 0.05 * jax.random.normal(ks[7], (C, C, 1, 1), jnp.float32),
        "v_b": 0.05 * jax.random.normal(ks[8], (C,), jnp.float32),
        "proj_w": 0.05 * jax.random.normal(ks[9], (C, C, 1, 1), jnp.float32),
        "proj_b": 0.05 * jax.random.normal(ks[10], (C,), jnp.float32),
    }

    out = jax.block_until_ready(attn_block_pallas(x, params))
    ref = jax.block_until_ready(attn_block_ref(x, params))

    err = float(jnp.max(jnp.abs(out.astype(jnp.float32) - ref)))
    assert out.shape == (N, C, H, W)
    # bf16 activations at the kernel boundary + bf16 MXU operands (f32 accumulate)
    # vs the pure-f32 reference -> ~2 bf16 roundings on O(1) values.
    assert err < 5e-2, f"max abs err too large: {err}"
    print("KERNEL_OK")
</pallas_src>

<mosaic_0001>
module attributes {stable_mosaic.version = 11 : i64} {
  func.func @_attn_block_kernel(%arg0: i32, %arg1: memref<1x256x32xbf16, #tpu.memory_space<vmem>>, %arg2: memref<1x32xf32, #tpu.memory_space<vmem>>, %arg3: memref<1x32xf32, #tpu.memory_space<vmem>>, %arg4: memref<32x384xbf16, #tpu.memory_space<vmem>>, %arg5: memref<1x384xf32, #tpu.memory_space<vmem>>, %arg6: memref<128x32xbf16, #tpu.memory_space<vmem>>, %arg7: memref<1x32xf32, #tpu.memory_space<vmem>>, %arg8: memref<1x256x32xbf16, #tpu.memory_space<vmem>>, %arg9: memref<256x128xbf16, #tpu.memory_space<vmem>>, %arg10: memref<256x128xbf16, #tpu.memory_space<vmem>>, %arg11: memref<256x1xf32, #tpu.memory_space<vmem>>, %arg12: memref<256x1xf32, #tpu.memory_space<vmem>>, %arg13: memref<256x128xf32, #tpu.memory_space<vmem>>) attributes {dimension_semantics = [#tpu.dimension_semantics<parallel>], iteration_bounds = array<i64: 2>, scalar_prefetch = 0 : i64, scratch_operands = 5 : i64, tpu.core_type = #tpu.core_type<tc>, window_params = [{transform_indices = @transform_0, window_bounds = array<i64: 1, 256, 32>}, {pipeline_mode = #tpu.pipeline_mode<synchronous>, transform_indices = @transform_1, window_bounds = array<i64: 1, 32>}, {pipeline_mode = #tpu.pipeline_mode<synchronous>, transform_indices = @transform_2, window_bounds = array<i64: 1, 32>}, {pipeline_mode = #tpu.pipeline_mode<synchronous>, transform_indices = @transform_3, window_bounds = array<i64: 32, 384>}, {pipeline_mode = #tpu.pipeline_mode<synchronous>, transform_indices = @transform_4, window_bounds = array<i64: 1, 384>}, {pipeline_mode = #tpu.pipeline_mode<synchronous>, transform_indices = @transform_5, window_bounds = array<i64: 128, 32>}, {pipeline_mode = #tpu.pipeline_mode<synchronous>, transform_indices = @transform_6, window_bounds = array<i64: 1, 32>}, {transform_indices = @transform_7, window_bounds = array<i64: 1, 256, 32>}]} {
    %c0 = arith.constant 0 : index
    %c0_0 = arith.constant 0 : index
    %c0_1 = arith.constant 0 : index
    %0 = vector.load %arg1[%c0, %c0_0, %c0_1] : memref<1x256x32xbf16, #tpu.memory_space<vmem>>, vector<1x256x32xbf16>
    %1 = vector.shape_cast %0 : vector<1x256x32xbf16> to vector<256x32xbf16>
    %2 = arith.extf %1 : vector<256x32xbf16> to vector<256x32xf32>
    %c0_2 = arith.constant 0 : index
    %c0_3 = arith.constant 0 : index
    %3 = vector.load %arg2[%c0_2, %c0_3] : memref<1x32xf32, #tpu.memory_space<vmem>>, vector<1x32xf32>
    %c0_4 = arith.constant 0 : index
    %c0_5 = arith.constant 0 : index
    %4 = vector.load %arg3[%c0_4, %c0_5] : memref<1x32xf32, #tpu.memory_space<vmem>>, vector<1x32xf32>
    %cst = arith.constant dense<0.000000e+00> : vector<32xf32>
    %5 = vector.multi_reduction <add>, %2, %cst [0] : vector<256x32xf32> to vector<32xf32>
    %6 = vector.shape_cast %5 : vector<32xf32> to vector<1x32xf32>
    %7 = arith.mulf %2, %2 : vector<256x32xf32>
    %cst_6 = arith.constant dense<0.000000e+00> : vector<32xf32>
    %8 = vector.multi_reduction <add>, %7, %cst_6 [0] : vector<256x32xf32> to vector<32xf32>
    %9 = vector.shape_cast %8 : vector<32xf32> to vector<1x32xf32>
    %10 = vector.shape_cast %6 : vector<1x32xf32> to vector<1x32x1xf32>
    %cst_7 = arith.constant dense<0.000000e+00> : vector<1x32xf32>
    %11 = vector.multi_reduction <add>, %10, %cst_7 [2] : vector<1x32x1xf32> to vector<1x32xf32>
    %12 = vector.shape_cast %11 : vector<1x32xf32> to vector<1x32x1xf32>
    %13 = vector.shape_cast %9 : vector<1x32xf32> to vector<1x32x1xf32>
    %cst_8 = arith.constant dense<0.000000e+00> : vector<1x32xf32>
    %14 = vector.multi_reduction <add>, %13, %cst_8 [2] : vector<1x32x1xf32> to vector<1x32xf32>
    %15 = vector.shape_cast %14 : vector<1x32xf32> to vector<1x32x1xf32>
    %cst_9 = arith.constant 2.560000e+02 : f32
    %16 = vector.broadcast %cst_9 : f32 to vector<1x32x1xf32>
    %17 = arith.divf %12, %16 : vector<1x32x1xf32>
    %cst_10 = arith.constant 2.560000e+02 : f32
    %18 = vector.broadcast %cst_10 : f32 to vector<1x32x1xf32>
    %19 = arith.divf %15, %18 : vector<1x32x1xf32>
    %20 = arith.mulf %17, %17 : vector<1x32x1xf32>
    %21 = arith.subf %19, %20 : vector<1x32x1xf32>
    %cst_11 = arith.constant 0.000000e+00 : f32
    %22 = vector.broadcast %cst_11 : f32 to vector<1x32x1xf32>
    %23 = arith.maximumf %21, %22 : vector<1x32x1xf32>
    %cst_12 = arith.constant 9.99999997E-7 : f32
    %24 = vector.broadcast %cst_12 : f32 to vector<1x32x1xf32>
    %25 = arith.addf %23, %24 : vector<1x32x1xf32>
    %26 = math.rsqrt %25 : vector<1x32x1xf32>
    %27 = vector.shape_cast %17 : vector<1x32x1xf32> to vector<1x32xf32>
    %28 = vector.shape_cast %26 : vector<1x32x1xf32> to vector<1x32xf32>
    %29 = arith.mulf %3, %28 : vector<1x32xf32>
    %30 = arith.mulf %27, %29 : vector<1x32xf32>
    %31 = arith.subf %4, %30 : vector<1x32xf32>
    %32 = vector.broadcast %29 : vector<1x32xf32> to vector<256x32xf32>
    %33 = arith.mulf %2, %32 : vector<256x32xf32>
    %34 = vector.broadcast %31 : vector<1x32xf32> to vector<256x32xf32>
    %35 = arith.addf %33, %34 : vector<256x32xf32>
    %36 = arith.truncf %35 : vector<256x32xf32> to vector<256x32xbf16>
    %c0_13 = arith.constant 0 : index
    %c0_14 = arith.constant 0 : index
    %37 = vector.load %arg4[%c0_13, %c0_14] : memref<32x384xbf16, #tpu.memory_space<vmem>>, vector<32x384xbf16>
    %cst_15 = arith.constant dense<0.000000e+00> : vector<256x384xf32>
    %38 = tpu.matmul %36, %37, %cst_15 {dimension_numbers = #tpu.dot_dimension_numbers<[1], [0], [0], [1], [0, 0, 1, 1], [], []>} : vector<256x32xbf16>, vector<32x384xbf16>, vector<256x384xf32> -> vector<256x384xf32>
    %c0_16 = arith.constant 0 : index
    %c0_17 = arith.constant 0 : index
    %39 = vector.load %arg5[%c0_16, %c0_17] : memref<1x384xf32, #tpu.memory_space<vmem>>, vector<1x384xf32>
    %40 = vector.broadcast %39 : vector<1x384xf32> to vector<256x384xf32>
    %41 = arith.addf %38, %40 : vector<256x384xf32>
    %42 = vector.extract_strided_slice %41 {offsets = [0, 0], sizes = [256, 128], strides = [1, 1]} : vector<256x384xf32> to vector<256x128xf32>
    %43 = arith.truncf %42 : vector<256x128xf32> to vector<256x128xbf16>
    %44 = vector.extract_strided_slice %41 {offsets = [0, 128], sizes = [256, 128], strides = [1, 1]} : vector<256x384xf32> to vector<256x128xf32>
    %45 = arith.truncf %44 : vector<256x128xf32> to vector<256x128xbf16>
    %c0_18 = arith.constant 0 : index
    %c0_19 = arith.constant 0 : index
    %46 = vector.load %arg9[%c0_18, %c0_19] : memref<256x128xbf16, #tpu.memory_space<vmem>>, vector<256x128xbf16>
    tpu.vector_store %arg9[%c0_18, %c0_19], %45 {strides = array<i32>} : memref<256x128xbf16, #tpu.memory_space<vmem>>, vector<256x128xbf16>,
    %47 = vector.extract_strided_slice %41 {offsets = [0, 256], sizes = [256, 128], strides = [1, 1]} : vector<256x384xf32> to vector<256x128xf32>
    %48 = arith.truncf %47 : vector<256x128xf32> to vector<256x128xbf16>
    %c0_20 = arith.constant 0 : index
    %c0_21 = arith.constant 0 : index
    %49 = vector.load %arg10[%c0_20, %c0_21] : memref<256x128xbf16, #tpu.memory_space<vmem>>, vector<256x128xbf16>
    tpu.vector_store %arg10[%c0_20, %c0_21], %48 {strides = array<i32>} : memref<256x128xbf16, #tpu.memory_space<vmem>>, vector<256x128xbf16>,
    %cst_22 = arith.constant 0xFF800000 : f32
    %50 = vector.broadcast %cst_22 : f32 to vector<256x1xf32>
    %c0_23 = arith.constant 0 : index
    %c0_24 = arith.constant 0 : index
    %51 = vector.load %arg11[%c0_23, %c0_24] : memref<256x1xf32, #tpu.memory_space<vmem>>, vector<256x1xf32>
    tpu.vector_store %arg11[%c0_23, %c0_24], %50 {strides = array<i32>} : memref<256x1xf32, #tpu.memory_space<vmem>>, vector<256x1xf32>,
    %cst_25 = arith.constant 0.000000e+00 : f32
    %52 = vector.broadcast %cst_25 : f32 to vector<256x1xf32>
    %c0_26 = arith.constant 0 : index
    %c0_27 = arith.constant 0 : index
    %53 = vector.load %arg12[%c0_26, %c0_27] : memref<256x1xf32, #tpu.memory_space<vmem>>, vector<256x1xf32>
    tpu.vector_store %arg12[%c0_26, %c0_27], %52 {strides = array<i32>} : memref<256x1xf32, #tpu.memory_space<vmem>>, vector<256x1xf32>,
    %cst_28 = arith.constant 0.000000e+00 : f32
    %54 = vector.broadcast %cst_28 : f32 to vector<256x128xf32>
    %c0_29 = arith.constant 0 : index
    %c0_30 = arith.constant 0 : index
    %55 = vector.load %arg13[%c0_29, %c0_30] : memref<256x128xf32, #tpu.memory_space<vmem>>, vector<256x128xf32>
    tpu.vector_store %arg13[%c0_29, %c0_30], %54 {strides = array<i32>} : memref<256x128xf32, #tpu.memory_space<vmem>>, vector<256x128xf32>,
    %c0_i32 = arith.constant 0 : i32
    %c1_i32 = arith.constant 1 : i32
    %56 = arith.muli %c0_i32, %c1_i32 : i32
    %c0_i32_31 = arith.constant 0 : i32
    %57 = arith.addi %c0_i32_31, %56 : i32
    %c256_i32 = arith.constant 256 : i32
    %58 = arith.muli %57, %c256_i32 : i32
    %59 = tpu.assume_multiple %58, 256 : i32
    %60 = arith.index_cast %59 : i32 to index
    %c0_32 = arith.constant 0 : index
    %61 = vector.load %arg9[%60, %c0_32] : memref<256x128xbf16, #tpu.memory_space<vmem>>, vector<256x128xbf16>
    %62 = arith.index_cast %59 : i32 to index
    %c0_33 = arith.constant 0 : index
    %63 = vector.load %arg10[%62, %c0_33] : memref<256x128xbf16, #tpu.memory_space<vmem>>, vector<256x128xbf16>
    %cst_34 = arith.constant dense<0.000000e+00> : vector<256x256xf32>
    %64 = tpu.matmul %43, %61, %cst_34 {dimension_numbers = #tpu.dot_dimension_numbers<[1], [1], [0], [0], [0, 0, 1, 0], [], []>} : vector<256x128xbf16>, vector<256x128xbf16>, vector<256x256xf32> -> vector<256x256xf32>
    %c0_35 = arith.constant 0 : index
    %c0_36 = arith.constant 0 : index
    %65 = vector.load %arg11[%c0_35, %c0_36] : memref<256x1xf32, #tpu.memory_space<vmem>>, vector<256x1xf32>
    %cst_37 = arith.constant dense<0xFF800000> : vector<256xf32>
    %66 = vector.multi_reduction <maximumf>, %64, %cst_37 [1] : vector<256x256xf32> to vector<256xf32>
    %67 = vector.shape_cast %66 : vector<256xf32> to vector<256x1xf32>
    %68 = arith.maximumf %65, %67 : vector<256x1xf32>
    %69 = arith.subf %65, %68 : vector<256x1xf32>
    %70 = math.exp %69 : vector<256x1xf32>
    %71 = vector.broadcast %68 : vector<256x1xf32> to vector<256x256xf32>
    %72 = arith.subf %64, %71 : vector<256x256xf32>
    %73 = arith.truncf %72 : vector<256x256xf32> to vector<256x256xbf16>
    %74 = math.exp %73 : vector<256x256xbf16>
    %c0_38 = arith.constant 0 : index
    %c0_39 = arith.constant 0 : index
    %75 = vector.load %arg12[%c0_38, %c0_39] : memref<256x1xf32, #tpu.memory_space<vmem>>, vector<256x1xf32>
    %76 = arith.mulf %70, %75 : vector<256x1xf32>
    %77 = arith.extf %74 : vector<256x256xbf16> to vector<256x256xf32>
    %cst_40 = arith.constant dense<0.000000e+00> : vector<256xf32>
    %78 = vector.multi_reduction <add>, %77, %cst_40 [1] : vector<256x256xf32> to vector<256xf32>
    %79 = vector.shape_cast %78 : vector<256xf32> to vector<256x1xf32>
    %80 = arith.addf %76, %79 : vector<256x1xf32>
    %c0_41 = arith.constant 0 : index
    %c0_42 = arith.constant 0 : index
    %81 = vector.load %arg12[%c0_41, %c0_42] : memref<256x1xf32, #tpu.memory_space<vmem>>, vector<256x1xf32>
    tpu.vector_store %arg12[%c0_41, %c0_42], %80 {strides = array<i32>} : memref<256x1xf32, #tpu.memory_space<vmem>>, vector<256x1xf32>,
    %c0_43 = arith.constant 0 : index
    %c0_44 = arith.constant 0 : index
    %82 = vector.load %arg13[%c0_43, %c0_44] : memref<256x128xf32, #tpu.memory_space<vmem>>, vector<256x128xf32>
    %83 = vector.broadcast %70 : vector<256x1xf32> to vector<256x128xf32>
    %84 = arith.mulf %83, %82 : vector<256x128xf32>
    %cst_45 = arith.constant dense<0.000000e+00> : vector<256x128xf32>
    %85 = tpu.matmul %74, %63, %cst_45 {dimension_numbers = #tpu.dot_dimension_numbers<[1], [0], [0], [1], [0, 0, 1, 1], [], []>} : vector<256x256xbf16>, vector<256x128xbf16>, vector<256x128xf32> -> vector<256x128xf32>
    %86 = arith.addf %84, %85 : vector<256x128xf32>
    %c0_46 = arith.constant 0 : index
    %c0_47 = arith.constant 0 : index
    %87 = vector.load %arg13[%c0_46, %c0_47] : memref<256x128xf32, #tpu.memory_space<vmem>>, vector<256x128xf32>
    tpu.vector_store %arg13[%c0_46, %c0_47], %86 {strides = array<i32>} : memref<256x128xf32, #tpu.memory_space<vmem>>, vector<256x128xf32>,
    %c0_48 = arith.constant 0 : index
    %c0_49 = arith.constant 0 : index
    %88 = vector.load %arg11[%c0_48, %c0_49] : memref<256x1xf32, #tpu.memory_space<vmem>>, vector<256x1xf32>
    tpu.vector_store %arg11[%c0_48, %c0_49], %68 {strides = array<i32>} : memref<256x1xf32, #tpu.memory_space<vmem>>, vector<256x1xf32>,
    %c1_i32_50 = arith.constant 1 : i32
    %c0_51 = arith.constant 0 : index
    %c0_52 = arith.constant 0 : index
    %89 = vector.load %arg13[%c0_51, %c0_52] : memref<256x128xf32, #tpu.memory_space<vmem>>, vector<256x128xf32>
    %c0_53 = arith.constant 0 : index
    %c0_54 = arith.constant 0 : index
    %90 = vector.load %arg12[%c0_53, %c0_54] : memref<256x1xf32, #tpu.memory_space<vmem>>, vector<256x1xf32>
    %91 = tpu.reciprocal %90 {approx = true} : vector<256x1xf32> -> vector<256x1xf32>
    %92 = vector.broadcast %91 : vector<256x1xf32> to vector<256x128xf32>
    %93 = arith.mulf %89, %92 : vector<256x128xf32>
    %94 = arith.truncf %93 : vector<256x128xf32> to vector<256x128xbf16>
    %c0_55 = arith.constant 0 : index
    %c0_56 = arith.constant 0 : index
    %95 = vector.load %arg6[%c0_55, %c0_56] : memref<128x32xbf16, #tpu.memory_space<vmem>>, vector<128x32xbf16>
    %cst_57 = arith.constant dense<0.000000e+00> : vector<256x32xf32>
    %96 = tpu.matmul %94, %95, %cst_57 {dimension_numbers = #tpu.dot_dimension_numbers<[1], [0], [0], [1], [0, 0, 1, 1], [], []>} : vector<256x128xbf16>, vector<128x32xbf16>, vector<256x32xf32> -> vector<256x32xf32>
    %c0_58 = arith.constant 0 : index
    %c0_59 = arith.constant 0 : index
    %97 = vector.load %arg7[%c0_58, %c0_59] : memref<1x32xf32, #tpu.memory_space<vmem>>, vector<1x32xf32>
    %98 = vector.broadcast %97 : vector<1x32xf32> to vector<256x32xf32>
    %99 = arith.addf %96, %98 : vector<256x32xf32>
    %100 = arith.addf %2, %99 : vector<256x32xf32>
    %101 = arith.truncf %100 : vector<256x32xf32> to vector<256x32xbf16>
    %c0_60 = arith.constant 0 : index
    %c0_61 = arith.constant 0 : index
    %c0_62 = arith.constant 0 : index
    %102 = vector.load %arg8[%c0_60, %c0_61, %c0_62] : memref<1x256x32xbf16, #tpu.memory_space<vmem>>, vector<1x256x32xbf16>
    %103 = vector.shape_cast %102 : vector<1x256x32xbf16> to vector<256x32xbf16>
    %104 = vector.shape_cast %101 : vector<256x32xbf16> to vector<1x256x32xbf16>
    tpu.vector_store %arg8[%c0_60, %c0_61, %c0_62], %104 {strides = array<i32>} : memref<1x256x32xbf16, #tpu.memory_space<vmem>>, vector<1x256x32xbf16>,
    return
  }
  func.func @transform_0(%arg0: i32) -> (i32, i32, i32) {
    %c0_i32 = arith.constant 0 : i32
    %c0_i32_0 = arith.constant 0 : i32
    %c0_i32_1 = arith.constant 0 : i32
    return %arg0, %c0_i32, %c0_i32_0 : i32, i32, i32
  }
  func.func @transform_1(%arg0: i32) -> (i32, i32) {
    %c0_i32 = arith.constant 0 : i32
    %c0_i32_0 = arith.constant 0 : i32
    %c0_i32_1 = arith.constant 0 : i32
    return %c0_i32, %c0_i32_0 : i32, i32
  }
  func.func @transform_2(%arg0: i32) -> (i32, i32) {
    %c0_i32 = arith.constant 0 : i32
    %c0_i32_0 = arith.constant 0 : i32
    %c0_i32_1 = arith.constant 0 : i32
    return %c0_i32, %c0_i32_0 : i32, i32
  }
  func.func @transform_3(%arg0: i32) -> (i32, i32) {
    %c0_i32 = arith.constant 0 : i32
    %c0_i32_0 = arith.constant 0 : i32
    %c0_i32_1 = arith.constant 0 : i32
    return %c0_i32, %c0_i32_0 : i32, i32
  }
  func.func @transform_4(%arg0: i32) -> (i32, i32) {
    %c0_i32 = arith.constant 0 : i32
    %c0_i32_0 = arith.constant 0 : i32
    %c0_i32_1 = arith.constant 0 : i32
    return %c0_i32, %c0_i32_0 : i32, i32
  }
  func.func @transform_5(%arg0: i32) -> (i32, i32) {
    %c0_i32 = arith.constant 0 : i32
    %c0_i32_0 = arith.constant 0 : i32
    %c0_i32_1 = arith.constant 0 : i32
    return %c0_i32, %c0_i32_0 : i32, i32
  }
  func.func @transform_6(%arg0: i32) -> (i32, i32) {
    %c0_i32 = arith.constant 0 : i32
    %c0_i32_0 = arith.constant 0 : i32
    %c0_i32_1 = arith.constant 0 : i32
    return %c0_i32, %c0_i32_0 : i32, i32
  }
  func.func @transform_7(%arg0: i32) -> (i32, i32, i32) {
    %c0_i32 = arith.constant 0 : i32
    %c0_i32_0 = arith.constant 0 : i32
    %c0_i32_1 = arith.constant 0 : i32
    return %arg0, %c0_i32, %c0_i32_0 : i32, i32, i32
  }
}

</mosaic_0001>

<bundles_post_ra>
// kernel: tpu_custom_call.1
= control target key start
LH: loop header
LB: loop body
LE: loop exit
PB: predicated region body
PF: predicated region fallthrough
CT: control target
= control target key end

     0   :  { %s5320_s24 = smov 0   ;;  %s7576_s0 = inlined_call_operand.vmem [shape: bf16[2,256,32], index: 0, kind: input, shape index: {}]   ;;  %s7577_s1 = inlined_call_operand.vmem [shape: f32[1,32], index: 1, kind: input, shape index: {}]   ;;  %s7578_s2 = inlined_call_operand.vmem [shape: f32[1,32], index: 2, kind: input, shape index: {}]   ;;  %s7579_s3 = inlined_call_operand.vmem [shape: bf16[32,384], index: 3, kind: input, shape index: {}]   ;;  %s7580_s4 = inlined_call_operand.vmem [shape: f32[1,384], index: 4, kind: input, shape index: {}]   ;;  %s7581_s5 = inlined_call_operand.vmem [shape: bf16[128,32], index: 5, kind: input, shape index: {}]   ;;  %s7582_s6 = inlined_call_operand.vmem [shape: f32[1,32], index: 6, kind: input, shape index: {}]   ;;  %s7583_s7 = inlined_call_operand.vmem [shape: bf16[2,256,32], index: 7, kind: output, shape index: {}]  }
   0x1 LB: > { %s4541_s25 = sadd.s32 4294967295, %s5274_s24   ;;  %p4545_p0 = scmp.ge.s32.totalorder %s5274_s24, 1  ;;  %s5274_s24 = sphi %s5320_s24, %s17_s24  }
   0x2   : > { %p237_p1 = scmp.lt.s32.totalorder %s5274_s24, 3 }
   0x4   : > { %p238_p2 = pnand %p4545_p0, %p237_p1 }
   0x6   : > { %241 = sbr.rel (%p238_p2) target bundleno = 2301 (0x8fd), region = 48 }
   0xd   : > { %p269_p3 = scmp.lt.s32.totalorder %s4541_s25, 1  ;;  %vm346_vm0 = vcmask 261120   ;;  %vm929_vm1 = vcmask 130112   ;;  %vm936_vm2 = vcmask 195712   ;;  %vm943_vm3 = vcmask 261312  }
   0xe   : > { %vm2058_vm4 = vcmask 7168   ;;  %vm4453_vm5 = vcmask 257024  }
   0xf   : > { %s8016_s25 = smov (!%p269_p3, %s4541_s25), 1 }
  0x10   : > { %s4639_s26 = sshll.u32 %s8016_s25, 7 }
  0x11   : > { %s5336_s29 = scalar_lea.vmem %s7576_s0, %s4639_s26  ;;  %s7447_s28 = scalar_lea.vmem %s7583_s7, %s4639_s26 }
  0x12   : > { %v4674_v0 = vld [vmem:[%s5336_s29] sm:$0xff]   ;;  %v4737_v1 = vld [vmem:[%s5336_s29 + $0x8] sm:$0xff]   ;;  %v4738_v5 = vld [vmem:[%s5336_s29 + $0x10] sm:$0xff]  }
  0x13   : > { %v5340_v2 = vunpack.c.l.bf16 %v4674_v0  ;;  %v5342_v3 = vunpack.c.h.bf16 %v4674_v0  ;;  %v5344_v4 = vunpack.c.l.bf16 %v4737_v1  ;;  %v5347_v6 = vunpack.c.h.bf16 %v4737_v1  ;;  %v4739_v11 = vld [vmem:[%s5336_s29 + $0x18] sm:$0xff]   ;;  %v4740_v18 = vld [vmem:[%s5336_s29 + $0x20] sm:$0xff]   ;;  %v4741_v25 = vld [vmem:[%s5336_s29 + $0x28] sm:$0xff]  }
  0x14   : > { %v5349_v7 = vunpack.c.l.bf16 %v4738_v5  ;;  %v5358_v13 = vunpack.c.h.bf16 %v4738_v5  ;;  %v5362_v16 = vunpack.c.l.bf16 %v4739_v11  ;;  %v5367_v20 = vunpack.c.h.bf16 %v4739_v11  ;;  %v4742_v33 = vld [vmem:[%s5336_s29 + $0x30] sm:$0xff]   ;;  %v4743_v44 = vld [vmem:[%s5336_s29 + $0x38] sm:$0xff]   ;;  %v4744_v57 = vld [vmem:[%s5336_s29 + $0x40] sm:$0xff]  }
  0x15   : > { %7716 = vst [vmem:[#allocation7_spill] sm:$0xff] %v5340_v2  ;;  %7717 = vst [vmem:[#allocation8_spill] sm:$0xff] %v5342_v3  ;;  %v347_v8 = vsel %vm346_vm0, %v5340_v2, 0.0  ;;  %v348_v9 = vsel %vm346_vm0, %v5342_v3, 0.0  ;;  %v350_v10 = vsel %vm346_vm0, %v5344_v4, 0.0  ;;  %v352_v14 = vsel %vm346_vm0, %v5347_v6, 0.0 }
  0x16   : > { %7718 = vst [vmem:[#allocation9_spill] sm:$0xff] %v5344_v4  ;;  %7719 = vst [vmem:[#allocation10_spill] sm:$0xff] %v5347_v6  ;;  %v349_v12 = vadd.f32 %v348_v9, %v347_v8  ;;  %v354_v17 = vsel %vm346_vm0, %v5349_v7, 0.0  ;;  %v356_v21 = vsel %vm346_vm0, %v5358_v13, 0.0  ;;  %v5371_v23 = vunpack.c.l.bf16 %v4740_v18  ;;  %v4745_v11 = vld [vmem:[%s5336_s29 + $0x48] sm:$0xff]  }
  0x17   : > { %7720 = vst [vmem:[#allocation11_spill] sm:$0xff] %v5349_v7  ;;  %7721 = vst [vmem:[#allocation12_spill] sm:$0xff] %v5358_v13  ;;  %v358_v24 = vsel %vm346_vm0, %v5362_v16, 0.0  ;;  %v5376_v27 = vunpack.c.h.bf16 %v4740_v18  ;;  %v360_v28 = vsel %vm346_vm0, %v5367_v20, 0.0  ;;  %v5380_v30 = vunpack.c.l.bf16 %v4741_v25 }
  0x18   : > { %v351_v15 = vadd.f32 %v350_v10, %v349_v12  ;;  %7722 = vst [vmem:[#allocation13_spill] sm:$0xff] %v5362_v16  ;;  %7723 = vst [vmem:[#allocation14_spill] sm:$0xff] %v5367_v20  ;;  %v362_v31 = vsel %vm346_vm0, %v5371_v23, 0.0  ;;  %v5384_v32 = vunpack.c.h.bf16 %v4741_v25  ;;  %v416_v36 = vmul.f32 %v5340_v2, %v5340_v2 }
  0x19   : > { %7724 = vst [vmem:[#allocation15_spill] sm:$0xff] %v5371_v23  ;;  %7725 = vst [vmem:[#allocation16_spill] sm:$0xff] %v5376_v27  ;;  %v364_v35 = vsel %vm346_vm0, %v5376_v27, 0.0  ;;  %v417_v37 = vmul.f32 %v5342_v3, %v5342_v3  ;;  %v418_v38 = vmul.f32 %v5344_v4, %v5344_v4  ;;  %v5395_v40 = vunpack.c.l.bf16 %v4742_v33 }
  0x1a   : > { %v353_v19 = vadd.f32 %v352_v14, %v351_v15  ;;  %7726 = vst [vmem:[#allocation17_spill] sm:$0xff] %v5380_v30  ;;  %7727 = vst [vmem:[#allocation18_spill] sm:$0xff] %v5384_v32  ;;  %v366_v41 = vsel %vm346_vm0, %v5380_v30, 0.0  ;;  %v419_v42 = vmul.f32 %v5347_v6, %v5347_v6  ;;  %v5401_v43 = vunpack.c.h.bf16 %v4742_v33 }
  0x1b   : > { %7728 = vst [vmem:[#allocation19_spill] sm:$0xff] %v5395_v40  ;;  %v368_v46 = vsel %vm346_vm0, %v5384_v32, 0.0  ;;  %v420_v47 = vmul.f32 %v5349_v7, %v5349_v7  ;;  %v448_v48 = vsel %vm346_vm0, %v416_v36, 0.0  ;;  %v449_v49 = vsel %vm346_vm0, %v417_v37, 0.0 }
  0x1c   : > { %v355_v22 = vadd.f32 %v354_v17, %v353_v19  ;;  %7729 = vst [vmem:[#allocation20_spill] sm:$0xff] %v5401_v43  ;;  %v451_v50 = vsel %vm346_vm0, %v418_v38, 0.0  ;;  %v450_v52 = vadd.f32 %v449_v49, %v448_v48  ;;  %v5411_v53 = vunpack.c.l.bf16 %v4743_v44 }
  0x1d   : > { %v370_v54 = vsel %vm346_vm0, %v5395_v40, 0.0  ;;  %v421_v55 = vmul.f32 %v5358_v13, %v5358_v13  ;;  %v453_v56 = vsel %vm346_vm0, %v419_v42, 0.0  ;;  %v5419_v60 = vunpack.c.h.bf16 %v4743_v44 }
  0x1e   : > { %v357_v26 = vadd.f32 %v356_v21, %v355_v22  ;;  %7730 = vst [vmem:[#allocation21_spill] sm:$0xff] %v5411_v53  ;;  %v452_v59 = vadd.f32 %v451_v50, %v450_v52  ;;  %v372_v61 = vsel %vm346_vm0, %v5401_v43, 0.0  ;;  %v422_v62 = vmul.f32 %v5362_v16, %v5362_v16 }
  0x1f   : > { %7731 = vst [vmem:[#allocation22_spill] sm:$0xff] %v5419_v60  ;;  %v455_v63 = vsel %vm346_vm0, %v420_v47, 0.0  ;;  %v5426_v5 = vunpack.c.l.bf16 %v4744_v57  ;;  %v374_v8 = vsel %vm346_vm0, %v5411_v53, 0.0  ;;  %v423_v9 = vmul.f32 %v5367_v20, %v5367_v20 }
  0x20   : > { %v359_v29 = vadd.f32 %v358_v24, %v357_v26  ;;  %v454_v1 = vadd.f32 %v453_v56, %v452_v59  ;;  %v457_v10 = vsel %vm346_vm0, %v421_v55, 0.0  ;;  %v5434_v15 = vunpack.c.h.bf16 %v4744_v57 }
  0x21   : > { %7732 = vst [vmem:[#allocation23_spill] sm:$0xff] %v5426_v5  ;;  %v376_v17 = vsel %vm346_vm0, %v5419_v60, 0.0  ;;  %v424_v18 = vmul.f32 %v5371_v23, %v5371_v23  ;;  %v459_v19 = vsel %vm346_vm0, %v422_v62, 0.0  ;;  %v5441_v24 = vunpack.c.l.bf16 %v4745_v11 }
  0x22   : > { %v361_v34 = vadd.f32 %v360_v28, %v359_v29  ;;  %v456_v14 = vadd.f32 %v455_v63, %v454_v1  ;;  %7733 = vst [vmem:[#allocation24_spill] sm:$0xff] %v5434_v15  ;;  %v378_v25 = vsel %vm346_vm0, %v5426_v5, 0.0  ;;  %v425_v26 = vmul.f32 %v5376_v27, %v5376_v27  ;;  %v4746_v29 = vld [vmem:[%s5336_s29 + $0x50] sm:$0xff]  }
  0x23   : > { %7734 = vst [vmem:[#allocation25_spill] sm:$0xff] %v5441_v24  ;;  %v461_v28 = vsel %vm346_vm0, %v423_v9, 0.0  ;;  %v426_v36 = vmul.f32 %v5380_v30, %v5380_v30  ;;  %v463_v37 = vsel %vm346_vm0, %v424_v18, 0.0  ;;  %v382_v42 = vsel %vm346_vm0, %v5441_v24, 0.0 }
  0x24   : > { %v363_v39 = vadd.f32 %v362_v31, %v361_v34  ;;  %v458_v22 = vadd.f32 %v457_v10, %v456_v14  ;;  %v5449_v34 = vunpack.c.h.bf16 %v4745_v11  ;;  %v427_v44 = vmul.f32 %v5384_v32, %v5384_v32 }
  0x25   : > { %v5464_v49 = vunpack.c.h.bf16 %v4746_v29  ;;  %v467_v52 = vsel %vm346_vm0, %v426_v36, 0.0 }
  0x26   : > { %v365_v45 = vadd.f32 %v364_v35, %v363_v39  ;;  %v460_v33 = vadd.f32 %v459_v19, %v458_v22  ;;  %7735 = vst [vmem:[#allocation26_spill] sm:$0xff] %v5449_v34  ;;  %v380_v35 = vsel %vm346_vm0, %v5434_v15, 0.0  ;;  %v384_v50 = vsel %vm346_vm0, %v5449_v34, 0.0  ;;  %v4749_v19 = vld [vmem:[%s5336_s29 + $0x68] sm:$0xff]  }
  0x27   : > { %7737 = vst [vmem:[#allocation28_spill] sm:$0xff] %v5464_v49  ;;  %v469_v59 = vsel %vm346_vm0, %v427_v44, 0.0  ;;  %v388_v1 = vsel %vm346_vm0, %v5464_v49, 0.0 }
  0x28   : > { %v367_v51 = vadd.f32 %v366_v41, %v365_v45  ;;  %v462_v39 = vadd.f32 %v461_v28, %v460_v33  ;;  %v5456_v41 = vunpack.c.l.bf16 %v4746_v29  ;;  %v465_v45 = vsel %vm346_vm0, %v425_v26, 0.0 }
  0x29   : > { %v432_v28 = vmul.f32 %v5426_v5, %v5426_v5 }
  0x2a   : > { %v369_v58 = vadd.f32 %v368_v46, %v367_v51  ;;  %7736 = vst [vmem:[#allocation27_spill] sm:$0xff] %v5456_v41  ;;  %v4747_v46 = vld [vmem:[%s5336_s29 + $0x58] sm:$0xff]   ;;  %v464_v48 = vadd.f32 %v463_v37, %v462_v39  ;;  %v428_v51 = vmul.f32 %v5395_v40, %v5395_v40  ;;  %v386_v57 = vsel %vm346_vm0, %v5456_v41, 0.0  ;;  %v4750_v39 = vld [vmem:[%s5336_s29 + $0x70] sm:$0xff]  }
  0x2b   : > { %v5471_v56 = vunpack.c.l.bf16 %v4747_v46  ;;  %v433_v37 = vmul.f32 %v5434_v15, %v5434_v15 }
  0x2c   : > { %v371_v0 = vadd.f32 %v370_v54, %v369_v58  ;;  %v466_v55 = vadd.f32 %v465_v45, %v464_v48  ;;  %v429_v58 = vmul.f32 %v5401_v43, %v5401_v43  ;;  %v471_v9 = vsel %vm346_vm0, %v428_v51, 0.0 }
  0x2d   : > { %7738 = vst [vmem:[#allocation29_spill] sm:$0xff] %v5471_v56  ;;  %v390_v14 = vsel %vm346_vm0, %v5471_v56, 0.0  ;;  %v5509_v45 = vunpack.c.h.bf16 %v4749_v19  ;;  %v479_v48 = vsel %vm346_vm0, %v432_v28, 0.0  ;;  %v438_v28 = vmul.f32 %v5471_v56, %v5471_v56 }
  0x2e   : > { %v373_v12 = vadd.f32 %v372_v61, %v371_v0  ;;  %v4748_v61 = vld [vmem:[%s5336_s29 + $0x60] sm:$0xff]   ;;  %v468_v63 = vadd.f32 %v467_v52, %v466_v55  ;;  %v5479_v0 = vunpack.c.h.bf16 %v4747_v46  ;;  %v473_v18 = vsel %vm346_vm0, %v429_v58, 0.0  ;;  %v4751_v58 = vld [vmem:[%s5336_s29 + $0x78] sm:$0xff]  }
  0x2f   : > { %7743 = vst [vmem:[#allocation34_spill] sm:$0xff] %v5509_v45  ;;  %v5516_v52 = vunpack.c.l.bf16 %v4750_v39  ;;  %v435_v55 = vmul.f32 %v5449_v34, %v5449_v34 }
  0x30   : > { %v375_v21 = vadd.f32 %v374_v8, %v373_v12  ;;  %7739 = vst [vmem:[#allocation30_spill] sm:$0xff] %v5479_v0  ;;  %v430_v8 = vmul.f32 %v5411_v53, %v5411_v53  ;;  %v470_v11 = vadd.f32 %v469_v59, %v468_v63  ;;  %v5486_v12 = vunpack.c.l.bf16 %v4748_v61 }
  0x31   : > { %v392_v26 = vsel %vm346_vm0, %v5479_v0, 0.0  ;;  %7744 = vst [vmem:[#allocation35_spill] sm:$0xff] %v5516_v52  ;;  %v400_v63 = vsel %vm346_vm0, %v5509_v45, 0.0 }
  0x32   : > { %v377_v31 = vadd.f32 %v376_v17, %v375_v21  ;;  %7740 = vst [vmem:[#allocation31_spill] sm:$0xff] %v5486_v12  ;;  %v431_v17 = vmul.f32 %v5419_v60, %v5419_v60  ;;  %v472_v22 = vadd.f32 %v471_v9, %v470_v11  ;;  %v475_v29 = vsel %vm346_vm0, %v430_v8, 0.0 }
  0x33   : > { %v394_v36 = vsel %vm346_vm0, %v5486_v12, 0.0  ;;  %v5531_v11 = vunpack.c.l.bf16 %v4751_v58 }
  0x34   : > { %v379_v38 = vadd.f32 %v378_v25, %v377_v31  ;;  %v5494_v25 = vunpack.c.h.bf16 %v4748_v61  ;;  %v474_v33 = vadd.f32 %v473_v18, %v472_v22  ;;  %v485_v18 = vsel %vm346_vm0, %v435_v55, 0.0 }
  0x35   : > { %7746 = vst [vmem:[#allocation37_spill] sm:$0xff] %v5531_v11  ;;  %v5538_v22 = vunpack.c.h.bf16 %v4751_v58 }
  0x36   : > { %v381_v47 = vadd.f32 %v380_v35, %v379_v38  ;;  %7741 = vst [vmem:[#allocation32_spill] sm:$0xff] %v5494_v25  ;;  %v5501_v35 = vunpack.c.l.bf16 %v4749_v19  ;;  %v477_v38 = vsel %vm346_vm0, %v431_v17, 0.0  ;;  %v476_v44 = vadd.f32 %v475_v29, %v474_v33 }
  0x37   : > { %v396_v46 = vsel %vm346_vm0, %v5494_v25, 0.0  ;;  %v437_v17 = vmul.f32 %v5464_v49, %v5464_v49  ;;  %7747 = vst [vmem:[#allocation38_spill] sm:$0xff] %v5538_v22 }
  0x38   : > { %v383_v54 = vadd.f32 %v382_v42, %v381_v47  ;;  %7742 = vst [vmem:[#allocation33_spill] sm:$0xff] %v5501_v35  ;;  %v434_v47 = vmul.f32 %v5441_v24, %v5441_v24  ;;  %v478_v51 = vadd.f32 %v477_v38, %v476_v44  ;;  %v408_v44 = vsel %vm346_vm0, %v5538_v22, 0.0 }
  0x39   : > { %v489_v38 = vsel %vm346_vm0, %v437_v17, 0.0  ;;  %v442_v58 = vmul.f32 %v5501_v35, %v5501_v35 }
  0x3a   : > { %v385_v62 = vadd.f32 %v384_v50, %v383_v54  ;;  %v398_v54 = vsel %vm346_vm0, %v5501_v35, 0.0  ;;  %v480_v61 = vadd.f32 %v479_v48, %v478_v51  ;;  %v483_v8 = vsel %vm346_vm0, %v434_v47, 0.0 }
  0x3b   : > { %v491_v47 = vsel %vm346_vm0, %v438_v28, 0.0  ;;  %v441_v51 = vmul.f32 %v5494_v25, %v5494_v25  ;;  %v499_v17 = vsel %vm346_vm0, %v442_v58, 0.0 }
  0x3c   : > { %v387_v10 = vadd.f32 %v386_v57, %v385_v62  ;;  %v481_v57 = vsel %vm346_vm0, %v433_v37, 0.0  ;;  %v5524_v62 = vunpack.c.h.bf16 %v4750_v39  ;;  %v439_v37 = vmul.f32 %v5479_v0, %v5479_v0 }
  0x3e   : > { %v389_v21 = vadd.f32 %v388_v1, %v387_v10  ;;  %7745 = vst [vmem:[#allocation36_spill] sm:$0xff] %v5524_v62  ;;  %v436_v1 = vmul.f32 %v5456_v41, %v5456_v41  ;;  %v482_v10 = vadd.f32 %v481_v57, %v480_v61 }
  0x40   : > { %v391_v31 = vadd.f32 %v390_v14, %v389_v21  ;;  %v402_v14 = vsel %vm346_vm0, %v5516_v52, 0.0  ;;  %v484_v21 = vadd.f32 %v483_v8, %v482_v10  ;;  %v487_v29 = vsel %vm346_vm0, %v436_v1, 0.0 }
  0x41   : > { %v443_v1 = vmul.f32 %v5509_v45, %v5509_v45  ;;  %v497_v8 = vsel %vm346_vm0, %v441_v51, 0.0 }
  0x42   : > { %v393_v42 = vadd.f32 %v392_v26, %v391_v31  ;;  %v404_v26 = vsel %vm346_vm0, %v5524_v62, 0.0  ;;  %v486_v33 = vadd.f32 %v485_v18, %v484_v21  ;;  %v445_v21 = vmul.f32 %v5524_v62, %v5524_v62 }
  0x44   : > { %v395_v50 = vadd.f32 %v394_v36, %v393_v42  ;;  %v406_v36 = vsel %vm346_vm0, %v5531_v11, 0.0  ;;  %v488_v42 = vadd.f32 %v487_v29, %v486_v33 }
  0x46   : > { %v397_v59 = vadd.f32 %v396_v46, %v395_v50  ;;  %v440_v46 = vmul.f32 %v5486_v12, %v5486_v12  ;;  %v490_v50 = vadd.f32 %v489_v38, %v488_v42  ;;  %v447_v38 = vmul.f32 %v5538_v22, %v5538_v22 }
  0x48   : > { %v399_v9 = vadd.f32 %v398_v54, %v397_v59  ;;  %v493_v54 = vsel %vm346_vm0, %v439_v37, 0.0  ;;  %v492_v57 = vadd.f32 %v491_v47, %v490_v50  ;;  %v495_v59 = vsel %vm346_vm0, %v440_v46, 0.0 }
  0x4a   : > { %v401_v19 = vadd.f32 %v400_v63, %v399_v9  ;;  %v494_v63 = vadd.f32 %v493_v54, %v492_v57 }
  0x4c   : > { %v403_v31 = vadd.f32 %v402_v14, %v401_v19  ;;  %v496_v10 = vadd.f32 %v495_v59, %v494_v63  ;;  %v444_v14 = vmul.f32 %v5516_v52, %v5516_v52  ;;  %v7584_v63 = vmov 0  }
  0x4d   : > { %5051 = vset.pattern.permute.xlu1 %v7584_v63  ;;  %5050 = vset.pattern.permute.xlu0 %v7584_v63 }
  0x4e   : > { %v405_v39 = vadd.f32 %v404_v26, %v403_v31  ;;  %v498_v19 = vadd.f32 %v497_v8, %v496_v10  ;;  %v501_v26 = vsel %vm346_vm0, %v443_v1, 0.0  ;;  %v446_v31 = vmul.f32 %v5531_v11, %v5531_v11  ;;  %1656 = vmatprep.mubr.bf16.mxu0 %v7584_v63 }
  0x4f   : > { %v503_v33 = vsel %vm346_vm0, %v444_v14, 0.0 }
  0x50   : > { %v407_v48 = vadd.f32 %v406_v36, %v405_v39  ;;  %v500_v29 = vadd.f32 %v499_v17, %v498_v19  ;;  %v505_v39 = vsel %vm346_vm0, %v445_v21, 0.0  ;;  %v507_v46 = vsel %vm346_vm0, %v446_v31, 0.0 }
  0x52   : > { %v409_v55 = vadd.f32 %v408_v44, %v407_v48  ;;  %v502_v37 = vadd.f32 %v501_v26, %v500_v29  ;;  %v509_v48 = vsel %vm346_vm0, %v447_v38, 0.0 }
  0x54   : > { %v410_v61 = vrot.slane %v409_v55, 4  ;;  %v504_v44 = vadd.f32 %v503_v33, %v502_v37 }
  0x56   : > { %v411_v9 = vadd.f32 %v410_v61, %v409_v55  ;;  %v506_v47 = vadd.f32 %v505_v39, %v504_v44 }
  0x58   : > { %v412_v18 = vrot.slane %v411_v9, 2  ;;  %v508_v50 = vadd.f32 %v507_v46, %v506_v47 }
  0x5a   : > { %v413_v28 = vadd.f32 %v412_v18, %v411_v9  ;;  %v510_v51 = vadd.f32 %v509_v48, %v508_v50 }
  0x5c   : > { %v414_v36 = vrot.slane %v413_v28, 1  ;;  %v511_v54 = vrot.slane %v510_v51, 4 }
  0x5e   : > { %v415_v42 = vadd.f32 %v414_v36, %v413_v28  ;;  %v512_v55 = vadd.f32 %v511_v54, %v510_v51 }
  0x60   : > { %527 = vbcast.lane.b32.xlu1 %v415_v42, 272  ;;  %519 = vbcast.lane.b32.xlu0 %v415_v42, 256  ;;  %v513_v57 = vrot.slane %v512_v55, 2 }
  0x62   : > { %v514_v58 = vadd.f32 %v513_v57, %v512_v55 }
  0x64   : > { %531 = vbcast.lane.b32.xlu1 %v415_v42, 280  ;;  %523 = vbcast.lane.b32.xlu0 %v415_v42, 264  ;;  %v515_v59 = vrot.slane %v514_v58, 1 }
  0x66   : > { %v516_v61 = vadd.f32 %v515_v59, %v514_v58  ;;  %v7586_v58 = vlaneseq }
  0x68   : > { %539 = vbcast.lane.b32.xlu1 %v516_v61, 264  ;;  %535 = vbcast.lane.b32.xlu0 %v516_v61, 256 }
  0x6c   : > { %547 = vbcast.lane.b32.xlu1 %v516_v61, 280  ;;  %543 = vbcast.lane.b32.xlu0 %v516_v61, 272 }
  0xd2   : > { %v528_v1 = vpop.permute.xlu1 %527  ;;  %v520_v8 = vpop.permute.xlu0 %519 }
  0xd3   : > { %v5581_v14 = vmul.f32 0.00390625, %v520_v8  ;;  %v5585_v18 = vmul.f32 0.00390625, %v528_v1  ;;  %v5277_v8 = vmov 1966171168  }
  0xd5   : > { %v558_v28 = vmul.f32 %v5581_v14, %v5581_v14  ;;  %v560_v38 = vmul.f32 %v5585_v18, %v5585_v18 }
  0xd6   : > { %v532_v9 = vpop.permute.xlu1 %531  ;;  %v524_v10 = vpop.permute.xlu0 %523 }
  0xd7   : > { %v5583_v17 = vmul.f32 0.00390625, %v524_v10  ;;  %v5587_v19 = vmul.f32 0.00390625, %v532_v9  ;;  %v715_v9 = vunpack.c.l.s4 %v5277_v8  ;;  %v5598_v10 = vshrl.u32 %v7586_v58, 7 }
  0xd9   : > { %v559_v29 = vmul.f32 %v5583_v17, %v5583_v17  ;;  %v561_v39 = vmul.f32 %v5587_v19, %v5587_v19 }
  0xda   : > { %v540_v21 = vpop.permute.xlu1 %539  ;;  %v536_v26 = vpop.permute.xlu0 %535 }
  0xdb   : > { %v555_v31 = vmul.f32 0.00390625, %v540_v21  ;;  %v554_v33 = vmul.f32 0.00390625, %v536_v26  ;;  %v716_v26 = vunpack.c.0.s8 %v715_v9 }
  0xdd   : > { %v563_v36 = vsub.f32 %v555_v31, %v559_v29  ;;  %v562_v37 = vsub.f32 %v554_v33, %v558_v28  ;;  %v5601_v28 = vsub.s32 0, %v5598_v10  ;;  %v5604_v29 = vsub.s32 1, %v5598_v10 }
  0xde   : > { %v548_v42 = vpop.permute.xlu1 %547  ;;  %v544_v44 = vpop.permute.xlu0 %543  ;;  %v5607_v31 = vsub.s32 2, %v5598_v10  ;;  %v5610_v33 = vsub.s32 3, %v5598_v10 }
  0xdf   : > { %v567_v46 = vmax.f32 %v563_v36, 0.0  ;;  %v566_v47 = vmax.f32 %v562_v37, 0.0  ;;  %v557_v48 = vmul.f32 0.00390625, %v548_v42  ;;  %v556_v50 = vmul.f32 0.00390625, %v544_v44 }
  0xe0   : > { %v5613_v36 = vsub.s32 4, %v5598_v10  ;;  %v5616_v37 = vsub.s32 5, %v5598_v10  ;;  %v5625_v44 = vsub.s32 %v716_v26, %v5598_v10 }
  0xe1   : > { %v571_v51 = vadd.f32 1e-06, %v567_v46  ;;  %v570_v54 = vadd.f32 1e-06, %v566_v47  ;;  %v565_v55 = vsub.f32 %v557_v48, %v561_v39  ;;  %v564_v57 = vsub.f32 %v556_v50, %v560_v38 }
  0xe2   : > { %v5619_v38 = vsub.s32 6, %v5598_v10  ;;  %v5622_v39 = vsub.s32 7, %v5598_v10 }
  0xe3   : > { %5068 = vrsqrt.f32 %v571_v51  ;;  %v569_v59 = vmax.f32 %v565_v55, 0.0  ;;  %v568_v1 = vmax.f32 %v564_v57, 0.0 }
  0xe4   : > { %5070 = vrsqrt.f32 %v570_v54 }
  0xe5   : > { %v573_v61 = vadd.f32 1e-06, %v569_v59  ;;  %v572_v21 = vadd.f32 1e-06, %v568_v1 }
  0xe7   : > { %5072 = vrsqrt.f32 %v573_v61 }
  0xe8   : > { %5074 = vrsqrt.f32 %v572_v21 }
  0xed   : > { %v5069_v42 = vpop.eup %5068 }
  0xee   : > { %v5071_v46 = vpop.eup %5070  ;;  %v617_v47 = vrot.slane %v5069_v42, %v5601_v28  ;;  %v621_v48 = vrot.slane %v5069_v42, %v5604_v29  ;;  %v625_v50 = vrot.slane %v5069_v42, %v5607_v31  ;;  %v629_v51 = vrot.slane %v5069_v42, %v5610_v33 }
  0xef   : > { %v633_v54 = vrot.slane %v5069_v42, %v5613_v36  ;;  %v637_v55 = vrot.slane %v5069_v42, %v5616_v37  ;;  %v641_v57 = vrot.slane %v5069_v42, %v5619_v38  ;;  %v645_v59 = vrot.slane %v5069_v42, %v5622_v39 }
  0xf0   : > { %v759_v61 = vcombine.low %v617_v47, %v621_v48  ;;  %v760_v1 = vcombine.low %v625_v50, %v629_v51  ;;  %v585_v8 = vrot.slane %v5071_v46, %v5601_v28  ;;  %v589_v9 = vrot.slane %v5071_v46, %v5604_v29 }
  0xf1   : > { %v761_v21 = vcombine.low %v633_v54, %v637_v55  ;;  %v762_v26 = vcombine.low %v641_v57, %v645_v59  ;;  %v593_v63 = vrot.slane %v5071_v46, %v5607_v31  ;;  %v597_v58 = vrot.slane %v5071_v46, %v5610_v33  ;;  %v5073_v22 = vpop.eup %5072 }
  0xf2   : > { %v769_v11 = vrot.slane %v759_v61, %v5625_v44  ;;  %v776_v62 = vrot.slane %v760_v1, %v5625_v44  ;;  %v601_v52 = vrot.slane %v5071_v46, %v5613_v36  ;;  %v605_v42 = vrot.slane %v5071_v46, %v5616_v37  ;;  %v5075_v0 = vpop.eup %5074 }
  0xf3   : > { %v783_v47 = vrot.slane %v761_v21, %v5625_v44  ;;  %v790_v48 = vrot.slane %v762_v26, %v5625_v44  ;;  %v609_v50 = vrot.slane %v5071_v46, %v5619_v38  ;;  %v613_v51 = vrot.slane %v5071_v46, %v5622_v39 }
  0xf4   : > { %v791_v54 = vcombine.low %v769_v11, %v776_v62  ;;  %v710_v55 = vcombine.low %v585_v8, %v589_v9  ;;  %v711_v57 = vcombine.low %v593_v63, %v597_v58  ;;  %v712_v59 = vcombine.low %v601_v52, %v605_v42 }
  0xf5   : > { %v792_v45 = vcombine.low %v783_v47, %v790_v48  ;;  %v713_v61 = vcombine.low %v609_v50, %v613_v51  ;;  %v681_v1 = vrot.slane %v5073_v22, %v5601_v28  ;;  %v685_v35 = vrot.slane %v5073_v22, %v5604_v29 }
  0xf6   : > { %v799_v25 = vrot.slane %v791_v54, %v5625_v44  ;;  %v720_v21 = vrot.slane %v710_v55, %v5625_v44  ;;  %v727_v26 = vrot.slane %v711_v57, %v5625_v44  ;;  %v734_v12 = vrot.slane %v712_v59, %v5625_v44 }
  0xf7   : > { %v806_v62 = vrot.slane %v792_v45, %v5625_v44  ;;  %v741_v11 = vrot.slane %v713_v61, %v5625_v44  ;;  %v689_v52 = vrot.slane %v5073_v22, %v5607_v31  ;;  %v693_v63 = vrot.slane %v5073_v22, %v5610_v33 }
  0xf8   : > { %v742_v58 = vcombine.low %v720_v21, %v727_v26  ;;  %v697_v46 = vrot.slane %v5073_v22, %v5613_v36  ;;  %v701_v8 = vrot.slane %v5073_v22, %v5616_v37  ;;  %v705_v9 = vrot.slane %v5073_v22, %v5619_v38 }
  0xf9   : > { %v807_v42 = vcombine.low %v799_v25, %v806_v62  ;;  %v743_v47 = vcombine.low %v734_v12, %v741_v11  ;;  %v709_v48 = vrot.slane %v5073_v22, %v5622_v39  ;;  %v857_v50 = vcombine.low %v681_v1, %v685_v35 }
  0xfa   : > { %v750_v45 = vrot.slane %v742_v58, %v5625_v44  ;;  %v858_v51 = vcombine.low %v689_v52, %v693_v63  ;;  %v859_v54 = vcombine.low %v697_v46, %v701_v8  ;;  %v649_v55 = vrot.slane %v5075_v0, %v5601_v28 }
  0xfb   : > { %910 = vperm.xlu1 %5051, %v807_v42   ;;  %v757_v57 = vrot.slane %v743_v47, %v5625_v44  ;;  %v860_v59 = vcombine.low %v705_v9, %v709_v48  ;;  %v867_v61 = vrot.slane %v857_v50, %v5625_v44  ;;  %v653_v21 = vrot.slane %v5075_v0, %v5604_v29 }
  0xfc   : > { %v874_v25 = vrot.slane %v858_v51, %v5625_v44  ;;  %v881_v12 = vrot.slane %v859_v54, %v5625_v44  ;;  %v657_v35 = vrot.slane %v5075_v0, %v5607_v31  ;;  %v661_v22 = vrot.slane %v5075_v0, %v5610_v33 }
  0xfd   : > { %v758_v1 = vcombine.low %v750_v45, %v757_v57  ;;  %v888_v26 = vrot.slane %v860_v59, %v5625_v44  ;;  %v665_v62 = vrot.slane %v5075_v0, %v5613_v36  ;;  %v669_v11 = vrot.slane %v5075_v0, %v5616_v37 }
  0xfe   : > { %v889_v52 = vcombine.low %v867_v61, %v874_v25  ;;  %v673_v63 = vrot.slane %v5075_v0, %v5619_v38  ;;  %v677_v58 = vrot.slane %v5075_v0, %v5622_v39  ;;  %v808_v46 = vcombine.low %v649_v55, %v653_v21 }
  0xff   : > { %907 = vperm.xlu0 %5050, %v758_v1   ;;  %v890_v8 = vcombine.low %v881_v12, %v888_v26  ;;  %v809_v9 = vcombine.low %v657_v35, %v661_v22  ;;  %v810_v42 = vcombine.low %v665_v62, %v669_v11  ;;  %v7748_v57 = vlaneseq }
 0x100   : > { %v897_v47 = vrot.slane %v889_v52, %v5625_v44  ;;  %v811_v33 = vcombine.low %v673_v63, %v677_v58  ;;  %v818_v48 = vrot.slane %v808_v46, %v5625_v44 }
 0x101   : > { %v904_v50 = vrot.slane %v890_v8, %v5625_v44  ;;  %v825_v36 = vrot.slane %v809_v9, %v5625_v44  ;;  %v832_v37 = vrot.slane %v810_v42, %v5625_v44  ;;  %v919_v59 = vand.u32 127, %v7748_v57 }
 0x102   : > { %v839_v38 = vrot.slane %v811_v33, %v5625_v44  ;;  %v344_v33 = vld [vmem:[%s7577_s1] sm:$0x1] }
 0x103   : > { %v905_v45 = vcombine.low %v897_v47, %v904_v50  ;;  %v840_v0 = vcombine.low %v818_v48, %v825_v36  ;;  %v924_v61 = vadd.s32 4294967288, %v919_v59  ;;  %v938_v25 = vadd.s32 4294967272, %v919_v59 }
 0x104   : > { %v841_v39 = vcombine.low %v832_v37, %v839_v38  ;;  %v931_v12 = vadd.s32 4294967280, %v919_v59  ;;  %v5688_v1 = vsub.s32 %v919_v59, %v5598_v10 }
 0x105   : > { %916 = vperm.xlu0 %5050, %v905_v45   ;;  %v848_v51 = vrot.slane %v840_v0, %v5625_v44  ;;  %v5685_v35 = vsub.s32 %v924_v61, %v5598_v10  ;;  %v5691_v26 = vsub.s32 %v938_v25, %v5598_v10 }
 0x106   : > { %v855_v54 = vrot.slane %v841_v39, %v5625_v44  ;;  %v5694_v62 = vsub.s32 %v931_v12, %v5598_v10 }
 0x108   : > { %v856_v55 = vcombine.low %v848_v51, %v855_v54 }
 0x10a   : > { %913 = vperm.xlu1 %5051, %v856_v55  }
 0x17a   : > { %v911_v22 = vpop.permute.xlu1 %910 }
 0x17b   : > { %v928_v52 = vrot.slane %v911_v22, %v5685_v35 }
 0x17e   : > { %v908_v21 = vpop.permute.xlu0 %907 }
 0x17f   : > { %v923_v63 = vrot.slane %v908_v21, %v5688_v1 }
 0x181   : > { %v930_v9 = vsel %vm929_vm1, %v928_v52, %v923_v63 }
 0x184   : > { %v917_v11 = vpop.permute.xlu0 %916 }
 0x185   : > { %v942_v46 = vrot.slane %v917_v11, %v5691_v26 }
 0x189   : > { %v914_v58 = vpop.permute.xlu1 %913 }
 0x18a   : > { %v935_v8 = vrot.slane %v914_v58, %v5694_v62 }
 0x18c   : > { %v937_v42 = vsel %vm936_vm2, %v935_v8, %v930_v9 }
 0x18d   : > { %v944_v10 = vsel %vm943_vm3, %v942_v46, %v937_v42 }
 0x18e   : > { %v951_v47 = vrot.slane %v944_v10, %v5625_v44 }
 0x190   : > { %v958_v48 = vrot.slane %v951_v47, %v5625_v44 }
 0x192   : > { %v960_v50 = vmul.f32 %v958_v48, %v344_v33 }
 0x194   : > { %v5709_v36 = vrot.slane %v960_v50, %v5601_v28 }
 0x196   : > { %971 = vbcast.lane.b32.xlu0 %v5709_v36, 264  ;;  %967 = vbcast.lane.b32.xlu1 %v5709_v36, 256 }
 0x19a   : > { %979 = vbcast.lane.b32.xlu0 %v5709_v36, 280  ;;  %975 = vbcast.lane.b32.xlu1 %v5709_v36, 272 }
 0x208   : > { %v972_v37 = vpop.permute.xlu0 %971  ;;  %v968_v38 = vpop.permute.xlu1 %967 }
 0x209   : > { %v986_v45 = vmul.f32 %v972_v37, %v5583_v17  ;;  %v985_v0 = vmul.f32 %v968_v38, %v5581_v14 }
 0x20b   : > { %v1042_v39 = vcombine.high %v986_v45, %v986_v45  ;;  %v1049_v51 = vrot.slane %v986_v45, %v5625_v44  ;;  %v993_v54 = vcombine.high %v985_v0, %v985_v0  ;;  %v1000_v55 = vrot.slane %v985_v0, %v5625_v44 }
 0x20c   : > { %v980_v57 = vpop.permute.xlu0 %979  ;;  %v976_v59 = vpop.permute.xlu1 %975 }
 0x20d   : > { %v1056_v61 = vrot.slane %v1042_v39, %v5625_v44  ;;  %v1057_v21 = vcombine.high %v1049_v51, %v1049_v51  ;;  %v1065_v25 = vrot.slane %v1049_v51, %v5625_v44  ;;  %v1007_v12 = vrot.slane %v993_v54, %v5625_v44 }
 0x20e   : > { %v1008_v22 = vcombine.high %v1000_v55, %v1000_v55  ;;  %v1016_v17 = vrot.slane %v1000_v55, %v5625_v44  ;;  %v988_v14 = vmul.f32 %v980_v57, %v5587_v19  ;;  %v987_v11 = vmul.f32 %v976_v59, %v5585_v18 }
 0x20f   : > { %v1058_v52 = vcombine.high %v1056_v61, %v1056_v61  ;;  %v1072_v63 = vrot.slane %v1056_v61, %v5625_v44  ;;  %v1079_v58 = vrot.slane %v1057_v21, %v5625_v44  ;;  %v1009_v46 = vcombine.high %v1007_v12, %v1007_v12 }
 0x210   : > { %v1023_v8 = vrot.slane %v1007_v12, %v5625_v44  ;;  %v1030_v9 = vrot.slane %v1008_v22, %v5625_v44  ;;  %v1140_v42 = vcombine.high %v988_v14, %v988_v14  ;;  %v1147_v10 = vrot.slane %v988_v14, %v5625_v44 }
 0x211   : > { %v1086_v47 = vrot.slane %v1058_v52, %v5625_v44  ;;  %v1238_v33 = vcombine.low %v1065_v25, %v1079_v58  ;;  %v4552_v48 = vcombine.high %v1065_v25, %v1079_v58  ;;  %v1037_v19 = vrot.slane %v1009_v46, %v5625_v44 }
 0x212   : > { %v1189_v18 = vcombine.low %v1016_v17, %v1030_v9  ;;  %v4550_v50 = vcombine.high %v1016_v17, %v1030_v9  ;;  %v1154_v37 = vrot.slane %v1140_v42, %v5625_v44  ;;  %v1155_v38 = vcombine.high %v1147_v10, %v1147_v10 }
 0x213   : > { %v1240_v45 = vcombine.low %v1072_v63, %v1086_v47  ;;  %v4553_v0 = vcombine.high %v1072_v63, %v1086_v47  ;;  %v1248_v39 = vrot.slane %v1238_v33, %v5625_v44  ;;  %v1255_v51 = vrot.slane %v4552_v48, %v5625_v44 }
 0x214   : > { %v1191_v54 = vcombine.low %v1023_v8, %v1037_v19  ;;  %v4551_v55 = vcombine.high %v1023_v8, %v1037_v19  ;;  %v1199_v57 = vrot.slane %v1189_v18, %v5625_v44  ;;  %v1206_v59 = vrot.slane %v4550_v50, %v5625_v44 }
 0x215   : > { %v1156_v61 = vcombine.high %v1154_v37, %v1154_v37  ;;  %v1163_v21 = vrot.slane %v1147_v10, %v5625_v44  ;;  %v1170_v25 = vrot.slane %v1154_v37, %v5625_v44  ;;  %v1177_v12 = vrot.slane %v1155_v38, %v5625_v44 }
 0x216   : > { %v1091_v22 = vcombine.high %v987_v11, %v987_v11  ;;  %v1098_v17 = vrot.slane %v987_v11, %v5625_v44  ;;  %v1262_v14 = vrot.slane %v1240_v45, %v5625_v44  ;;  %v1269_v52 = vrot.slane %v4553_v0, %v5625_v44 }
 0x217   : > { %v1184_v63 = vrot.slane %v1156_v61, %v5625_v44  ;;  %v1336_v58 = vcombine.low %v1163_v21, %v1177_v12  ;;  %v4556_v46 = vcombine.high %v1163_v21, %v1177_v12  ;;  %v1270_v8 = vcombine.low %v1248_v39, %v1255_v51 }
 0x218   : > { %v1105_v9 = vrot.slane %v1091_v22, %v5625_v44  ;;  %v1106_v42 = vcombine.high %v1098_v17, %v1098_v17  ;;  %v1114_v10 = vrot.slane %v1098_v17, %v5625_v44  ;;  %v1271_v47 = vcombine.low %v1262_v14, %v1269_v52 }
 0x219   : > { %v1338_v33 = vcombine.low %v1170_v25, %v1184_v63  ;;  %v4557_v48 = vcombine.high %v1170_v25, %v1184_v63  ;;  %v1346_v19 = vrot.slane %v1336_v58, %v5625_v44  ;;  %v1353_v11 = vrot.slane %v4556_v46, %v5625_v44 }
 0x21a   : > { %v1107_v18 = vcombine.high %v1105_v9, %v1105_v9  ;;  %v1121_v50 = vrot.slane %v1105_v9, %v5625_v44  ;;  %v1128_v37 = vrot.slane %v1106_v42, %v5625_v44  ;;  %v1278_v38 = vrot.slane %v1270_v8, %v5625_v44 }
 0x21b   : > { %v1285_v45 = vrot.slane %v1271_v47, %v5625_v44  ;;  %v1213_v0 = vrot.slane %v1191_v54, %v5625_v44  ;;  %v1220_v39 = vrot.slane %v4551_v55, %v5625_v44  ;;  %v1221_v51 = vcombine.low %v1199_v57, %v1206_v59 }
 0x21c   : > { %v1135_v61 = vrot.slane %v1107_v18, %v5625_v44  ;;  %v1287_v21 = vcombine.low %v1114_v10, %v1128_v37  ;;  %v4554_v25 = vcombine.high %v1114_v10, %v1128_v37  ;;  %v1360_v12 = vrot.slane %v1338_v33, %v5625_v44 }
 0x21d   : > { %v1286_v22 = vcombine.low %v1278_v38, %v1285_v45  ;;  %v1222_v17 = vcombine.low %v1213_v0, %v1220_v39  ;;  %v1367_v14 = vrot.slane %v4557_v48, %v5625_v44  ;;  %v1229_v54 = vrot.slane %v1221_v51, %v5625_v44  ;;  %v5054_v38 = vld [vmem:[%s7579_s3] ss:$12 sps:$4 sm:$0xff]   ;;  %v5055_v45 = vld [vmem:[%s7579_s3 + $0x8] ss:$12 sps:$4 sm:$0xff]   ;;  %v5058_v39 = vld [vmem:[%s7579_s3 + $0x18] ss:$12 sps:$4 sm:$0xff]  }
 0x21e   : > { %v1289_v52 = vcombine.low %v1121_v50, %v1135_v61  ;;  %v4555_v63 = vcombine.high %v1121_v50, %v1135_v61  ;;  %v1297_v58 = vrot.slane %v1287_v21, %v5625_v44  ;;  %v1304_v46 = vrot.slane %v4554_v25, %v5625_v44  ;;  %4954 = vmatprep.subr.bf16.mxu1 %v5055_v45  ;;  %v5056_v0 = vld [vmem:[%s7579_s3 + $0x1c] ss:$12 sps:$4 sm:$0xff]   ;;  %v5059_v51 = vld [vmem:[%s7579_s3 + $0x20] ss:$12 sps:$4 sm:$0xff]  }
 0x21f   : > { %1389 = vperm.xlu0 %5050, %v1286_v22   ;;  %v1236_v55 = vrot.slane %v1222_v17, %v5625_v44  ;;  %v1368_v57 = vcombine.low %v1346_v19, %v1353_v11  ;;  %v1369_v59 = vcombine.low %v1360_v12, %v1367_v14  ;;  %v5052_v11 = vld [vmem:[%s7579_s3 + $0x4] ss:$12 sps:$4 sm:$0xff]   ;;  %4955 = vmatpush3.bf16.msra.mxu1 %v5055_v45 }
 0x220   : > { %v1311_v8 = vrot.slane %v1289_v52, %v5625_v44  ;;  %v1318_v9 = vrot.slane %v4555_v63, %v5625_v44  ;;  %v1319_v42 = vcombine.low %v1297_v58, %v1304_v46  ;;  %1624 = vmatprep.subr.bf16.mxu0 %v5052_v11  ;;  %4956 = vmatprep.subr.bf16.mxu1 %v5059_v51  ;;  %v7749_v11 = vmov 0  }
 0x221   : > { %v1237_v10 = vcombine.low %v1229_v54, %v1236_v55  ;;  %v1376_v47 = vrot.slane %v1368_v57, %v5625_v44  ;;  %v1383_v33 = vrot.slane %v1369_v59, %v5625_v44  ;;  %1625 = vmatpush1.bf16.msra.mxu0 %v5054_v38  ;;  %v345_v55 = vld [vmem:[%s7578_s2] sm:$0x1]  ;;  %v1434_v57 = vmul.f32 %v5342_v3, %v5709_v36 }
 0x222   : > { %v1320_v48 = vcombine.low %v1311_v8, %v1318_v9  ;;  %v1327_v50 = vrot.slane %v1319_v42, %v5625_v44  ;;  %1626 = vmatprep.subr.bf16.mxu0 %v5056_v0  ;;  %v1435_v59 = vmul.f32 %v5344_v4, %v5709_v36  ;;  %v1436_v8 = vmul.f32 %v5347_v6, %v5709_v36 }
 0x223   : > { %1386 = vperm.xlu1 %5051, %v1237_v10   ;;  %v1384_v18 = vcombine.low %v1376_v47, %v1383_v33  ;;  %4957 = vmatpush3.bf16.msra.mxu1 %v5059_v51  ;;  %v1437_v9 = vmul.f32 %v5349_v7, %v5709_v36  ;;  %v1439_v38 = vmul.f32 %v5362_v16, %v5709_v36 }
 0x224   : > { %v1334_v37 = vrot.slane %v1320_v48, %v5625_v44  ;;  %v1440_v45 = vmul.f32 %v5367_v20, %v5709_v36  ;;  %v1441_v0 = vmul.f32 %v5371_v23, %v5709_v36 }
 0x225   : > { %1395 = vperm.xlu0 %5050, %v1384_v18   ;;  %1627 = vmatpush1.bf16.msra.mxu0 %v5058_v39  ;;  %v1442_v39 = vmul.f32 %v5376_v27, %v5709_v36 }
 0x226   : > { %v1335_v19 = vcombine.low %v1327_v50, %v1334_v37 }
 0x228   : > { %1392 = vperm.xlu1 %5051, %v1335_v19  }
 0x29e   : > { %v1390_v61 = vpop.permute.xlu0 %1389 }
 0x29f   : > { %v1404_v12 = vrot.slane %v1390_v61, %v5685_v35 }
 0x2a2   : > { %v1387_v21 = vpop.permute.xlu1 %1386 }
 0x2a3   : > { %v1400_v22 = vrot.slane %v1387_v21, %v5688_v1 }
 0x2a4   : > { %v1396_v25 = vpop.permute.xlu0 %1395 }
 0x2a5   : > { %v1414_v17 = vrot.slane %v1396_v25, %v5691_v26  ;;  %v1405_v63 = vsel %vm929_vm1, %v1404_v12, %v1400_v22  ;;  %v1433_v26 = vmul.f32 %v5340_v2, %v5709_v36 }
 0x2a7   : > { %v1393_v14 = vpop.permute.xlu1 %1392 }
 0x2a8   : > { %v1409_v52 = vrot.slane %v1393_v14, %v5694_v62  ;;  %v1444_v14 = vmul.f32 %v5384_v32, %v5709_v36 }
 0x2aa   : > { %v1410_v58 = vsel %vm936_vm2, %v1409_v52, %v1405_v63  ;;  %v1445_v52 = vmul.f32 %v5395_v40, %v5709_v36  ;;  %v1446_v63 = vmul.f32 %v5401_v43, %v5709_v36 }
 0x2ab   : > { %v1415_v46 = vsel %vm943_vm3, %v1414_v17, %v1410_v58  ;;  %v1443_v17 = vmul.f32 %v5380_v30, %v5709_v36 }
 0x2ac   : > { %v1422_v54 = vrot.slane %v1415_v46, %v5625_v44 }
 0x2ae   : > { %v1429_v35 = vrot.slane %v1422_v54, %v5625_v44  ;;  %v1438_v44 = vmul.f32 %v5358_v13, %v5709_v36 }
 0x2b0   : > { %v1431_v1 = vsub.f32 %v345_v55, %v1429_v35 }
 0x2b2   : > { %v5800_v62 = vrot.slane %v1431_v1, %v5601_v28 }
 0x2b4   : > { %v1471_v42 = vadd.f32 %v5800_v62, %v1433_v26  ;;  %v1472_v10 = vadd.f32 %v5800_v62, %v1434_v57  ;;  %v1473_v47 = vadd.f32 %v5800_v62, %v1435_v59  ;;  %v1474_v33 = vadd.f32 %v5800_v62, %v1436_v8 }
 0x2b5   : > { %v1475_v48 = vadd.f32 %v5800_v62, %v1437_v9  ;;  %v1476_v18 = vadd.f32 %v5800_v62, %v1438_v44  ;;  %v1477_v51 = vadd.f32 %v5800_v62, %v1439_v38  ;;  %v1478_v61 = vadd.f32 %v5800_v62, %v1440_v45 }
 0x2b6   : > { %v1503_v50 = vpack.c.bf16 %v1472_v10, %v1471_v42  ;;  %v1504_v37 = vpack.c.bf16 %v1474_v33, %v1473_v47  ;;  %v1479_v21 = vadd.f32 %v5800_v62, %v1441_v0  ;;  %v1480_v25 = vadd.f32 %v5800_v62, %v1442_v39 }
 0x2b7   : > { %v1505_v19 = vpack.c.bf16 %v1476_v18, %v1475_v48  ;;  %v1506_v12 = vpack.c.bf16 %v1478_v61, %v1477_v51  ;;  %v1481_v58 = vadd.f32 %v5800_v62, %v1443_v17  ;;  %v1482_v46 = vadd.f32 %v5800_v62, %v1444_v14  ;;  %v7752_v14 = vld [vmem:[#allocation32_spill] sm:$0xff] }
 0x2b8   : > { %4564 = vmatmul.mubr.msk.bf16.vlgmr.msra.gmra.mrb[0].mxu0 %vm346_vm0, %v1503_v50  ;;  %4958 = vmatprep.mubr.msk.bf16.mxu1 %vm346_vm0, %v1503_v50  ;;  %v1507_v22 = vpack.c.bf16 %v1480_v25, %v1479_v21  ;;  %v1483_v54 = vadd.f32 %v5800_v62, %v1445_v52  ;;  %v1484_v55 = vadd.f32 %v5800_v62, %v1446_v63  ;;  %v7750_v21 = vld [vmem:[#allocation30_spill] sm:$0xff] }
 0x2b9   : > { %4959 = vmatmul.mubr.msk.bf16.vlgmr.msra.gmra.mrb[0].mxu1 %vm346_vm0, %v1504_v37  ;;  %1666 = vmatprep.mubr.bf16.mxu0 %v7749_v11  ;;  %v1508_v35 = vpack.c.bf16 %v1482_v46, %v1481_v58  ;;  %v1447_v26 = vmul.f32 %v5411_v53, %v5709_v36  ;;  %v1448_v57 = vmul.f32 %v5419_v60, %v5709_v36 }
 0x2ba   : > { %4962 = vmatprep.mubr.msk.bf16.mxu1 %vm346_vm0, %v1505_v19  ;;  %v1509_v1 = vpack.c.bf16 %v1484_v55, %v1483_v54  ;;  %v1449_v59 = vmul.f32 %v5426_v5, %v5709_v36  ;;  %v1450_v8 = vmul.f32 %v5434_v15, %v5709_v36  ;;  %v1451_v48 = vmul.f32 %v5441_v24, %v5709_v36 }
 0x2bb   : > { %v1485_v9 = vadd.f32 %v5800_v62, %v1447_v26  ;;  %v1486_v44 = vadd.f32 %v5800_v62, %v1448_v57  ;;  %v1452_v18 = vmul.f32 %v5449_v34, %v5709_v36  ;;  %v1453_v50 = vmul.f32 %v5456_v41, %v5709_v36  ;;  %v7753_v26 = vld [vmem:[#allocation33_spill] sm:$0xff] }
 0x2bc   : > { %v1487_v42 = vadd.f32 %v5800_v62, %v1449_v59  ;;  %v1488_v10 = vadd.f32 %v5800_v62, %v1450_v8  ;;  %v1455_v61 = vmul.f32 %v5471_v56, %v5709_v36  ;;  %v1456_v25 = vmul.f32 %v7750_v21, %v5709_v36  ;;  %v7754_v59 = vld [vmem:[#allocation34_spill] sm:$0xff] }
 0x2bd   : > { %v1510_v47 = vpack.c.bf16 %v1486_v44, %v1485_v9  ;;  %v1490_v38 = vadd.f32 %v5800_v62, %v1452_v18  ;;  %v1491_v45 = vadd.f32 %v5800_v62, %v1453_v50  ;;  %v1458_v52 = vmul.f32 %v7752_v14, %v5709_v36  ;;  %v7755_v9 = vld [vmem:[#allocation35_spill] sm:$0xff] }
 0x2be   : > { %v1511_v33 = vpack.c.bf16 %v1488_v10, %v1487_v42  ;;  %v1494_v63 = vadd.f32 %v5800_v62, %v1456_v25  ;;  %v1459_v57 = vmul.f32 %v7753_v26, %v5709_v36  ;;  %v1460_v8 = vmul.f32 %v7754_v59, %v5709_v36  ;;  %v7756_v42 = vld [vmem:[#allocation36_spill] sm:$0xff] }
 0x2bf   : > { %v1496_v46 = vadd.f32 %v5800_v62, %v1458_v52  ;;  %v1461_v44 = vmul.f32 %v7755_v9, %v5709_v36  ;;  %v1462_v10 = vmul.f32 %v7756_v42, %v5709_v36 }
 0x2c0   : > { %4565 = vmatmul.mubr.msk.bf16.gmra.mrb[4].mxu0 %vm346_vm0, %v1504_v37  ;;  %v1454_v37 = vmul.f32 %v5464_v49, %v5709_v36 }
 0x2c1   : > { %4963 = vmatmul.mubr.msk.bf16.gmra.mrb[4].mxu1 %vm346_vm0, %v1506_v12  ;;  %1676 = vmatprep.mubr.bf16.mxu0 %v7749_v11  ;;  %v1499_v18 = vadd.f32 %v5800_v62, %v1461_v44  ;;  %v1500_v50 = vadd.f32 %v5800_v62, %v1462_v10 }
 0x2c2   : > { %4966 = vmatprep.mubr.msk.bf16.mxu1 %vm346_vm0, %v1507_v22  ;;  %v1492_v0 = vadd.f32 %v5800_v62, %v1454_v37 }
 0x2c4   : > { %v1513_v51 = vpack.c.bf16 %v1492_v0, %v1491_v45  ;;  %v7758_v0 = vld [vmem:[#allocation38_spill] sm:$0xff] }
 0x2c8   : > { %4566 = vmatmul.mubr.msk.bf16.gmra.mrb[8].mxu0 %vm346_vm0, %v1505_v19  ;;  %v1489_v19 = vadd.f32 %v5800_v62, %v1451_v48  ;;  %v1498_v48 = vadd.f32 %v5800_v62, %v1460_v8 }
 0x2c9   : > { %4967 = vmatmul.mubr.msk.bf16.gmra.mrb[8].mxu1 %vm346_vm0, %v1508_v35  ;;  %1686 = vmatprep.mubr.bf16.mxu0 %v7749_v11 }
 0x2ca   : > { %4970 = vmatprep.mubr.msk.bf16.mxu1 %vm346_vm0, %v1509_v1  ;;  %v1512_v39 = vpack.c.bf16 %v1490_v38, %v1489_v19  ;;  %v1517_v19 = vpack.c.bf16 %v1500_v50, %v1499_v18  ;;  %v7757_v38 = vld [vmem:[#allocation37_spill] sm:$0xff] }
 0x2cb   : > { %v1463_v45 = vmul.f32 %v7757_v38, %v5709_v36 }
 0x2cd   : > { %v1501_v25 = vadd.f32 %v5800_v62, %v1463_v45 }
 0x2d0   : > { %4567 = vmatmul.mubr.msk.bf16.gmra.mrb[12].mxu0 %vm346_vm0, %v1506_v12  ;;  %v7751_v12 = vld [vmem:[#allocation31_spill] sm:$0xff] }
 0x2d1   : > { %4971 = vmatmul.mubr.msk.bf16.gmra.mrb[12].mxu1 %vm346_vm0, %v1510_v47  ;;  %1696 = vmatprep.mubr.bf16.mxu0 %v7749_v11  ;;  %v1457_v17 = vmul.f32 %v7751_v12, %v5709_v36 }
 0x2d2   : > { %4974 = vmatprep.mubr.msk.bf16.mxu1 %vm346_vm0, %v1511_v33 }
 0x2d3   : > { %v1495_v58 = vadd.f32 %v5800_v62, %v1457_v17 }
 0x2d5   : > { %v1515_v55 = vpack.c.bf16 %v1496_v46, %v1495_v58 }
 0x2d8   : > { %4568 = vmatmul.mubr.msk.bf16.gmra.mrb[16].mxu0 %vm346_vm0, %v1507_v22  ;;  %v1493_v22 = vadd.f32 %v5800_v62, %v1455_v61  ;;  %v1464_v61 = vmul.f32 %v7758_v0, %v5709_v36  ;;  %v1527_v36 = vld [vmem:[%s7580_s4] sm:$0x7] }
 0x2d9   : > { %4975 = vmatmul.mubr.msk.bf16.gmra.mrb[16].mxu1 %vm346_vm0, %v1512_v39  ;;  %1706 = vmatprep.mubr.bf16.mxu0 %v7749_v11 }
 0x2da   : > { %4978 = vmatprep.mubr.msk.bf16.mxu1 %vm346_vm0, %v1513_v51  ;;  %v1514_v54 = vpack.c.bf16 %v1494_v63, %v1493_v22  ;;  %v1502_v17 = vadd.f32 %v5800_v62, %v1464_v61 }
 0x2dc   : > { %v1518_v52 = vpack.c.bf16 %v1502_v17, %v1501_v25 }
 0x2e0   : > { %4569 = vmatmul.mubr.msk.bf16.gmra.mrb[20].mxu0 %vm346_vm0, %v1508_v35  ;;  %v1497_v35 = vadd.f32 %v5800_v62, %v1459_v57  ;;  %v5947_v62 = vrot.slane %v1527_v36, %v5604_v29 }
 0x2e1   : > { %4979 = vmatmul.mubr.msk.bf16.gmra.mrb[20].mxu1 %vm346_vm0, %v1514_v54  ;;  %1716 = vmatprep.mubr.bf16.mxu0 %v7749_v11 }
 0x2e2   : > { %4982 = vmatprep.mubr.msk.bf16.mxu1 %vm346_vm0, %v1515_v55  ;;  %v1516_v37 = vpack.c.bf16 %v1498_v48, %v1497_v35 }
 0x2e8   : > { %4570 = vmatmul.mubr.msk.bf16.gmra.mrb[24].mxu0 %vm346_vm0, %v1509_v1  ;;  %v5950_v1 = vrot.slane %v1527_v36, %v5601_v28 }
 0x2e9   : > { %4983 = vmatmul.mubr.msk.bf16.gmra.mrb[24].mxu1 %vm346_vm0, %v1516_v37  ;;  %1726 = vmatprep.mubr.bf16.mxu0 %v7749_v11 }
 0x2ea   : > { %4986 = vmatprep.mubr.msk.bf16.mxu1 %vm346_vm0, %v1517_v19 }
 0x2f0   : > { %4571 = vmatmul.mubr.msk.bf16.gmra.mrb[28].mxu0 %vm346_vm0, %v1510_v47  ;;  %v5953_v47 = vrot.slane %v1527_v36, %v5607_v31 }
 0x2f1   : > { %4987 = vmatmul.mubr.msk.bf16.gmra.mrb[28].mxu1 %vm346_vm0, %v1518_v52  ;;  %1736 = vmatprep.mubr.bf16.mxu0 %v7749_v11 }
 0x2f8   : > { %4572 = vmatmul.mubr.msk.bf16.gmra.mrb[32].mxu0 %vm346_vm0, %v1511_v33 }
 0x2f9   : > { %1746 = vmatprep.mubr.bf16.mxu0 %v7749_v11 }
 0x300   : > { %4573 = vmatmul.mubr.msk.bf16.gmra.mrb[36].mxu0 %vm346_vm0, %v1512_v39 }
 0x301   : > { %1756 = vmatprep.mubr.bf16.mxu0 %v7749_v11 }
 0x308   : > { %4574 = vmatmul.mubr.msk.bf16.gmra.mrb[40].mxu0 %vm346_vm0, %v1513_v51 }
 0x309   : > { %1766 = vmatprep.mubr.bf16.mxu0 %v7749_v11 }
 0x310   : > { %4575 = vmatmul.mubr.msk.bf16.gmra.mrb[44].mxu0 %vm346_vm0, %v1514_v54 }
 0x311   : > { %1776 = vmatprep.mubr.bf16.mxu0 %v7749_v11 }
 0x318   : > { %4576 = vmatmul.mubr.msk.bf16.gmra.mrb[48].mxu0 %vm346_vm0, %v1515_v55 }
 0x319   : > { %1786 = vmatprep.mubr.bf16.mxu0 %v7749_v11 }
 0x320   : > { %4577 = vmatmul.mubr.msk.bf16.gmra.mrb[52].mxu0 %vm346_vm0, %v1516_v37 }
 0x321   : > { %1796 = vmatprep.mubr.bf16.mxu0 %v7749_v11 }
 0x328   : > { %4578 = vmatmul.mubr.msk.bf16.gmra.mrb[56].mxu0 %vm346_vm0, %v1517_v19 }
 0x329   : > { %1806 = vmatprep.mubr.bf16.mxu0 %v7749_v11 }
 0x330   : > { %4579 = vmatmul.mubr.msk.bf16.gmra.mrb[60].mxu0 %vm346_vm0, %v1518_v52 }
 0x38b   : > { %v1658_v33 = vpop.f32.mrb[0].mxu0 }
 0x38c   : > { %v1660_v39 = vpop.f32.mrb[1].mxu0  ;;  %v4960_v51 = vpop.f32.mrb[0].mxu1  ;;  %v1659_v58 = vadd.f32 %v1658_v33, %v5950_v1 }
 0x38d   : > { %v5956_v11 = vadd.f32 %v1660_v39, %v5947_v62  ;;  %v1662_v22 = vpop.f32.mrb[2].mxu0  ;;  %v1851_v63 = vpop.f32.mrb[1].mxu1  ;;  %v5961_v28 = vadd.f32 %v4960_v51, %v5953_v47 }
 0x38e   : > { %v1663_v46 = vadd.f32 %v1662_v22, %v5950_v1  ;;  %v1664_v29 = vpop.f32.mrb[3].mxu0  ;;  %v4961_v54 = vpop.f32.mrb[2].mxu1  ;;  %v5972_v44 = vadd.f32 %v1851_v63, %v5953_v47 }
 0x38f   : > { %v5964_v31 = vadd.f32 %v1664_v29, %v5947_v62  ;;  %v5967_v55 = vadd.f32 %v4961_v54, %v5953_v47  ;;  %v1854_v57 = vpop.f32.mrb[3].mxu1 }
 0x390   : > { %v5969_v8 = vpack.c.bf16 %v1663_v46, %v1659_v58  ;;  %v5975_v10 = vadd.f32 %v1854_v57, %v5953_v47 }
 0x392   : > { %4786 = vmatprep.mubr.bf16.mxu1 %v5969_v8 }
 0x393   : > { %v1668_v50 = vpop.f32.mrb[4].mxu0 }
 0x394   : > { %v1670_v37 = vpop.f32.mrb[5].mxu0  ;;  %v4964_v19 = vpop.f32.mrb[4].mxu1  ;;  %v1669_v17 = vadd.f32 %v1668_v50, %v5950_v1 }
 0x395   : > { %v5985_v45 = vadd.f32 %v1670_v37, %v5947_v62  ;;  %v1672_v61 = vpop.f32.mrb[6].mxu0  ;;  %v1867_v25 = vpop.f32.mrb[5].mxu1  ;;  %v5990_v39 = vadd.f32 %v4964_v19, %v5953_v47 }
 0x396   : > { %v1673_v52 = vadd.f32 %v1672_v61, %v5950_v1  ;;  %v1674_v36 = vpop.f32.mrb[7].mxu0  ;;  %v4965_v33 = vpop.f32.mrb[6].mxu1  ;;  %v6001_v46 = vadd.f32 %v1867_v25, %v5953_v47 }
 0x397   : > { %v5993_v51 = vadd.f32 %v1674_v36, %v5947_v62  ;;  %v5996_v22 = vadd.f32 %v4965_v33, %v5953_v47  ;;  %v1870_v63 = vpop.f32.mrb[7].mxu1 }
 0x398   : > { %v5998_v58 = vpack.c.bf16 %v1673_v52, %v1669_v17  ;;  %v6004_v29 = vadd.f32 %v1870_v63, %v5953_v47 }
 0x39b   : > { %v1678_v37 = vpop.f32.mrb[8].mxu0 }
 0x39c   : > { %v1680_v19 = vpop.f32.mrb[9].mxu0  ;;  %v4968_v61 = vpop.f32.mrb[8].mxu1  ;;  %v1679_v36 = vadd.f32 %v1678_v37, %v5950_v1 }
 0x39d   : > { %v6013_v17 = vadd.f32 %v1680_v19, %v5947_v62  ;;  %v1682_v25 = vpop.f32.mrb[10].mxu0  ;;  %v1883_v52 = vpop.f32.mrb[9].mxu1  ;;  %v6018_v35 = vadd.f32 %v4968_v61, %v5953_v47 }
 0x39e   : > { %v1683_v33 = vadd.f32 %v1682_v25, %v5950_v1  ;;  %v1684_v63 = vpop.f32.mrb[11].mxu0  ;;  %v4969_v54 = vpop.f32.mrb[10].mxu1  ;;  %v6029_v18 = vadd.f32 %v1883_v52, %v5953_v47 }
 0x39f   : > { %v6021_v57 = vadd.f32 %v1684_v63, %v5947_v62  ;;  %v6024_v50 = vadd.f32 %v4969_v54, %v5953_v47  ;;  %v1886_v48 = vpop.f32.mrb[11].mxu1 }
 0x3a0   : > { %v6026_v19 = vpack.c.bf16 %v1683_v33, %v1679_v36  ;;  %v6032_v37 = vadd.f32 %v1886_v48, %v5953_v47 }
 0x3a3   : > { %v1688_v54 = vpop.f32.mrb[12].mxu0 }
 0x3a4   : > { %v1690_v42 = vpop.f32.mrb[13].mxu0  ;;  %v4972_v0 = vpop.f32.mrb[12].mxu1  ;;  %v1689_v48 = vadd.f32 %v1688_v54, %v5950_v1 }
 0x3a5   : > { %v6041_v36 = vadd.f32 %v1690_v42, %v5947_v62  ;;  %v1692_v52 = vpop.f32.mrb[14].mxu0  ;;  %v1899_v33 = vpop.f32.mrb[13].mxu1  ;;  %v6046_v14 = vadd.f32 %v4972_v0, %v5953_v47 }
 0x3a6   : > { %v1693_v9 = vadd.f32 %v1692_v52, %v5950_v1  ;;  %v1694_v38 = vpop.f32.mrb[15].mxu0  ;;  %v4973_v25 = vpop.f32.mrb[14].mxu1  ;;  %v6057_v12 = vadd.f32 %v1899_v33, %v5953_v47 }
 0x3a7   : > { %v6049_v61 = vadd.f32 %v1694_v38, %v5947_v62  ;;  %v6052_v63 = vadd.f32 %v4973_v25, %v5953_v47  ;;  %v1902_v59 = vpop.f32.mrb[15].mxu1 }
 0x3a8   : > { %v6054_v42 = vpack.c.bf16 %v1693_v9, %v1689_v48  ;;  %v6060_v54 = vadd.f32 %v1902_v59, %v5953_v47 }
 0x3ab   : > { %v1698_v25 = vpop.f32.mrb[16].mxu0 }
 0x3ac   : > { %v1700_v26 = vpop.f32.mrb[17].mxu0  ;;  %v4976_v49 = vpop.f32.mrb[16].mxu1  ;;  %v1699_v59 = vadd.f32 %v1698_v25, %v5950_v1 }
 0x3ad   : > { %v6069_v9 = vadd.f32 %v1700_v26, %v5947_v62  ;;  %v1702_v33 = vpop.f32.mrb[18].mxu0  ;;  %v1915_v48 = vpop.f32.mrb[17].mxu1  ;;  %v1924_v56 = vadd.f32 %v4976_v49, %v5953_v47 }
 0x3ae   : > { %v1703_v21 = vadd.f32 %v1702_v33, %v5950_v1  ;;  %v1704_v41 = vpop.f32.mrb[19].mxu0  ;;  %v4977_v52 = vpop.f32.mrb[18].mxu1  ;;  %v1916_v26 = vadd.f32 %v1915_v48, %v5953_v47 }
 0x3af   : > { %v6075_v0 = vadd.f32 %v1704_v41, %v5947_v62  ;;  %v1927_v38 = vadd.f32 %v4977_v52, %v5953_v47  ;;  %v1918_v15 = vpop.f32.mrb[19].mxu1 }
 0x3b0   : > { %v6078_v34 = vpack.c.bf16 %v1703_v21, %v1699_v59  ;;  %v1919_v5 = vadd.f32 %v1918_v15, %v5953_v47  ;;  %v7759_v21 = vpack.c.bf16 %v5975_v10, %v5972_v44 }
 0x3b1   : > { %v2035_v33 = vpack.c.bf16 %v1927_v38, %v1924_v56 }
 0x3b2   : > { %v2034_v24 = vpack.c.bf16 %v1919_v5, %v1916_v26 }
 0x3b3   : > { %v1708_v43 = vpop.f32.mrb[20].mxu0 }
 0x3b4   : > { %v1710_v60 = vpop.f32.mrb[21].mxu0  ;;  %v4980_v49 = vpop.f32.mrb[20].mxu1  ;;  %4818 = vmatprep.subr.bf16.mxu0 %v2034_v24  ;;  %v1709_v15 = vadd.f32 %v1708_v43, %v5950_v1 }
 0x3b5   : > { %v6085_v41 = vadd.f32 %v1710_v60, %v5947_v62  ;;  %v1712_v52 = vpop.f32.mrb[22].mxu0  ;;  %v1931_v40 = vpop.f32.mrb[21].mxu1  ;;  %4819 = vmatpush3.bf16.msra.mxu0 %v7759_v21  ;;  %v1940_v5 = vadd.f32 %v4980_v49, %v5953_v47 }
 0x3b6   : > { %v1713_v48 = vadd.f32 %v1712_v52, %v5950_v1  ;;  %v1714_v59 = vpop.f32.mrb[23].mxu0  ;;  %v4981_v56 = vpop.f32.mrb[22].mxu1  ;;  %4820 = vmatprep.subr.bf16.mxu0 %v2035_v33  ;;  %v1932_v44 = vadd.f32 %v1931_v40, %v5953_v47  ;;  %v7760_v33 = vpack.c.bf16 %v5967_v55, %v5961_v28 }
 0x3b7   : > { %v6094_v24 = vadd.f32 %v1714_v59, %v5947_v62  ;;  %v1943_v60 = vadd.f32 %v4981_v56, %v5953_v47  ;;  %v1934_v38 = vpop.f32.mrb[23].mxu1  ;;  %v7761_v56 = vpack.c.bf16 %v6004_v29, %v6001_v46 }
 0x3b8   : > { %v6097_v26 = vpack.c.bf16 %v1713_v48, %v1709_v15  ;;  %v1935_v10 = vadd.f32 %v1934_v38, %v5953_v47 }
 0x3b9   : > { %v1999_v43 = vpack.c.bf16 %v6094_v24, %v6085_v41  ;;  %v2037_v52 = vpack.c.bf16 %v1943_v60, %v1940_v5  ;;  %4821 = vmatpush3.bf16.msra.mxu0 %v7760_v33 }
 0x3ba   : > { %v2036_v49 = vpack.c.bf16 %v1935_v10, %v1932_v44 }
 0x3bb   : > { %v1718_v21 = vpop.f32.mrb[24].mxu0 }
 0x3bc   : > { %v1720_v59 = vpop.f32.mrb[25].mxu0  ;;  %v4984_v25 = vpop.f32.mrb[24].mxu1  ;;  %4822 = vmatprep.subr.bf16.mxu0 %v2036_v49  ;;  %v1719_v5 = vadd.f32 %v1718_v21, %v5950_v1 }
 0x3bd   : > { %v6107_v15 = vadd.f32 %v1720_v59, %v5947_v62  ;;  %v1722_v48 = vpop.f32.mrb[26].mxu0  ;;  %v1947_v40 = vpop.f32.mrb[25].mxu1  ;;  %4823 = vmatpush3.bf16.msra.mxu0 %v7761_v56  ;;  %v1956_v38 = vadd.f32 %v4984_v25, %v5953_v47 }
 0x3be   : > { %v1723_v60 = vadd.f32 %v1722_v48, %v5950_v1  ;;  %v1724_v28 = vpop.f32.mrb[27].mxu0  ;;  %v4985_v55 = vpop.f32.mrb[26].mxu1  ;;  %4824 = vmatprep.subr.bf16.mxu0 %v2037_v52  ;;  %v1948_v46 = vadd.f32 %v1947_v40, %v5953_v47  ;;  %v7762_v52 = vpack.c.bf16 %v5996_v22, %v5990_v39 }
 0x3bf   : > { %v6116_v44 = vadd.f32 %v1724_v28, %v5947_v62  ;;  %v1959_v10 = vadd.f32 %v4985_v55, %v5953_v47  ;;  %v1950_v33 = vpop.f32.mrb[27].mxu1  ;;  %v7763_v55 = vpack.c.bf16 %v6032_v37, %v6029_v18 }
 0x3c0   : > { %v6119_v49 = vpack.c.bf16 %v1723_v60, %v1719_v5  ;;  %v1951_v29 = vadd.f32 %v1950_v33, %v5953_v47 }
 0x3c1   : > { %v2000_v21 = vpack.c.bf16 %v6116_v44, %v6107_v15  ;;  %v2039_v59 = vpack.c.bf16 %v1959_v10, %v1956_v38  ;;  %4825 = vmatpush3.bf16.msra.mxu0 %v7762_v52 }
 0x3c2   : > { %v2038_v25 = vpack.c.bf16 %v1951_v29, %v1948_v46 }
 0x3c3   : > { %v1728_v48 = vpop.f32.mrb[28].mxu0 }
 0x3c4   : > { %v1730_v56 = vpop.f32.mrb[29].mxu0  ;;  %v4988_v28 = vpop.f32.mrb[28].mxu1  ;;  %4826 = vmatprep.subr.bf16.mxu0 %v2038_v25  ;;  %v1729_v38 = vadd.f32 %v1728_v48, %v5950_v1 }
 0x3c5   : > { %v6129_v5 = vadd.f32 %v1730_v56, %v5947_v62  ;;  %v1732_v60 = vpop.f32.mrb[30].mxu0  ;;  %v1963_v40 = vpop.f32.mrb[29].mxu1  ;;  %4827 = vmatpush3.bf16.msra.mxu0 %v7763_v55  ;;  %v1972_v33 = vadd.f32 %v4988_v28, %v5953_v47 }
 0x3c6   : > { %v1733_v10 = vadd.f32 %v1732_v60, %v5950_v1  ;;  %v1734_v39 = vpop.f32.mrb[31].mxu0  ;;  %v4989_v22 = vpop.f32.mrb[30].mxu1  ;;  %4828 = vmatprep.subr.bf16.mxu0 %v2039_v59  ;;  %v1964_v18 = vadd.f32 %v1963_v40, %v5953_v47  ;;  %v7764_v59 = vpack.c.bf16 %v6024_v50, %v6018_v35  ;;  %v7765_v40 = vpack.c.bf16 %v6060_v54, %v6057_v12 }
 0x3c7   : > { %v6138_v46 = vadd.f32 %v1734_v39, %v5947_v62  ;;  %v1975_v29 = vadd.f32 %v4989_v22, %v5953_v47  ;;  %v1966_v52 = vpop.f32.mrb[31].mxu1  ;;  %v7767_v12 = vpack.c.bf16 %v5964_v31, %v5956_v11  ;;  %v7768_v11 = vpack.c.bf16 %v5993_v51, %v5985_v45 }
 0x3c8   : > { %v6141_v25 = vpack.c.bf16 %v1733_v10, %v1729_v38  ;;  %v1967_v37 = vadd.f32 %v1966_v52, %v5953_v47  ;;  %v7769_v45 = vpack.c.bf16 %v6021_v57, %v6013_v17  ;;  %v7770_v57 = vpack.c.bf16 %v6049_v61, %v6041_v36 }
 0x3c9   : > { %v2001_v48 = vpack.c.bf16 %v6138_v46, %v6129_v5  ;;  %v2041_v56 = vpack.c.bf16 %v1975_v29, %v1972_v33  ;;  %4829 = vmatpush3.bf16.msra.mxu0 %v7764_v59  ;;  %v7766_v29 = vpack.c.bf16 %v6052_v63, %v6046_v14  ;;  %v7771_v61 = vpack.c.bf16 %v6075_v0, %v6069_v9 }
 0x3ca   : > { %v2040_v28 = vpack.c.bf16 %v1967_v37, %v1964_v18 }
 0x3cb   : > { %v1738_v60 = vpop.f32.mrb[32].mxu0 }
 0x3cc   : > { %v1740_v55 = vpop.f32.mrb[33].mxu0  ;;  %4830 = vmatprep.subr.bf16.mxu0 %v2040_v28  ;;  %v1739_v47 = vadd.f32 %v1738_v60, %v5950_v1 }
 0x3cd   : > { %v1741_v39 = vadd.f32 %v1740_v55, %v5947_v62  ;;  %v1742_v38 = vpop.f32.mrb[34].mxu0  ;;  %4831 = vmatpush3.bf16.msra.mxu0 %v7765_v40 }
 0x3ce   : > { %v1743_v10 = vadd.f32 %v1742_v38, %v5950_v1  ;;  %v1744_v22 = vpop.f32.mrb[35].mxu0  ;;  %4832 = vmatprep.subr.bf16.mxu0 %v2041_v56 }
 0x3cf   : > { %v1745_v35 = vadd.f32 %v1744_v22, %v5947_v62 }
 0x3d0   : > { %v6157_v50 = vpack.c.bf16 %v1743_v10, %v1739_v47 }
 0x3d1   : > { %v2002_v33 = vpack.c.bf16 %v1745_v35, %v1741_v39  ;;  %4833 = vmatpush3.bf16.msra.mxu0 %v7766_v29 }
 0x3d3   : > { %v1748_v52 = vpop.f32.mrb[36].mxu0  ;;  %4770 = vmatprep.subr.bf16.mxu1 %v2002_v33 }
 0x3d4   : > { %v1750_v18 = vpop.f32.mrb[37].mxu0  ;;  %4771 = vmatpush3.bf16.xpose.msra.mxu1 %v7767_v12  ;;  %v1749_v56 = vadd.f32 %v1748_v52, %v5950_v1 }
 0x3d5   : > { %v1751_v54 = vadd.f32 %v1750_v18, %v5947_v62  ;;  %v1752_v37 = vpop.f32.mrb[38].mxu0 }
 0x3d6   : > { %v1753_v59 = vadd.f32 %v1752_v37, %v5950_v1  ;;  %v1754_v28 = vpop.f32.mrb[39].mxu0 }
 0x3d7   : > { %v1755_v60 = vadd.f32 %v1754_v28, %v5947_v62 }
 0x3d8   : > { %v6169_v55 = vpack.c.bf16 %v1753_v59, %v1749_v56 }
 0x3d9   : > { %v2003_v14 = vpack.c.bf16 %v1755_v60, %v1751_v54 }
 0x3db   : > { %v1758_v63 = vpop.f32.mrb[40].mxu0  ;;  %4772 = vmatprep.subr.bf16.mxu1 %v2003_v14 }
 0x3dc   : > { %v1760_v39 = vpop.f32.mrb[41].mxu0  ;;  %4773 = vmatpush3.bf16.xpose.msra.mxu1 %v7768_v11  ;;  %v1759_v40 = vadd.f32 %v1758_v63, %v5950_v1 }
 0x3dd   : > { %v1761_v31 = vadd.f32 %v1760_v39, %v5947_v62  ;;  %v1762_v38 = vpop.f32.mrb[42].mxu0 }
 0x3de   : > { %v1763_v47 = vadd.f32 %v1762_v38, %v5950_v1  ;;  %v1764_v10 = vpop.f32.mrb[43].mxu0 }
 0x3df   : > { %v1765_v22 = vadd.f32 %v1764_v10, %v5947_v62 }
 0x3e0   : > { %v6178_v35 = vpack.c.bf16 %v1763_v47, %v1759_v40 }
 0x3e1   : > { %v2004_v33 = vpack.c.bf16 %v1765_v22, %v1761_v31 }
 0x3e3   : > { %v1768_v29 = vpop.f32.mrb[44].mxu0  ;;  %4774 = vmatprep.subr.bf16.mxu1 %v2004_v33 }
 0x3e4   : > { %v1770_v52 = vpop.f32.mrb[45].mxu0  ;;  %4775 = vmatpush3.bf16.xpose.msra.mxu1 %v7769_v45  ;;  %v1769_v12 = vadd.f32 %v1768_v29, %v5950_v1 }
 0x3e5   : > { %v1771_v51 = vadd.f32 %v1770_v52, %v5947_v62  ;;  %v1772_v18 = vpop.f32.mrb[46].mxu0 }
 0x3e6   : > { %v1773_v54 = vadd.f32 %v1772_v18, %v5950_v1  ;;  %v1774_v37 = vpop.f32.mrb[47].mxu0 }
 0x3e7   : > { %v1775_v56 = vadd.f32 %v1774_v37, %v5947_v62 }
 0x3e8   : > { %v6187_v59 = vpack.c.bf16 %v1773_v54, %v1769_v12 }
 0x3e9   : > { %v2005_v28 = vpack.c.bf16 %v1775_v56, %v1771_v51 }
 0x3eb   : > { %v1778_v60 = vpop.f32.mrb[48].mxu0  ;;  %4776 = vmatprep.subr.bf16.mxu1 %v2005_v28 }
 0x3ec   : > { %v1780_v14 = vpop.f32.mrb[49].mxu0  ;;  %4777 = vmatpush3.bf16.xpose.msra.mxu1 %v7770_v57  ;;  %v1779_v39 = vadd.f32 %v1778_v60, %v5950_v1 }
 0x3ed   : > { %v1781_v17 = vadd.f32 %v1780_v14, %v5947_v62  ;;  %v1782_v63 = vpop.f32.mrb[50].mxu0 }
 0x3ee   : > { %v1783_v11 = vadd.f32 %v1782_v63, %v5950_v1  ;;  %v1784_v31 = vpop.f32.mrb[51].mxu0 }
 0x3ef   : > { %v1785_v38 = vadd.f32 %v1784_v31, %v5947_v62 }
 0x3f0   : > { %v6196_v40 = vpack.c.bf16 %v1783_v11, %v1779_v39 }
 0x3f1   : > { %v2006_v47 = vpack.c.bf16 %v1785_v38, %v1781_v17 }
 0x3f3   : > { %v1788_v10 = vpop.f32.mrb[52].mxu0  ;;  %4778 = vmatprep.subr.bf16.mxu1 %v2006_v47 }
 0x3f4   : > { %v1790_v22 = vpop.f32.mrb[53].mxu0  ;;  %4779 = vmatpush3.bf16.xpose.msra.mxu1 %v7771_v61  ;;  %v1789_v29 = vadd.f32 %v1788_v10, %v5950_v1 }
 0x3f5   : > { %v1791_v36 = vadd.f32 %v1790_v22, %v5947_v62  ;;  %v1792_v33 = vpop.f32.mrb[54].mxu0 }
 0x3f6   : > { %v1793_v52 = vadd.f32 %v1792_v33, %v5950_v1  ;;  %v1794_v45 = vpop.f32.mrb[55].mxu0 }
 0x3f7   : > { %v1795_v51 = vadd.f32 %v1794_v45, %v5947_v62 }
 0x3f8   : > { %v1991_v18 = vpack.c.bf16 %v1793_v52, %v1789_v29 }
 0x3f9   : > { %v2007_v12 = vpack.c.bf16 %v1795_v51, %v1791_v36 }
 0x3fb   : > { %v1798_v54 = vpop.f32.mrb[56].mxu0  ;;  %4780 = vmatprep.subr.bf16.mxu1 %v2007_v12 }
 0x3fc   : > { %v1800_v37 = vpop.f32.mrb[57].mxu0  ;;  %4781 = vmatpush3.bf16.xpose.msra.mxu1 %v1999_v43  ;;  %v1799_v56 = vadd.f32 %v1798_v54, %v5950_v1  ;;  %v5279_v54 = vmov 0.0  }
 0x3fd   : > { %v1801_v0 = vadd.f32 %v1800_v37, %v5947_v62  ;;  %v1802_v9 = vpop.f32.mrb[58].mxu0  ;;  %2092 = vst.msk [vmem:[#allocation5 + $0x8] sm:$0xff] %vm2058_vm4, %v5279_v54  ;;  %2091 = vst.msk [vmem:[#allocation5] sm:$0xff] %vm2058_vm4, %v5279_v54 }
 0x3fe   : > { %v1803_v28 = vadd.f32 %v1802_v9, %v5950_v1  ;;  %v1804_v60 = vpop.f32.mrb[59].mxu0  ;;  %2093 = vst.msk [vmem:[#allocation5 + $0x10] sm:$0xff] %vm2058_vm4, %v5279_v54  ;;  %2094 = vst.msk [vmem:[#allocation5 + $0x18] sm:$0xff] %vm2058_vm4, %v5279_v54 }
 0x3ff   : > { %v1805_v14 = vadd.f32 %v1804_v60, %v5947_v62  ;;  %2095 = vst.msk [vmem:[#allocation5 + $0x20] sm:$0xff] %vm2058_vm4, %v5279_v54  ;;  %2096 = vst.msk [vmem:[#allocation5 + $0x28] sm:$0xff] %vm2058_vm4, %v5279_v54 }
 0x400   : > { %v1992_v57 = vpack.c.bf16 %v1803_v28, %v1799_v56  ;;  %2097 = vst.msk [vmem:[#allocation5 + $0x30] sm:$0xff] %vm2058_vm4, %v5279_v54  ;;  %2098 = vst.msk [vmem:[#allocation5 + $0x38] sm:$0xff] %vm2058_vm4, %v5279_v54 }
 0x401   : > { %v2008_v17 = vpack.c.bf16 %v1805_v14, %v1801_v0  ;;  %2099 = vst.msk [vmem:[#allocation5 + $0x40] sm:$0xff] %vm2058_vm4, %v5279_v54  ;;  %2100 = vst.msk [vmem:[#allocation5 + $0x48] sm:$0xff] %vm2058_vm4, %v5279_v54 }
 0x402   : > { %2101 = vst.msk [vmem:[#allocation5 + $0x50] sm:$0xff] %vm2058_vm4, %v5279_v54  ;;  %2102 = vst.msk [vmem:[#allocation5 + $0x58] sm:$0xff] %vm2058_vm4, %v5279_v54 }
 0x403   : > { %v1808_v63 = vpop.f32.mrb[60].mxu0  ;;  %4782 = vmatprep.subr.bf16.mxu1 %v2008_v17  ;;  %2103 = vst.msk [vmem:[#allocation5 + $0x60] sm:$0xff] %vm2058_vm4, %v5279_v54  ;;  %2104 = vst.msk [vmem:[#allocation5 + $0x68] sm:$0xff] %vm2058_vm4, %v5279_v54 }
 0x404   : > { %v1810_v39 = vpop.f32.mrb[61].mxu0  ;;  %4783 = vmatpush3.bf16.xpose.msra.mxu1 %v2000_v21  ;;  %v1809_v43 = vadd.f32 %v1808_v63, %v5950_v1  ;;  %2105 = vst.msk [vmem:[#allocation5 + $0x70] sm:$0xff] %vm2058_vm4, %v5279_v54  ;;  %2106 = vst.msk [vmem:[#allocation5 + $0x78] sm:$0xff] %vm2058_vm4, %v5279_v54 }
 0x405   : > { %v1811_v41 = vadd.f32 %v1810_v39, %v5947_v62  ;;  %v1812_v24 = vpop.f32.mrb[62].mxu0  ;;  %2107 = vst.msk [vmem:[#allocation5 + $0x80] sm:$0xff] %vm2058_vm4, %v5279_v54  ;;  %2108 = vst.msk [vmem:[#allocation5 + $0x88] sm:$0xff] %vm2058_vm4, %v5279_v54 }
 0x406   : > { %v1813_v11 = vadd.f32 %v1812_v24, %v5950_v1  ;;  %v1814_v31 = vpop.f32.mrb[63].mxu0  ;;  %2109 = vst.msk [vmem:[#allocation5 + $0x90] sm:$0xff] %vm2058_vm4, %v5279_v54  ;;  %2110 = vst.msk [vmem:[#allocation5 + $0x98] sm:$0xff] %vm2058_vm4, %v5279_v54 }
 0x407   : > { %v1815_v38 = vadd.f32 %v1814_v31, %v5947_v62  ;;  %2111 = vst.msk [vmem:[#allocation5 + $0xa0] sm:$0xff] %vm2058_vm4, %v5279_v54  ;;  %2112 = vst.msk [vmem:[#allocation5 + $0xa8] sm:$0xff] %vm2058_vm4, %v5279_v54 }
 0x408   : > { %v1993_v47 = vpack.c.bf16 %v1813_v11, %v1809_v43  ;;  %2113 = vst.msk [vmem:[#allocation5 + $0xb0] sm:$0xff] %vm2058_vm4, %v5279_v54  ;;  %2114 = vst.msk [vmem:[#allocation5 + $0xb8] sm:$0xff] %vm2058_vm4, %v5279_v54 }
 0x409   : > { %v2009_v10 = vpack.c.bf16 %v1815_v38, %v1811_v41  ;;  %2115 = vst.msk [vmem:[#allocation5 + $0xc0] sm:$0xff] %vm2058_vm4, %v5279_v54  ;;  %2116 = vst.msk [vmem:[#allocation5 + $0xc8] sm:$0xff] %vm2058_vm4, %v5279_v54 }
 0x40a   : > { %2117 = vst.msk [vmem:[#allocation5 + $0xd0] sm:$0xff] %vm2058_vm4, %v5279_v54  ;;  %2118 = vst.msk [vmem:[#allocation5 + $0xd8] sm:$0xff] %vm2058_vm4, %v5279_v54 }
 0x40b   : > { %4784 = vmatprep.subr.bf16.mxu1 %v2009_v10  ;;  %2119 = vst.msk [vmem:[#allocation5 + $0xe0] sm:$0xff] %vm2058_vm4, %v5279_v54  ;;  %2120 = vst.msk [vmem:[#allocation5 + $0xe8] sm:$0xff] %vm2058_vm4, %v5279_v54 }
 0x40c   : > { %4785 = vmatpush3.bf16.xpose.msra.mxu1 %v2001_v48  ;;  %2121 = vst.msk [vmem:[#allocation5 + $0xf0] sm:$0xff] %vm2058_vm4, %v5279_v54  ;;  %2122 = vst.msk [vmem:[#allocation5 + $0xf8] sm:$0xff] %vm2058_vm4, %v5279_v54 }
 0x413   : > { %4787 = vmatmul.mubr.bf16.vlgmr.msra.gmra.mrb[32].mxu1 %v5969_v8 }
 0x414   : > { %4788 = vmatprep.mubr.bf16.mxu1 %v5998_v58 }
 0x41b   : > { %4789 = vmatmul.mubr.bf16.gmra.mrb[36].mxu1 %v5998_v58 }
 0x41c   : > { %4790 = vmatprep.mubr.bf16.mxu1 %v6026_v19 }
 0x423   : > { %4791 = vmatmul.mubr.bf16.gmra.mrb[40].mxu1 %v6026_v19 }
 0x424   : > { %4792 = vmatprep.mubr.bf16.mxu1 %v6054_v42 }
 0x42b   : > { %4793 = vmatmul.mubr.bf16.gmra.mrb[44].mxu1 %v6054_v42 }
 0x42c   : > { %4794 = vmatprep.mubr.bf16.mxu1 %v6078_v34 }
 0x433   : > { %4795 = vmatmul.mubr.bf16.gmra.mrb[48].mxu1 %v6078_v34  ;;  %v5278_v34 = vmov -inf  }
 0x434   : > { %4796 = vmatprep.mubr.bf16.mxu1 %v6097_v26  ;;  %2059 = vst.msk [vmem:[#allocation4] sm:$0xff] %vm2058_vm4, %v5278_v34  ;;  %2060 = vst.msk [vmem:[#allocation4 + $0x8] sm:$0xff] %vm2058_vm4, %v5278_v34 }
 0x435   : > { %2061 = vst.msk [vmem:[#allocation4 + $0x10] sm:$0xff] %vm2058_vm4, %v5278_v34  ;;  %2062 = vst.msk [vmem:[#allocation4 + $0x18] sm:$0xff] %vm2058_vm4, %v5278_v34 }
 0x436   : > { %2063 = vst.msk [vmem:[#allocation4 + $0x20] sm:$0xff] %vm2058_vm4, %v5278_v34  ;;  %2064 = vst.msk [vmem:[#allocation4 + $0x28] sm:$0xff] %vm2058_vm4, %v5278_v34 }
 0x437   : > { %2065 = vst.msk [vmem:[#allocation4 + $0x30] sm:$0xff] %vm2058_vm4, %v5278_v34  ;;  %2066 = vst.msk [vmem:[#allocation4 + $0x38] sm:$0xff] %vm2058_vm4, %v5278_v34 }
 0x438   : > { %2067 = vst.msk [vmem:[#allocation4 + $0x40] sm:$0xff] %vm2058_vm4, %v5278_v34  ;;  %2068 = vst.msk [vmem:[#allocation4 + $0x48] sm:$0xff] %vm2058_vm4, %v5278_v34 }
 0x439   : > { %2069 = vst.msk [vmem:[#allocation4 + $0x50] sm:$0xff] %vm2058_vm4, %v5278_v34  ;;  %2070 = vst.msk [vmem:[#allocation4 + $0x58] sm:$0xff] %vm2058_vm4, %v5278_v34 }
 0x43a   : > { %2071 = vst.msk [vmem:[#allocation4 + $0x60] sm:$0xff] %vm2058_vm4, %v5278_v34  ;;  %2072 = vst.msk [vmem:[#allocation4 + $0x68] sm:$0xff] %vm2058_vm4, %v5278_v34 }
 0x43b   : > { %4797 = vmatmul.mubr.bf16.gmra.mrb[52].mxu1 %v6097_v26  ;;  %2073 = vst.msk [vmem:[#allocation4 + $0x70] sm:$0xff] %vm2058_vm4, %v5278_v34  ;;  %2074 = vst.msk [vmem:[#allocation4 + $0x78] sm:$0xff] %vm2058_vm4, %v5278_v34 }
 0x43c   : > { %4798 = vmatprep.mubr.bf16.mxu1 %v6119_v49  ;;  %2075 = vst.msk [vmem:[#allocation4 + $0x80] sm:$0xff] %vm2058_vm4, %v5278_v34  ;;  %2076 = vst.msk [vmem:[#allocation4 + $0x88] sm:$0xff] %vm2058_vm4, %v5278_v34 }
 0x43d   : > { %2077 = vst.msk [vmem:[#allocation4 + $0x90] sm:$0xff] %vm2058_vm4, %v5278_v34  ;;  %2078 = vst.msk [vmem:[#allocation4 + $0x98] sm:$0xff] %vm2058_vm4, %v5278_v34 }
 0x43e   : > { %2079 = vst.msk [vmem:[#allocation4 + $0xa0] sm:$0xff] %vm2058_vm4, %v5278_v34  ;;  %2080 = vst.msk [vmem:[#allocation4 + $0xa8] sm:$0xff] %vm2058_vm4, %v5278_v34 }
 0x43f   : > { %2081 = vst.msk [vmem:[#allocation4 + $0xb0] sm:$0xff] %vm2058_vm4, %v5278_v34  ;;  %2082 = vst.msk [vmem:[#allocation4 + $0xb8] sm:$0xff] %vm2058_vm4, %v5278_v34 }
 0x440   : > { %2083 = vst.msk [vmem:[#allocation4 + $0xc0] sm:$0xff] %vm2058_vm4, %v5278_v34  ;;  %2084 = vst.msk [vmem:[#allocation4 + $0xc8] sm:$0xff] %vm2058_vm4, %v5278_v34 }
 0x441   : > { %2085 = vst.msk [vmem:[#allocation4 + $0xd0] sm:$0xff] %vm2058_vm4, %v5278_v34  ;;  %2086 = vst.msk [vmem:[#allocation4 + $0xd8] sm:$0xff] %vm2058_vm4, %v5278_v34 }
 0x442   : > { %2087 = vst.msk [vmem:[#allocation4 + $0xe0] sm:$0xff] %vm2058_vm4, %v5278_v34  ;;  %2088 = vst.msk [vmem:[#allocation4 + $0xe8] sm:$0xff] %vm2058_vm4, %v5278_v34 }
 0x443   : > { %4799 = vmatmul.mubr.bf16.gmra.mrb[56].mxu1 %v6119_v49  ;;  %2089 = vst.msk [vmem:[#allocation4 + $0xf0] sm:$0xff] %vm2058_vm4, %v5278_v34  ;;  %2090 = vst.msk [vmem:[#allocation4 + $0xf8] sm:$0xff] %vm2058_vm4, %v5278_v34 }
 0x444   : > { %4800 = vmatprep.mubr.bf16.mxu1 %v6141_v25 }
 0x44b   : > { %4801 = vmatmul.mubr.bf16.gmra.mrb[60].mxu1 %v6141_v25 }
 0x44c   : > { %4802 = vmatprep.mubr.bf16.mxu1 %v6157_v50 }
 0x453   : > { %4803 = vmatmul.mubr.bf16.gmra.mrb[64].mxu1 %v6157_v50 }
 0x454   : > { %4804 = vmatprep.mubr.bf16.mxu1 %v6169_v55 }
 0x45b   : > { %4805 = vmatmul.mubr.bf16.gmra.mrb[68].mxu1 %v6169_v55 }
 0x45c   : > { %4806 = vmatprep.mubr.bf16.mxu1 %v6178_v35 }
 0x463   : > { %4807 = vmatmul.mubr.bf16.gmra.mrb[72].mxu1 %v6178_v35 }
 0x464   : > { %4808 = vmatprep.mubr.bf16.mxu1 %v6187_v59 }
 0x46b   : > { %4809 = vmatmul.mubr.bf16.gmra.mrb[76].mxu1 %v6187_v59 }
 0x46c   : > { %4810 = vmatprep.mubr.bf16.mxu1 %v6196_v40 }
 0x473   : > { %4811 = vmatmul.mubr.bf16.gmra.mrb[80].mxu1 %v6196_v40 }
 0x474   : > { %4812 = vmatprep.mubr.bf16.mxu1 %v1991_v18 }
 0x47b   : > { %4813 = vmatmul.mubr.bf16.gmra.mrb[84].mxu1 %v1991_v18 }
 0x47c   : > { %4814 = vmatprep.mubr.bf16.mxu1 %v1992_v57 }
 0x483   : > { %4815 = vmatmul.mubr.bf16.gmra.mrb[88].mxu1 %v1992_v57 }
 0x484   : > { %4816 = vmatprep.mubr.bf16.mxu1 %v1993_v47 }
 0x48b   : > { %4817 = vmatmul.mubr.bf16.gmra.mrb[92].mxu1 %v1993_v47 }
 0x4e6   : > { %v6279_v62 = vpop.f32.mrb[32].mxu1 }
 0x4e7   : > { %v6281_v1 = vpop.f32.mrb[33].mxu1 }
 0x4e8   : > { %v6283_v8 = vpop.f32.mrb[34].mxu1  ;;  %v2412_v58 = vmax.f32 %v6279_v62, %v6281_v1 }
 0x4e9   : > { %v6287_v19 = vpop.f32.mrb[35].mxu1 }
 0x4ea   : > { %2413 = vmax.xlane.f32.xlu1 %v2412_v58  ;;  %v2415_v42 = vmax.f32 %v6283_v8, %v6287_v19 }
 0x4ec   : > { %2416 = vmax.xlane.f32.xlu0 %v2415_v42 }
 0x4ee   : > { %v6291_v26 = vpop.f32.mrb[36].mxu1 }
 0x4ef   : > { %v6293_v15 = vpop.f32.mrb[37].mxu1 }
 0x4f0   : > { %v6295_v44 = vpop.f32.mrb[38].mxu1  ;;  %v2418_v49 = vmax.f32 %v6291_v26, %v6293_v15 }
 0x4f1   : > { %v6299_v21 = vpop.f32.mrb[39].mxu1 }
 0x4f2   : > { %2419 = vmax.xlane.f32.xlu0 %v2418_v49  ;;  %v2421_v5 = vmax.f32 %v6295_v44, %v6299_v21 }
 0x4f4   : > { %2422 = vmax.xlane.f32.xlu1 %v2421_v5 }
 0x4f6   : > { %v6303_v46 = vpop.f32.mrb[40].mxu1 }
 0x4f7   : > { %v6305_v25 = vpop.f32.mrb[41].mxu1 }
 0x4f8   : > { %v6307_v48 = vpop.f32.mrb[42].mxu1  ;;  %v2424_v50 = vmax.f32 %v6303_v46, %v6305_v25 }
 0x4f9   : > { %v6311_v55 = vpop.f32.mrb[43].mxu1 }
 0x4fa   : > { %2425 = vmax.xlane.f32.xlu0 %v2424_v50  ;;  %v2427_v35 = vmax.f32 %v6307_v48, %v6311_v55 }
 0x4fc   : > { %2428 = vmax.xlane.f32.xlu1 %v2427_v35 }
 0x4fe   : > { %v6315_v59 = vpop.f32.mrb[44].mxu1 }
 0x4ff   : > { %v6317_v40 = vpop.f32.mrb[45].mxu1 }
 0x500   : > { %v6319_v22 = vpop.f32.mrb[46].mxu1  ;;  %v2430_v61 = vmax.f32 %v6315_v59, %v6317_v40 }
 0x501   : > { %v6323_v36 = vpop.f32.mrb[47].mxu1 }
 0x502   : > { %2431 = vmax.xlane.f32.xlu0 %v2430_v61  ;;  %v2433_v33 = vmax.f32 %v6319_v22, %v6323_v36 }
 0x504   : > { %2434 = vmax.xlane.f32.xlu1 %v2433_v33 }
 0x506   : > { %v6327_v29 = vpop.f32.mrb[48].mxu1 }
 0x507   : > { %v6329_v52 = vpop.f32.mrb[49].mxu1 }
 0x508   : > { %v6331_v45 = vpop.f32.mrb[50].mxu1  ;;  %v2436_v51 = vmax.f32 %v6327_v29, %v6329_v52 }
 0x509   : > { %v6335_v18 = vpop.f32.mrb[51].mxu1 }
 0x50a   : > { %2437 = vmax.xlane.f32.xlu0 %v2436_v51  ;;  %v2439_v12 = vmax.f32 %v6331_v45, %v6335_v18 }
 0x50c   : > { %2440 = vmax.xlane.f32.xlu1 %v2439_v12 }
 0x50e   : > { %v6371_v37 = vpop.f32.mrb[52].mxu1 }
 0x50f   : > { %v6373_v0 = vpop.f32.mrb[53].mxu1 }
 0x510   : > { %v6375_v9 = vpop.f32.mrb[54].mxu1  ;;  %v2442_v56 = vmax.f32 %v6371_v37, %v6373_v0 }
 0x511   : > { %v6379_v28 = vpop.f32.mrb[55].mxu1 }
 0x512   : > { %2443 = vmax.xlane.f32.xlu0 %v2442_v56  ;;  %v2445_v60 = vmax.f32 %v6375_v9, %v6379_v28 }
 0x514   : > { %2446 = vmax.xlane.f32.xlu1 %v2445_v60 }
 0x516   : > { %v6383_v14 = vpop.f32.mrb[56].mxu1 }
 0x517   : > { %7772 = vst [vmem:[#allocation39_spill] sm:$0xff] %v6383_v14  ;;  %v6385_v57 = vpop.f32.mrb[57].mxu1 }
 0x518   : > { %7773 = vst [vmem:[#allocation40_spill] sm:$0xff] %v6385_v57  ;;  %v6387_v17 = vpop.f32.mrb[58].mxu1  ;;  %v2448_v63 = vmax.f32 %v6383_v14, %v6385_v57 }
 0x519   : > { %7774 = vst [vmem:[#allocation41_spill] sm:$0xff] %v6387_v17  ;;  %v6391_v39 = vpop.f32.mrb[59].mxu1 }
 0x51a   : > { %7775 = vst [vmem:[#allocation42_spill] sm:$0xff] %v6391_v39  ;;  %2449 = vmax.xlane.f32.xlu0 %v2448_v63  ;;  %v2451_v41 = vmax.f32 %v6387_v17, %v6391_v39  ;;  %v6641_v39 = vld [vmem:[#allocation4 + $0x70] sm:$0xff]  ;;  %v6643_v17 = vld [vmem:[#allocation4 + $0x78] sm:$0xff] }
 0x51b   : > { %7819 = vst [vmem:[#allocation86_spill] sm:$0xff] %v6641_v39  ;;  %7820 = vst [vmem:[#allocation87_spill] sm:$0xff] %v6643_v17 }
 0x51c   : > { %2452 = vmax.xlane.f32.xlu1 %v2451_v41 }
 0x51e   : > { %v6395_v24 = vpop.f32.mrb[60].mxu1 }
 0x51f   : > { %7776 = vst [vmem:[#allocation43_spill] sm:$0xff] %v6395_v24  ;;  %v6397_v43 = vpop.f32.mrb[61].mxu1 }
 0x520   : > { %7777 = vst [vmem:[#allocation44_spill] sm:$0xff] %v6397_v43  ;;  %v6399_v11 = vpop.f32.mrb[62].mxu1  ;;  %v2454_v31 = vmax.f32 %v6395_v24, %v6397_v43 }
 0x521   : > { %7778 = vst [vmem:[#allocation45_spill] sm:$0xff] %v6399_v11  ;;  %v6403_v38 = vpop.f32.mrb[63].mxu1 }
 0x522   : > { %7779 = vst [vmem:[#allocation46_spill] sm:$0xff] %v6403_v38  ;;  %2455 = vmax.xlane.f32.xlu0 %v2454_v31  ;;  %v2457_v47 = vmax.f32 %v6399_v11, %v6403_v38 }
 0x524   : > { %2458 = vmax.xlane.f32.xlu1 %v2457_v47 }
 0x526   : > { %v6407_v10 = vpop.f32.mrb[64].mxu1 }
 0x527   : > { %7780 = vst [vmem:[#allocation47_spill] sm:$0xff] %v6407_v10  ;;  %v6409_v34 = vpop.f32.mrb[65].mxu1 }
 0x528   : > { %7781 = vst [vmem:[#allocation48_spill] sm:$0xff] %v6409_v34  ;;  %v6411_v58 = vpop.f32.mrb[66].mxu1  ;;  %v2460_v42 = vmax.f32 %v6407_v10, %v6409_v34 }
 0x529   : > { %7782 = vst [vmem:[#allocation49_spill] sm:$0xff] %v6411_v58  ;;  %v6415_v49 = vpop.f32.mrb[67].mxu1 }
 0x52a   : > { %7783 = vst [vmem:[#allocation50_spill] sm:$0xff] %v6415_v49  ;;  %2461 = vmax.xlane.f32.xlu0 %v2460_v42  ;;  %v2463_v5 = vmax.f32 %v6411_v58, %v6415_v49  ;;  %v6625_v49 = vld [vmem:[#allocation4 + $0x68] sm:$0xff] }
 0x52b   : > { %7817 = vst [vmem:[#allocation84_spill] sm:$0xff] %v6625_v49 }
 0x52c   : > { %2464 = vmax.xlane.f32.xlu1 %v2463_v5 }
 0x52e   : > { %v6419_v50 = vpop.f32.mrb[68].mxu1 }
 0x52f   : > { %7784 = vst [vmem:[#allocation51_spill] sm:$0xff] %v6419_v50  ;;  %v6421_v35 = vpop.f32.mrb[69].mxu1 }
 0x530   : > { %7785 = vst [vmem:[#allocation52_spill] sm:$0xff] %v6421_v35  ;;  %v6423_v61 = vpop.f32.mrb[70].mxu1  ;;  %v2466_v33 = vmax.f32 %v6419_v50, %v6421_v35 }
 0x531   : > { %7786 = vst [vmem:[#allocation53_spill] sm:$0xff] %v6423_v61  ;;  %v6427_v51 = vpop.f32.mrb[71].mxu1 }
 0x532   : > { %7787 = vst [vmem:[#allocation54_spill] sm:$0xff] %v6427_v51  ;;  %2467 = vmax.xlane.f32.xlu0 %v2466_v33  ;;  %v2469_v12 = vmax.f32 %v6423_v61, %v6427_v51  ;;  %v6605_v51 = vld [vmem:[#allocation4 + $0x58] sm:$0xff] }
 0x533   : > { %7813 = vst [vmem:[#allocation80_spill] sm:$0xff] %v6605_v51 }
 0x534   : > { %2470 = vmax.xlane.f32.xlu1 %v2469_v12 }
 0x536   : > { %v6431_v54 = vpop.f32.mrb[72].mxu1 }
 0x537   : > { %7788 = vst [vmem:[#allocation55_spill] sm:$0xff] %v6431_v54  ;;  %v6433_v56 = vpop.f32.mrb[73].mxu1 }
 0x538   : > { %7789 = vst [vmem:[#allocation56_spill] sm:$0xff] %v6433_v56  ;;  %v6435_v60 = vpop.f32.mrb[74].mxu1  ;;  %v2472_v63 = vmax.f32 %v6431_v54, %v6433_v56 }
 0x539   : > { %7790 = vst [vmem:[#allocation57_spill] sm:$0xff] %v6435_v60  ;;  %v6439_v41 = vpop.f32.mrb[75].mxu1 }
 0x53a   : > { %7791 = vst [vmem:[#allocation58_spill] sm:$0xff] %v6439_v41  ;;  %2473 = vmax.xlane.f32.xlu1 %v2472_v63  ;;  %v2475_v31 = vmax.f32 %v6435_v60, %v6439_v41  ;;  %v6585_v41 = vld [vmem:[#allocation4 + $0x48] sm:$0xff] }
 0x53c   : > { %2476 = vmax.xlane.f32.xlu0 %v2475_v31 }
 0x53e   : > { %v6443_v47 = vpop.f32.mrb[76].mxu1 }
 0x53f   : > { %7792 = vst [vmem:[#allocation59_spill] sm:$0xff] %v6443_v47  ;;  %v6445_v42 = vpop.f32.mrb[77].mxu1 }
 0x540   : > { %7793 = vst [vmem:[#allocation60_spill] sm:$0xff] %v6445_v42  ;;  %v6447_v5 = vpop.f32.mrb[78].mxu1  ;;  %v2478_v33 = vmax.f32 %v6443_v47, %v6445_v42 }
 0x541   : > { %7794 = vst [vmem:[#allocation61_spill] sm:$0xff] %v6447_v5  ;;  %v6451_v12 = vpop.f32.mrb[79].mxu1 }
 0x542   : > { %7795 = vst [vmem:[#allocation62_spill] sm:$0xff] %v6451_v12  ;;  %2479 = vmax.xlane.f32.xlu1 %v2478_v33  ;;  %v2481_v53 = vmax.f32 %v6447_v5, %v6451_v12  ;;  %v6565_v12 = vld [vmem:[#allocation4 + $0x38] sm:$0xff] }
 0x544   : > { %2482 = vmax.xlane.f32.xlu0 %v2481_v53 }
 0x546   : > { %v6455_v63 = vpop.f32.mrb[80].mxu1 }
 0x547   : > { %7796 = vst [vmem:[#allocation63_spill] sm:$0xff] %v6455_v63  ;;  %v6457_v27 = vpop.f32.mrb[81].mxu1 }
 0x548   : > { %7797 = vst [vmem:[#allocation64_spill] sm:$0xff] %v6457_v27  ;;  %v6459_v31 = vpop.f32.mrb[82].mxu1  ;;  %v2484_v32 = vmax.f32 %v6455_v63, %v6457_v27 }
 0x549   : > { %7798 = vst [vmem:[#allocation65_spill] sm:$0xff] %v6459_v31  ;;  %v6463_v23 = vpop.f32.mrb[83].mxu1 }
 0x54a   : > { %7799 = vst [vmem:[#allocation66_spill] sm:$0xff] %v6463_v23  ;;  %2485 = vmax.xlane.f32.xlu1 %v2484_v32  ;;  %v2487_v30 = vmax.f32 %v6459_v31, %v6463_v23  ;;  %v6545_v23 = vld [vmem:[#allocation4 + $0x28] sm:$0xff] }
 0x54c   : > { %2488 = vmax.xlane.f32.xlu0 %v2487_v30 }
 0x54e   : > { %v6467_v33 = vpop.f32.mrb[84].mxu1 }
 0x54f   : > { %7800 = vst [vmem:[#allocation67_spill] sm:$0xff] %v6467_v33  ;;  %v6469_v13 = vpop.f32.mrb[85].mxu1 }
 0x550   : > { %7801 = vst [vmem:[#allocation68_spill] sm:$0xff] %v6469_v13  ;;  %v6471_v53 = vpop.f32.mrb[86].mxu1  ;;  %v2490_v20 = vmax.f32 %v6467_v33, %v6469_v13 }
 0x551   : > { %7802 = vst [vmem:[#allocation69_spill] sm:$0xff] %v6471_v53  ;;  %v6475_v7 = vpop.f32.mrb[87].mxu1 }
 0x552   : > { %7803 = vst [vmem:[#allocation70_spill] sm:$0xff] %v6475_v7  ;;  %2491 = vmax.xlane.f32.xlu1 %v2490_v20  ;;  %v2493_v16 = vmax.f32 %v6471_v53, %v6475_v7  ;;  %v6505_v53 = vld [vmem:[#allocation4 + $0x8] sm:$0xff] }
 0x554   : > { %2494 = vmax.xlane.f32.xlu0 %v2493_v16 }
 0x556   : > { %v6479_v32 = vpop.f32.mrb[88].mxu1 }
 0x557   : > { %7804 = vst [vmem:[#allocation71_spill] sm:$0xff] %v6479_v32  ;;  %v6481_v3 = vpop.f32.mrb[89].mxu1 }
 0x558   : > { %7805 = vst [vmem:[#allocation72_spill] sm:$0xff] %v6481_v3  ;;  %v6483_v30 = vpop.f32.mrb[90].mxu1  ;;  %v2496_v6 = vmax.f32 %v6479_v32, %v6481_v3  ;;  %v6503_v32 = vld [vmem:[#allocation4] sm:$0xff] }
 0x559   : > { %7806 = vst [vmem:[#allocation73_spill] sm:$0xff] %v6483_v30  ;;  %v6487_v2 = vpop.f32.mrb[91].mxu1 }
 0x55a   : > { %7807 = vst [vmem:[#allocation74_spill] sm:$0xff] %v6487_v2  ;;  %2497 = vmax.xlane.f32.xlu1 %v2496_v6  ;;  %v2499_v4 = vmax.f32 %v6483_v30, %v6487_v2  ;;  %v6525_v30 = vld [vmem:[#allocation4 + $0x18] sm:$0xff] }
 0x55c   : > { %2500 = vmax.xlane.f32.xlu0 %v2499_v4 }
 0x55e   : > { %v6491_v20 = vpop.f32.mrb[92].mxu1 }
 0x55f   : > { %7808 = vst [vmem:[#allocation75_spill] sm:$0xff] %v6491_v20  ;;  %v6493_v13 = vpop.f32.mrb[93].mxu1 }
 0x560   : > { %7809 = vst [vmem:[#allocation76_spill] sm:$0xff] %v6493_v13  ;;  %v6495_v16 = vpop.f32.mrb[94].mxu1 }
 0x561   : > { %7810 = vst [vmem:[#allocation77_spill] sm:$0xff] %v6495_v16  ;;  %v6499_v7 = vpop.f32.mrb[95].mxu1 }
 0x562   : > { %7811 = vst [vmem:[#allocation78_spill] sm:$0xff] %v6499_v7 }
 0x577   : > { %v2414_v6 = vpop.xlane.xlu1 %2413 }
 0x578   : > { %v6508_v4 = vmax.f32 %v6503_v32, %v2414_v6  ;;  %v6523_v6 = vld [vmem:[#allocation4 + $0x10] sm:$0xff] }
 0x579   : > { %v2417_v2 = vpop.xlane.xlu0 %2416 }
 0x57a   : > { %3725 = vst.msk [vmem:[#allocation4] sm:$0xff] %vm2058_vm4, %v6508_v4  ;;  %v6515_v33 = vmax.f32 %v6505_v53, %v2417_v2  ;;  %2638 = vperm.xlu0 %5050, %v6508_v4  }
 0x57c   : > { %3726 = vst.msk [vmem:[#allocation4 + $0x8] sm:$0xff] %vm2058_vm4, %v6515_v33  ;;  %2643 = vperm.xlu1 %5051, %v6515_v33  }
 0x57f   : > { %v2420_v27 = vpop.xlane.xlu0 %2419 }
 0x580   : > { %v6528_v63 = vmax.f32 %v6523_v6, %v2420_v27  ;;  %v6543_v27 = vld [vmem:[#allocation4 + $0x20] sm:$0xff] }
 0x581   : > { %v2423_v2 = vpop.xlane.xlu1 %2422 }
 0x582   : > { %3727 = vst.msk [vmem:[#allocation4 + $0x10] sm:$0xff] %vm2058_vm4, %v6528_v63  ;;  %v6535_v3 = vmax.f32 %v6525_v30, %v2423_v2  ;;  %2648 = vperm.xlu0 %5050, %v6528_v63  }
 0x584   : > { %3728 = vst.msk [vmem:[#allocation4 + $0x18] sm:$0xff] %vm2058_vm4, %v6535_v3  ;;  %2653 = vperm.xlu1 %5051, %v6535_v3  }
 0x587   : > { %v2426_v42 = vpop.xlane.xlu0 %2425 }
 0x588   : > { %v6548_v47 = vmax.f32 %v6543_v27, %v2426_v42  ;;  %v6563_v42 = vld [vmem:[#allocation4 + $0x30] sm:$0xff] }
 0x589   : > { %v2429_v2 = vpop.xlane.xlu1 %2428 }
 0x58a   : > { %3729 = vst.msk [vmem:[#allocation4 + $0x20] sm:$0xff] %vm2058_vm4, %v6548_v47  ;;  %v6555_v31 = vmax.f32 %v6545_v23, %v2429_v2  ;;  %2658 = vperm.xlu0 %5050, %v6548_v47  }
 0x58c   : > { %3730 = vst.msk [vmem:[#allocation4 + $0x28] sm:$0xff] %vm2058_vm4, %v6555_v31  ;;  %2663 = vperm.xlu1 %5051, %v6555_v31  }
 0x58f   : > { %v2432_v56 = vpop.xlane.xlu0 %2431 }
 0x590   : > { %v6568_v54 = vmax.f32 %v6563_v42, %v2432_v56  ;;  %v6583_v56 = vld [vmem:[#allocation4 + $0x40] sm:$0xff] }
 0x591   : > { %v2435_v2 = vpop.xlane.xlu1 %2434 }
 0x592   : > { %3731 = vst.msk [vmem:[#allocation4 + $0x30] sm:$0xff] %vm2058_vm4, %v6568_v54  ;;  %v6575_v5 = vmax.f32 %v6565_v12, %v2435_v2  ;;  %2668 = vperm.xlu0 %5050, %v6568_v54  }
 0x594   : > { %3732 = vst.msk [vmem:[#allocation4 + $0x38] sm:$0xff] %vm2058_vm4, %v6575_v5  ;;  %2673 = vperm.xlu1 %5051, %v6575_v5  }
 0x597   : > { %v2438_v35 = vpop.xlane.xlu0 %2437 }
 0x598   : > { %v6588_v50 = vmax.f32 %v6583_v56, %v2438_v35  ;;  %v6603_v35 = vld [vmem:[#allocation4 + $0x50] sm:$0xff] }
 0x599   : > { %v2441_v2 = vpop.xlane.xlu1 %2440  ;;  %7812 = vst [vmem:[#allocation79_spill] sm:$0xff] %v6603_v35 }
 0x59a   : > { %3733 = vst.msk [vmem:[#allocation4 + $0x40] sm:$0xff] %vm2058_vm4, %v6588_v50  ;;  %v6595_v60 = vmax.f32 %v6585_v41, %v2441_v2  ;;  %2678 = vperm.xlu0 %5050, %v6588_v50  }
 0x59c   : > { %3734 = vst.msk [vmem:[#allocation4 + $0x48] sm:$0xff] %vm2058_vm4, %v6595_v60  ;;  %2683 = vperm.xlu1 %5051, %v6595_v60  }
 0x59f   : > { %v2444_v34 = vpop.xlane.xlu0 %2443 }
 0x5a0   : > { %v6608_v10 = vmax.f32 %v6603_v35, %v2444_v34  ;;  %v6623_v34 = vld [vmem:[#allocation4 + $0x60] sm:$0xff] }
 0x5a1   : > { %v2447_v2 = vpop.xlane.xlu1 %2446  ;;  %7816 = vst [vmem:[#allocation83_spill] sm:$0xff] %v6623_v34 }
 0x5a2   : > { %7814 = vst [vmem:[#allocation81_spill] sm:$0xff] %v6608_v10  ;;  %3735 = vst.msk [vmem:[#allocation4 + $0x50] sm:$0xff] %vm2058_vm4, %v6608_v10  ;;  %v6615_v61 = vmax.f32 %v6605_v51, %v2447_v2  ;;  %2688 = vperm.xlu0 %5050, %v6608_v10   ;;  %v6679_v51 = vld [vmem:[#allocation4 + $0x98] sm:$0xff] }
 0x5a3   : > { %7826 = vst [vmem:[#allocation93_spill] sm:$0xff] %v6679_v51 }
 0x5a4   : > { %7815 = vst [vmem:[#allocation82_spill] sm:$0xff] %v6615_v61  ;;  %3736 = vst.msk [vmem:[#allocation4 + $0x58] sm:$0xff] %vm2058_vm4, %v6615_v61  ;;  %2693 = vperm.xlu1 %5051, %v6615_v61  }
 0x5a7   : > { %v2450_v43 = vpop.xlane.xlu0 %2449 }
 0x5a8   : > { %v6628_v24 = vmax.f32 %v6623_v34, %v2450_v43  ;;  %v6661_v34 = vld [vmem:[#allocation4 + $0x88] sm:$0xff] }
 0x5a9   : > { %v2453_v2 = vpop.xlane.xlu1 %2452  ;;  %7822 = vst [vmem:[#allocation89_spill] sm:$0xff] %v6661_v34 }
 0x5aa   : > { %3737 = vst.msk [vmem:[#allocation4 + $0x60] sm:$0xff] %vm2058_vm4, %v6628_v24  ;;  %v6635_v58 = vmax.f32 %v6625_v49, %v2453_v2  ;;  %v6659_v49 = vld [vmem:[#allocation4 + $0x80] sm:$0xff] }
 0x5ab   : > { %7821 = vst [vmem:[#allocation88_spill] sm:$0xff] %v6659_v49 }
 0x5ac   : > { %7818 = vst [vmem:[#allocation85_spill] sm:$0xff] %v6635_v58  ;;  %3738 = vst.msk [vmem:[#allocation4 + $0x68] sm:$0xff] %vm2058_vm4, %v6635_v58 }
 0x5af   : > { %v2456_v43 = vpop.xlane.xlu0 %2455 }
 0x5b0   : > { %v6646_v57 = vmax.f32 %v6641_v39, %v2456_v43 }
 0x5b1   : > { %v2459_v38 = vpop.xlane.xlu1 %2458 }
 0x5b2   : > { %3739 = vst.msk [vmem:[#allocation4 + $0x70] sm:$0xff] %vm2058_vm4, %v6646_v57  ;;  %v6653_v2 = vmax.f32 %v6643_v17, %v2459_v38  ;;  %v6677_v17 = vld [vmem:[#allocation4 + $0x90] sm:$0xff] }
 0x5b3   : > { %7825 = vst [vmem:[#allocation92_spill] sm:$0xff] %v6677_v17 }
 0x5b4   : > { %3740 = vst.msk [vmem:[#allocation4 + $0x78] sm:$0xff] %vm2058_vm4, %v6653_v2 }
 0x5b7   : > { %v2462_v43 = vpop.xlane.xlu0 %2461 }
 0x5b8   : > { %v6664_v61 = vmax.f32 %v6659_v49, %v2462_v43  ;;  %v7827_v49 = vmax.f32 %v6495_v16, %v6499_v7  ;;  %v6700_v7 = vld [vmem:[#allocation4 + $0xa8] sm:$0xff] }
 0x5b9   : > { %v2465_v14 = vpop.xlane.xlu1 %2464  ;;  %7829 = vst [vmem:[#allocation95_spill] sm:$0xff] %v6700_v7 }
 0x5ba   : > { %7823 = vst [vmem:[#allocation90_spill] sm:$0xff] %v6664_v61  ;;  %3741 = vst.msk [vmem:[#allocation4 + $0x80] sm:$0xff] %vm2058_vm4, %v6664_v61  ;;  %v6671_v38 = vmax.f32 %v6661_v34, %v2465_v14  ;;  %v7831_v14 = vmax.f32 %v6491_v20, %v6493_v13 }
 0x5bc   : > { %7824 = vst [vmem:[#allocation91_spill] sm:$0xff] %v6671_v38  ;;  %3742 = vst.msk [vmem:[#allocation4 + $0x88] sm:$0xff] %vm2058_vm4, %v6671_v38 }
 0x5bf   : > { %v2468_v43 = vpop.xlane.xlu0 %2467 }
 0x5c0   : > { %v6682_v10 = vmax.f32 %v6677_v17, %v2468_v43  ;;  %v6698_v43 = vld [vmem:[#allocation4 + $0xa0] sm:$0xff]  ;;  %v6740_v17 = vld [vmem:[#allocation4 + $0xc8] sm:$0xff] }
 0x5c1   : > { %v2471_v39 = vpop.xlane.xlu1 %2470  ;;  %2506 = vmax.xlane.f32.xlu0 %v7827_v49  ;;  %7828 = vst [vmem:[#allocation94_spill] sm:$0xff] %v6698_v43  ;;  %7838 = vst [vmem:[#allocation103_spill] sm:$0xff] %v6740_v17 }
 0x5c2   : > { %3743 = vst.msk [vmem:[#allocation4 + $0x90] sm:$0xff] %vm2058_vm4, %v6682_v10  ;;  %v6692_v11 = vmax.f32 %v6679_v51, %v2471_v39 }
 0x5c4   : > { %3744 = vst.msk [vmem:[#allocation4 + $0x98] sm:$0xff] %vm2058_vm4, %v6692_v11 }
 0x5c7   : > { %v2474_v35 = vpop.xlane.xlu1 %2473 }
 0x5c8   : > { %v6703_v49 = vmax.f32 %v6698_v43, %v2474_v35  ;;  %2503 = vmax.xlane.f32.xlu1 %v7831_v14  ;;  %v6719_v35 = vld [vmem:[#allocation4 + $0xb0] sm:$0xff]  ;;  %v6721_v14 = vld [vmem:[#allocation4 + $0xb8] sm:$0xff] }
 0x5c9   : > { %v2477_v39 = vpop.xlane.xlu0 %2476  ;;  %7833 = vst [vmem:[#allocation98_spill] sm:$0xff] %v6719_v35  ;;  %7834 = vst [vmem:[#allocation99_spill] sm:$0xff] %v6721_v14 }
 0x5ca   : > { %7830 = vst [vmem:[#allocation96_spill] sm:$0xff] %v6703_v49  ;;  %3745 = vst.msk [vmem:[#allocation4 + $0xa0] sm:$0xff] %vm2058_vm4, %v6703_v49  ;;  %v6713_v34 = vmax.f32 %v6700_v7, %v2477_v39  ;;  %v6737_v7 = vld [vmem:[#allocation4 + $0xc0] sm:$0xff] }
 0x5cb   : > { %7837 = vst [vmem:[#allocation102_spill] sm:$0xff] %v6737_v7 }
 0x5cc   : > { %7832 = vst [vmem:[#allocation97_spill] sm:$0xff] %v6713_v34  ;;  %3746 = vst.msk [vmem:[#allocation4 + $0xa8] sm:$0xff] %vm2058_vm4, %v6713_v34 }
 0x5cf   : > { %v2480_v13 = vpop.xlane.xlu1 %2479 }
 0x5d0   : > { %v6724_v20 = vmax.f32 %v6719_v35, %v2480_v13 }
 0x5d1   : > { %v2483_v16 = vpop.xlane.xlu0 %2482 }
 0x5d2   : > { %7835 = vst [vmem:[#allocation100_spill] sm:$0xff] %v6724_v20  ;;  %3747 = vst.msk [vmem:[#allocation4 + $0xb0] sm:$0xff] %vm2058_vm4, %v6724_v20  ;;  %v6731_v39 = vmax.f32 %v6721_v14, %v2483_v16  ;;  %v6762_v16 = vld [vmem:[#allocation4 + $0xd8] sm:$0xff]  ;;  %v6784_v14 = vld [vmem:[#allocation4 + $0xe8] sm:$0xff] }
 0x5d3   : > { %7842 = vst [vmem:[#allocation107_spill] sm:$0xff] %v6762_v16  ;;  %7846 = vst [vmem:[#allocation111_spill] sm:$0xff] %v6784_v14 }
 0x5d4   : > { %7836 = vst [vmem:[#allocation101_spill] sm:$0xff] %v6731_v39  ;;  %3748 = vst.msk [vmem:[#allocation4 + $0xb8] sm:$0xff] %vm2058_vm4, %v6731_v39 }
 0x5d7   : > { %v2486_v13 = vpop.xlane.xlu1 %2485  ;;  %2698 = vperm.xlu0 %5050, %v6628_v24  }
 0x5d8   : > { %v6743_v43 = vmax.f32 %v6737_v7, %v2486_v13  ;;  %v6759_v13 = vld [vmem:[#allocation4 + $0xd0] sm:$0xff] }
 0x5d9   : > { %v2489_v35 = vpop.xlane.xlu0 %2488  ;;  %2703 = vperm.xlu1 %5051, %v6635_v58   ;;  %7841 = vst [vmem:[#allocation106_spill] sm:$0xff] %v6759_v13 }
 0x5da   : > { %7839 = vst [vmem:[#allocation104_spill] sm:$0xff] %v6743_v43  ;;  %3749 = vst.msk [vmem:[#allocation4 + $0xc0] sm:$0xff] %vm2058_vm4, %v6743_v43  ;;  %v6751_v51 = vmax.f32 %v6740_v17, %v2489_v35 }
 0x5db   : > { %2713 = vperm.xlu0 %5050, %v6653_v2  }
 0x5dc   : > { %7840 = vst [vmem:[#allocation105_spill] sm:$0xff] %v6751_v51  ;;  %3750 = vst.msk [vmem:[#allocation4 + $0xc8] sm:$0xff] %vm2058_vm4, %v6751_v51 }
 0x5dd   : > { %2708 = vperm.xlu1 %5051, %v6646_v57  }
 0x5df   : > { %v2492_v58 = vpop.xlane.xlu1 %2491  ;;  %2723 = vperm.xlu0 %5050, %v6671_v38  }
 0x5e0   : > { %v6765_v35 = vmax.f32 %v6759_v13, %v2492_v58  ;;  %v6781_v58 = vld [vmem:[#allocation4 + $0xe0] sm:$0xff] }
 0x5e1   : > { %v2495_v7 = vpop.xlane.xlu0 %2494  ;;  %2718 = vperm.xlu1 %5051, %v6664_v61   ;;  %7845 = vst [vmem:[#allocation110_spill] sm:$0xff] %v6781_v58 }
 0x5e2   : > { %7843 = vst [vmem:[#allocation108_spill] sm:$0xff] %v6765_v35  ;;  %3751 = vst.msk [vmem:[#allocation4 + $0xd0] sm:$0xff] %vm2058_vm4, %v6765_v35  ;;  %v6773_v17 = vmax.f32 %v6762_v16, %v2495_v7 }
 0x5e3   : > { %2733 = vperm.xlu0 %5050, %v6692_v11  }
 0x5e4   : > { %7844 = vst [vmem:[#allocation109_spill] sm:$0xff] %v6773_v17  ;;  %3752 = vst.msk [vmem:[#allocation4 + $0xd8] sm:$0xff] %vm2058_vm4, %v6773_v17 }
 0x5e5   : > { %2728 = vperm.xlu1 %5051, %v6682_v10  }
 0x5e7   : > { %v2498_v61 = vpop.xlane.xlu1 %2497  ;;  %2743 = vperm.xlu0 %5050, %v6713_v34  }
 0x5e8   : > { %v6787_v7 = vmax.f32 %v6781_v58, %v2498_v61 }
 0x5e9   : > { %v2501_v13 = vpop.xlane.xlu0 %2500  ;;  %2738 = vperm.xlu1 %5051, %v6703_v49  }
 0x5ea   : > { %7847 = vst [vmem:[#allocation112_spill] sm:$0xff] %v6787_v7  ;;  %3753 = vst.msk [vmem:[#allocation4 + $0xe0] sm:$0xff] %vm2058_vm4, %v6787_v7  ;;  %v6795_v16 = vmax.f32 %v6784_v14, %v2501_v13 }
 0x5eb   : > { %2753 = vperm.xlu0 %5050, %v6731_v39  }
 0x5ec   : > { %7848 = vst [vmem:[#allocation113_spill] sm:$0xff] %v6795_v16  ;;  %3754 = vst.msk [vmem:[#allocation4 + $0xe8] sm:$0xff] %vm2058_vm4, %v6795_v16 }
 0x5ed   : > { %2748 = vperm.xlu1 %5051, %v6724_v20  }
 0x5ef   : > { %2763 = vperm.xlu0 %5050, %v6751_v51  }
 0x5f1   : > { %2758 = vperm.xlu1 %5051, %v6743_v43  }
 0x5f3   : > { %2773 = vperm.xlu0 %5050, %v6773_v17  }
 0x5f5   : > { %2768 = vperm.xlu1 %5051, %v6765_v35  }
 0x5f7   : > { %2783 = vperm.xlu0 %5050, %v6795_v16  }
 0x5f9   : > { %v2639_v61 = vpop.permute.xlu0 %2638  ;;  %2778 = vperm.xlu1 %5051, %v6787_v7  }
 0x5fa   : > { %v2796_v38 = vsub.f32 %v6279_v62, %v2639_v61  ;;  %v2797_v34 = vsub.f32 %v6281_v1, %v2639_v61 }
 0x5fb   : > { %v2644_v13 = vpop.permute.xlu1 %2643 }
 0x5fc   : > { %v2798_v58 = vsub.f32 %v6283_v8, %v2644_v13  ;;  %v2799_v14 = vsub.f32 %v6287_v19, %v2644_v13 }
 0x5fe   : > { %v2860_v20 = vpack.c.bf16 %v2798_v58, %v2796_v38  ;;  %v2861_v43 = vpack.c.bf16 %v2799_v14, %v2797_v34 }
 0x600   : > { %v2893_v51 = vmul.bf16 1069105081, %v2860_v20  ;;  %v2896_v17 = vmul.bf16 1069105081, %v2861_v43 }
 0x601   : > { %v2649_v39 = vpop.permute.xlu0 %2648 }
 0x602   : > { %5076 = vpow.bf16 %v2893_v51  ;;  %v2800_v16 = vsub.f32 %v6291_v26, %v2649_v39  ;;  %v2801_v7 = vsub.f32 %v6293_v15, %v2649_v39 }
 0x603   : > { %5078 = vpow.bf16 %v2896_v17  ;;  %v2654_v35 = vpop.permute.xlu1 %2653 }
 0x604   : > { %v2802_v62 = vsub.f32 %v6295_v44, %v2654_v35  ;;  %v2803_v1 = vsub.f32 %v6299_v21, %v2654_v35 }
 0x606   : > { %v2862_v61 = vpack.c.bf16 %v2802_v62, %v2800_v16  ;;  %v2863_v8 = vpack.c.bf16 %v2803_v1, %v2801_v7 }
 0x608   : > { %v2899_v49 = vmul.bf16 1069105081, %v2862_v61  ;;  %v2902_v19 = vmul.bf16 1069105081, %v2863_v8 }
 0x609   : > { %v2659_v38 = vpop.permute.xlu0 %2658 }
 0x60a   : > { %5080 = vpow.bf16 %v2899_v49  ;;  %v2804_v51 = vsub.f32 %v6303_v46, %v2659_v38  ;;  %v2805_v17 = vsub.f32 %v6305_v25, %v2659_v38 }
 0x60b   : > { %5082 = vpow.bf16 %v2902_v19  ;;  %v2664_v20 = vpop.permute.xlu1 %2663 }
 0x60c   : > { %v2806_v26 = vsub.f32 %v6307_v48, %v2664_v20  ;;  %v2807_v15 = vsub.f32 %v6311_v55, %v2664_v20 }
 0x60d   : > { %v5077_v34 = vpop.eup %5076 }
 0x60e   : > { %v5079_v44 = vpop.eup %5078  ;;  %v2864_v43 = vpack.c.bf16 %v2806_v26, %v2804_v51  ;;  %v2865_v21 = vpack.c.bf16 %v2807_v15, %v2805_v17  ;;  %v3054_v14 = vunpack.c.h.bf16 %v5077_v34  ;;  %v3052_v39 = vunpack.c.l.bf16 %v5077_v34 }
 0x60f   : > { %3532 = vmatprep.mubr.bf16.mxu0 %v5079_v44  ;;  %v3055_v16 = vunpack.c.h.bf16 %v5079_v44  ;;  %v3053_v35 = vunpack.c.l.bf16 %v5079_v44 }
 0x610   : > { %v2905_v49 = vmul.bf16 1069105081, %v2864_v43  ;;  %v2908_v58 = vmul.bf16 1069105081, %v2865_v21  ;;  %3533 = vmatmul.mubr.bf16.vlgmr.msra.gmra.mrb[64].mxu0 %v5077_v34 }
 0x611   : > { %v2669_v7 = vpop.permute.xlu0 %2668  ;;  %v6821_v46 = vadd.f32 %v3055_v16, %v3054_v14  ;;  %v6823_v25 = vadd.f32 %v3053_v35, %v3052_v39 }
 0x612   : > { %5084 = vpow.bf16 %v2905_v49  ;;  %v2808_v55 = vsub.f32 %v6315_v59, %v2669_v7  ;;  %v2809_v13 = vsub.f32 %v6317_v40, %v2669_v7 }
 0x613   : > { %5086 = vpow.bf16 %v2908_v58  ;;  %v2674_v48 = vpop.permute.xlu1 %2673 }
 0x614   : > { %v2810_v62 = vsub.f32 %v6319_v22, %v2674_v48  ;;  %v2811_v1 = vsub.f32 %v6323_v36, %v2674_v48 }
 0x615   : > { %v5081_v61 = vpop.eup %5080 }
 0x616   : > { %v5083_v8 = vpop.eup %5082  ;;  %v2866_v19 = vpack.c.bf16 %v2810_v62, %v2808_v55  ;;  %v2867_v38 = vpack.c.bf16 %v2811_v1, %v2809_v13  ;;  %v3056_v20 = vunpack.c.l.bf16 %v5081_v61  ;;  %v3058_v51 = vunpack.c.h.bf16 %v5081_v61 }
 0x617   : > { %3540 = vmatprep.mubr.bf16.mxu0 %v5083_v8  ;;  %v3057_v17 = vunpack.c.l.bf16 %v5083_v8  ;;  %v3059_v26 = vunpack.c.h.bf16 %v5083_v8 }
 0x618   : > { %v2911_v15 = vmul.bf16 1069105081, %v2866_v19  ;;  %v2914_v34 = vmul.bf16 1069105081, %v2867_v38  ;;  %3541 = vmatmul.mubr.bf16.gmra.mrb[68].mxu0 %v5081_v61 }
 0x619   : > { %v2679_v44 = vpop.permute.xlu0 %2678  ;;  %v6829_v59 = vadd.f32 %v3057_v17, %v3056_v20  ;;  %v6831_v40 = vadd.f32 %v3059_v26, %v3058_v51 }
 0x61a   : > { %5088 = vpow.bf16 %v2911_v15  ;;  %v2812_v36 = vsub.f32 %v6327_v29, %v2679_v44  ;;  %v2813_v43 = vsub.f32 %v6329_v52, %v2679_v44 }
 0x61b   : > { %5090 = vpow.bf16 %v2914_v34  ;;  %v2684_v22 = vpop.permute.xlu1 %2683 }
 0x61c   : > { %v2814_v21 = vsub.f32 %v6331_v45, %v2684_v22  ;;  %v2815_v14 = vsub.f32 %v6335_v18, %v2684_v22 }
 0x61d   : > { %v5085_v39 = vpop.eup %5084 }
 0x61e   : > { %v5087_v16 = vpop.eup %5086  ;;  %v2868_v35 = vpack.c.bf16 %v2814_v21, %v2812_v36  ;;  %v2869_v49 = vpack.c.bf16 %v2815_v14, %v2813_v43  ;;  %v3060_v58 = vunpack.c.l.bf16 %v5085_v39  ;;  %v3062_v7 = vunpack.c.h.bf16 %v5085_v39 }
 0x61f   : > { %3548 = vmatprep.mubr.bf16.mxu0 %v5087_v16  ;;  %v3061_v48 = vunpack.c.l.bf16 %v5087_v16  ;;  %v3063_v55 = vunpack.c.h.bf16 %v5087_v16 }
 0x620   : > { %v2917_v13 = vmul.bf16 1069105081, %v2868_v35  ;;  %v2920_v62 = vmul.bf16 1069105081, %v2869_v49  ;;  %3549 = vmatmul.mubr.bf16.gmra.mrb[72].mxu0 %v5085_v39 }
 0x621   : > { %v2689_v1 = vpop.permute.xlu0 %2688  ;;  %v6837_v29 = vadd.f32 %v3061_v48, %v3060_v58  ;;  %v6839_v52 = vadd.f32 %v3063_v55, %v3062_v7 }
 0x622   : > { %5092 = vpow.bf16 %v2917_v13  ;;  %v2816_v18 = vsub.f32 %v6371_v37, %v2689_v1  ;;  %v2817_v61 = vsub.f32 %v6373_v0, %v2689_v1 }
 0x623   : > { %5094 = vpow.bf16 %v2920_v62  ;;  %v2694_v45 = vpop.permute.xlu1 %2693 }
 0x624   : > { %v2818_v8 = vsub.f32 %v6375_v9, %v2694_v45  ;;  %v2819_v19 = vsub.f32 %v6379_v28, %v2694_v45  ;;  %v7849_v45 = vsub.f32 %v6503_v32, %v6508_v4  ;;  %v7854_v32 = vsub.f32 %v6545_v23, %v6555_v31 }
 0x625   : > { %v5089_v38 = vpop.eup %5088  ;;  %v7858_v23 = vsub.f32 %v6585_v41, %v6595_v60 }
 0x626   : > { %v5091_v20 = vpop.eup %5090  ;;  %v2870_v51 = vpack.c.bf16 %v2818_v8, %v2816_v18  ;;  %v2871_v17 = vpack.c.bf16 %v2819_v19, %v2817_v61  ;;  %v3064_v26 = vunpack.c.l.bf16 %v5089_v38  ;;  %v3066_v15 = vunpack.c.h.bf16 %v5089_v38 }
 0x627   : > { %3556 = vmatprep.mubr.bf16.mxu0 %v5091_v20  ;;  %v3065_v34 = vunpack.c.l.bf16 %v5091_v20  ;;  %v3067_v44 = vunpack.c.h.bf16 %v5091_v20  ;;  %v2572_v18 = vmul.f32 1.442695, %v7849_v45  ;;  %v7850_v61 = vsub.f32 %v6505_v53, %v6515_v33 }
 0x628   : > { %v2923_v22 = vmul.bf16 1069105081, %v2870_v51  ;;  %v2926_v36 = vmul.bf16 1069105081, %v2871_v17  ;;  %3557 = vmatmul.mubr.bf16.gmra.mrb[76].mxu0 %v5089_v38  ;;  %v7851_v19 = vsub.f32 %v6523_v6, %v6528_v63  ;;  %v7852_v20 = vsub.f32 %v6525_v30, %v6535_v3  ;;  %v6881_v30 = vld [vmem:[#allocation4 + $0xf8] sm:$0xff] }
 0x629   : > { %v6845_v43 = vadd.f32 %v3065_v34, %v3064_v26  ;;  %v6847_v37 = vadd.f32 %v3067_v44, %v3066_v15  ;;  %v2574_v8 = vmul.f32 1.442695, %v7850_v61  ;;  %v7853_v17 = vsub.f32 %v6543_v27, %v6548_v47  ;;  %v7863_v44 = vld [vmem:[#allocation82_spill] sm:$0xff] }
 0x62a   : > { %5096 = vpow.bf16 %v2923_v22  ;;  %v2576_v38 = vmul.f32 1.442695, %v7851_v19  ;;  %v2578_v51 = vmul.f32 1.442695, %v7852_v20  ;;  %v2582_v4 = vmul.f32 1.442695, %v7854_v32 }
 0x62b   : > { %5098 = vpow.bf16 %v2926_v36  ;;  %v2580_v26 = vmul.f32 1.442695, %v7853_v17  ;;  %v7855_v33 = vsub.f32 %v6563_v42, %v6568_v54  ;;  %v7856_v3 = vsub.f32 %v6565_v12, %v6575_v5  ;;  %v7859_v54 = vld [vmem:[#allocation79_spill] sm:$0xff]  ;;  %v7860_v42 = vld [vmem:[#allocation81_spill] sm:$0xff]  ;;  %v7862_v12 = vld [vmem:[#allocation80_spill] sm:$0xff] }
 0x62c   : > { %5100 = vpow2.f32 %v2572_v18  ;;  %v7857_v47 = vsub.f32 %v6583_v56, %v6588_v50  ;;  %v2590_v31 = vmul.f32 1.442695, %v7858_v23  ;;  %v7861_v15 = vsub.f32 %v7859_v54, %v7860_v42  ;;  %v7865_v56 = vld [vmem:[#allocation83_spill] sm:$0xff]  ;;  %v7874_v18 = vld [vmem:[#allocation88_spill] sm:$0xff]  ;;  %v7875_v61 = vld [vmem:[#allocation90_spill] sm:$0xff] }
 0x62d   : > { %v5093_v0 = vpop.eup %5092  ;;  %5102 = vpow2.f32 %v2574_v8  ;;  %v2584_v63 = vmul.f32 1.442695, %v7855_v33  ;;  %v2586_v53 = vmul.f32 1.442695, %v7856_v3  ;;  %v7864_v22 = vsub.f32 %v7862_v12, %v7863_v44  ;;  %v7886_v42 = vld [vmem:[#allocation39_spill] sm:$0xff]  ;;  %v7888_v12 = vld [vmem:[#allocation41_spill] sm:$0xff] }
 0x62e   : > { %v5095_v9 = vpop.eup %5094  ;;  %v3068_v28 = vunpack.c.l.bf16 %v5093_v0  ;;  %v3070_v21 = vunpack.c.h.bf16 %v5093_v0  ;;  %5104 = vpow2.f32 %v2576_v38  ;;  %v2588_v6 = vmul.f32 1.442695, %v7857_v47 }
 0x62f   : > { %3564 = vmatprep.mubr.bf16.mxu0 %v5095_v9  ;;  %v3069_v14 = vunpack.c.l.bf16 %v5095_v9  ;;  %v3071_v39 = vunpack.c.h.bf16 %v5095_v9  ;;  %5106 = vpow2.f32 %v2578_v51  ;;  %v2592_v34 = vmul.f32 1.442695, %v7861_v15  ;;  %v7868_v9 = vld [vmem:[#allocation85_spill] sm:$0xff]  ;;  %v7887_v15 = vld [vmem:[#allocation40_spill] sm:$0xff] }
 0x630   : > { %3565 = vmatmul.mubr.bf16.gmra.mrb[80].mxu0 %v5093_v0  ;;  %5108 = vpow2.f32 %v2580_v26  ;;  %v2594_v50 = vmul.f32 1.442695, %v7864_v22  ;;  %v7866_v36 = vsub.f32 %v7865_v56, %v6628_v24  ;;  %v7867_v0 = vld [vmem:[#allocation84_spill] sm:$0xff]  ;;  %v7876_v8 = vsub.f32 %v7874_v18, %v7875_v61  ;;  %v7878_v26 = vld [vmem:[#allocation91_spill] sm:$0xff]  ;;  %v7889_v22 = vld [vmem:[#allocation42_spill] sm:$0xff] }
 0x631   : > { %v6849_v16 = vadd.f32 %v3069_v14, %v3068_v28  ;;  %v6851_v35 = vadd.f32 %v3071_v39, %v3070_v21  ;;  %5110 = vpow2.f32 %v2582_v4  ;;  %v7869_v28 = vsub.f32 %v7867_v0, %v7868_v9  ;;  %v7870_v39 = vld [vmem:[#allocation86_spill] sm:$0xff] }
 0x632   : > { %5112 = vpow2.f32 %v2584_v63  ;;  %v2596_v60 = vmul.f32 1.442695, %v7866_v36  ;;  %v7871_v24 = vsub.f32 %v7870_v39, %v6646_v57  ;;  %v2604_v19 = vmul.f32 1.442695, %v7876_v8  ;;  %v7881_v63 = vld [vmem:[#allocation92_spill] sm:$0xff] }
 0x633   : > { %5114 = vpow2.f32 %v2586_v53  ;;  %v2598_v21 = vmul.f32 1.442695, %v7869_v28  ;;  %v7882_v3 = vsub.f32 %v7881_v63, %v6682_v10  ;;  %v7901_v63 = vld [vmem:[#allocation95_spill] sm:$0xff] }
 0x634   : > { %5116 = vpow2.f32 %v2588_v6  ;;  %v7883_v6 = vld [vmem:[#allocation93_spill] sm:$0xff] }
 0x635   : > { %v5097_v49 = vpop.eup %5096  ;;  %5118 = vpow2.f32 %v2590_v31  ;;  %v2608_v53 = vmul.f32 1.442695, %v7882_v3  ;;  %v7884_v23 = vsub.f32 %v7883_v6, %v6692_v11  ;;  %v7891_v11 = vld [vmem:[#allocation96_spill] sm:$0xff]  ;;  %v7902_v3 = vld [vmem:[#allocation97_spill] sm:$0xff] }
 0x636   : > { %v5099_v58 = vpop.eup %5098  ;;  %v3072_v7 = vunpack.c.l.bf16 %v5097_v49  ;;  %v3074_v48 = vunpack.c.h.bf16 %v5097_v49  ;;  %5120 = vpow2.f32 %v2592_v34 }
 0x637   : > { %3572 = vmatprep.mubr.bf16.mxu0 %v5099_v58  ;;  %v3073_v55 = vunpack.c.l.bf16 %v5099_v58  ;;  %v3075_v13 = vunpack.c.h.bf16 %v5099_v58  ;;  %v6909_v14 = vpop.eup %5100  ;;  %v6914_v58 = vld [vmem:[#allocation4 + $0xf0] sm:$0xff]  ;;  %5122 = vpow2.f32 %v2594_v50  ;;  %v2610_v31 = vmul.f32 1.442695, %v7884_v23 }
 0x638   : > { %3573 = vmatmul.mubr.bf16.gmra.mrb[84].mxu0 %v5097_v49  ;;  %v2600_v49 = vmul.f32 1.442695, %v7871_v24  ;;  %5124 = vpow2.f32 %v2596_v60  ;;  %v7890_v60 = vld [vmem:[#allocation94_spill] sm:$0xff] }
 0x639   : > { %v6853_v62 = vadd.f32 %v3073_v55, %v3072_v7  ;;  %v6855_v1 = vadd.f32 %v3075_v13, %v3074_v48  ;;  %v6916_v7 = vpop.eup %5102  ;;  %v7872_v48 = vld [vmem:[#allocation87_spill] sm:$0xff]  ;;  %5126 = vpow2.f32 %v2598_v21  ;;  %v7892_v0 = vsub.f32 %v7890_v60, %v7891_v11 }
 0x63a   : > { %v7873_v55 = vsub.f32 %v7872_v48, %v6653_v2  ;;  %v6921_v45 = vpop.eup %5104  ;;  %5128 = vpow2.f32 %v2600_v49  ;;  %v7877_v2 = vld [vmem:[#allocation89_spill] sm:$0xff]  ;;  %v7908_v60 = vld [vmem:[#allocation47_spill] sm:$0xff] }
 0x63b   : > { %v6927_v57 = vpop.eup %5106  ;;  %v7879_v32 = vsub.f32 %v7877_v2, %v7878_v26  ;;  %v2612_v9 = vmul.f32 1.442695, %v7892_v0  ;;  %v7895_v49 = vld [vmem:[#allocation45_spill] sm:$0xff]  ;;  %v7899_v2 = vld [vmem:[#allocation44_spill] sm:$0xff] }
 0x63c   : > { %v2602_v13 = vmul.f32 1.442695, %v7873_v55  ;;  %v6932_v17 = vpop.eup %5108  ;;  %v7896_v55 = vld [vmem:[#allocation46_spill] sm:$0xff]  ;;  %v7909_v0 = vld [vmem:[#allocation48_spill] sm:$0xff] }
 0x63d   : > { %v2606_v4 = vmul.f32 1.442695, %v7879_v32  ;;  %v6937_v33 = vpop.eup %5110 }
 0x63e   : > { %7880 = vst [vmem:[#allocation79_spill] sm:$0xff] %v6937_v33  ;;  %5130 = vpow2.f32 %v2602_v13  ;;  %v6945_v47 = vpop.eup %5112 }
 0x63f   : > { %5132 = vpow2.f32 %v2604_v19  ;;  %v6951_v54 = vpop.eup %5114 }
 0x640   : > { %7885 = vst [vmem:[#allocation81_spill] sm:$0xff] %v6951_v54  ;;  %v6957_v36 = vpop.eup %5116  ;;  %5134 = vpow2.f32 %v2606_v4 }
 0x641   : > { %v6962_v28 = vpop.eup %5118  ;;  %5136 = vpow2.f32 %v2608_v53  ;;  %v7903_v53 = vsub.f32 %v7901_v63, %v7902_v3 }
 0x642   : > { %7893 = vst [vmem:[#allocation80_spill] sm:$0xff] %v6962_v28  ;;  %v6965_v24 = vpop.eup %5120  ;;  %5138 = vpow2.f32 %v2610_v31 }
 0x643   : > { %7894 = vst [vmem:[#allocation82_spill] sm:$0xff] %v6965_v24  ;;  %v6970_v61 = vpop.eup %5122  ;;  %5140 = vpow2.f32 %v2612_v9  ;;  %v2614_v6 = vmul.f32 1.442695, %v7903_v53 }
 0x644   : > { %7897 = vst [vmem:[#allocation83_spill] sm:$0xff] %v6970_v61  ;;  %v6974_v4 = vpop.eup %5124 }
 0x645   : > { %7900 = vst [vmem:[#allocation84_spill] sm:$0xff] %v6974_v4  ;;  %v6979_v23 = vpop.eup %5126 }
 0x646   : > { %7904 = vst [vmem:[#allocation85_spill] sm:$0xff] %v6979_v23 }
 0x64e   : > { %v2507_v27 = vpop.xlane.xlu0 %2506 }
 0x64f   : > { %v6893_v5 = vmax.f32 %v6881_v30, %v2507_v27 }
 0x651   : > { %3756 = vst.msk [vmem:[#allocation4 + $0xf8] sm:$0xff] %vm2058_vm4, %v6893_v5  ;;  %2793 = vperm.xlu0 %5050, %v6893_v5  }
 0x655   : > { %v2504_v38 = vpop.xlane.xlu1 %2503  ;;  %3310 = vperm.xlu0 %5050, %v6909_v14  }
 0x656   : > { %v6930_v20 = vmax.f32 %v6914_v58, %v2504_v38  ;;  %v2699_v51 = vpop.permute.xlu0 %2698  ;;  %v7898_v38 = vld [vmem:[#allocation43_spill] sm:$0xff] }
 0x657   : > { %v2820_v10 = vsub.f32 %v7886_v42, %v2699_v51  ;;  %v2821_v34 = vsub.f32 %v7887_v15, %v2699_v51  ;;  %v6982_v42 = vpop.eup %5128 }
 0x658   : > { %3755 = vst.msk [vmem:[#allocation4 + $0xf0] sm:$0xff] %vm2058_vm4, %v6930_v20  ;;  %2788 = vperm.xlu1 %5051, %v6930_v20  }
 0x659   : > { %v2704_v27 = vpop.permute.xlu1 %2703  ;;  %3325 = vperm.xlu0 %5050, %v6927_v57  }
 0x65a   : > { %v2822_v44 = vsub.f32 %v7888_v12, %v2704_v27  ;;  %v2823_v50 = vsub.f32 %v7889_v22, %v2704_v27  ;;  %v2714_v56 = vpop.permute.xlu0 %2713  ;;  %v6987_v22 = vpop.eup %5130 }
 0x65b   : > { %v2826_v48 = vsub.f32 %v7895_v49, %v2714_v56  ;;  %v2827_v13 = vsub.f32 %v7896_v55, %v2714_v56  ;;  %7907 = vst [vmem:[#allocation86_spill] sm:$0xff] %v6987_v22  ;;  %v7910_v49 = vld [vmem:[#allocation99_spill] sm:$0xff] }
 0x65c   : > { %v2872_v21 = vpack.c.bf16 %v2822_v44, %v2820_v10  ;;  %v2873_v39 = vpack.c.bf16 %v2823_v50, %v2821_v34  ;;  %3315 = vperm.xlu1 %5051, %v6916_v7   ;;  %v7905_v10 = vld [vmem:[#allocation49_spill] sm:$0xff]  ;;  %v7906_v34 = vld [vmem:[#allocation50_spill] sm:$0xff] }
 0x65d   : > { %v2709_v18 = vpop.permute.xlu1 %2708  ;;  %3335 = vperm.xlu0 %5050, %v6937_v33  }
 0x65e   : > { %v2929_v8 = vmul.bf16 1069105081, %v2872_v21  ;;  %v2932_v19 = vmul.bf16 1069105081, %v2873_v39  ;;  %v2824_v51 = vsub.f32 %v7898_v38, %v2709_v18  ;;  %v2825_v26 = vsub.f32 %v7899_v2, %v2709_v18  ;;  %v2724_v32 = vpop.permute.xlu0 %2723  ;;  %v6991_v39 = vpop.eup %5132  ;;  %v7914_v38 = vld [vmem:[#allocation53_spill] sm:$0xff]  ;;  %v7915_v2 = vld [vmem:[#allocation54_spill] sm:$0xff] }
 0x65f   : > { %v2830_v15 = vsub.f32 %v7905_v10, %v2724_v32  ;;  %v2831_v12 = vsub.f32 %v7906_v34, %v2724_v32 }
 0x660   : > { %5142 = vpow.bf16 %v2929_v8  ;;  %v2874_v31 = vpack.c.bf16 %v2826_v48, %v2824_v51  ;;  %v2875_v27 = vpack.c.bf16 %v2827_v13, %v2825_v26  ;;  %3320 = vperm.xlu1 %5051, %v6921_v45   ;;  %v7911_v48 = vld [vmem:[#allocation101_spill] sm:$0xff] }
 0x661   : > { %5144 = vpow.bf16 %v2932_v19  ;;  %v2719_v44 = vpop.permute.xlu1 %2718  ;;  %3345 = vperm.xlu0 %5050, %v6951_v54   ;;  %v7912_v55 = vsub.f32 %v7910_v49, %v7911_v48  ;;  %v6997_v19 = vpop.eup %5134 }
 0x662   : > { %v2935_v50 = vmul.bf16 1069105081, %v2874_v31  ;;  %v2938_v56 = vmul.bf16 1069105081, %v2875_v27  ;;  %v2828_v11 = vsub.f32 %v7908_v60, %v2719_v44  ;;  %v2829_v9 = vsub.f32 %v7909_v0, %v2719_v44  ;;  %v2734_v21 = vpop.permute.xlu0 %2733  ;;  %7913 = vst [vmem:[#allocation87_spill] sm:$0xff] %v6997_v19  ;;  %v7002_v63 = vpop.eup %5136  ;;  %v7917_v27 = vld [vmem:[#allocation52_spill] sm:$0xff] }
 0x663   : > { %5146 = vpow2.f32 %v2614_v6  ;;  %v2618_v13 = vmul.f32 1.442695, %v7912_v55  ;;  %v2834_v51 = vsub.f32 %v7914_v38, %v2734_v21  ;;  %v2835_v26 = vsub.f32 %v7915_v2, %v2734_v21  ;;  %v7916_v6 = vld [vmem:[#allocation51_spill] sm:$0xff]  ;;  %v7006_v34 = vpop.eup %5138  ;;  %v7920_v44 = vld [vmem:[#allocation105_spill] sm:$0xff]  ;;  %v7923_v21 = vld [vmem:[#allocation100_spill] sm:$0xff] }
 0x664   : > { %5148 = vpow.bf16 %v2935_v50  ;;  %v2876_v18 = vpack.c.bf16 %v2830_v15, %v2828_v11  ;;  %v2877_v8 = vpack.c.bf16 %v2831_v12, %v2829_v9  ;;  %3330 = vperm.xlu1 %5051, %v6932_v17   ;;  %7918 = vst [vmem:[#allocation88_spill] sm:$0xff] %v7006_v34  ;;  %v7919_v12 = vld [vmem:[#allocation103_spill] sm:$0xff]  ;;  %v7012_v0 = vpop.eup %5140  ;;  %v7922_v9 = vld [vmem:[#allocation98_spill] sm:$0xff]  ;;  %v7925_v55 = vld [vmem:[#allocation57_spill] sm:$0xff] }
 0x665   : > { %5150 = vpow.bf16 %v2938_v56  ;;  %v2729_v32 = vpop.permute.xlu1 %2728  ;;  %3355 = vperm.xlu0 %5050, %v6962_v28   ;;  %v7921_v50 = vsub.f32 %v7919_v12, %v7920_v44  ;;  %v7924_v49 = vsub.f32 %v7922_v9, %v7923_v21  ;;  %v7930_v12 = vld [vmem:[#allocation109_spill] sm:$0xff] }
 0x666   : > { %v2941_v3 = vmul.bf16 1069105081, %v2876_v18  ;;  %v2944_v53 = vmul.bf16 1069105081, %v2877_v8  ;;  %v2832_v31 = vsub.f32 %v7916_v6, %v2729_v32  ;;  %v2833_v10 = vsub.f32 %v7917_v27, %v2729_v32  ;;  %v2744_v15 = vpop.permute.xlu0 %2743 }
 0x667   : > { %5152 = vpow2.f32 %v2618_v13  ;;  %v2622_v56 = vmul.f32 1.442695, %v7921_v50  ;;  %v7017_v48 = vmul.f32 1.442695, %v7924_v49  ;;  %v2838_v18 = vsub.f32 %v7925_v55, %v2744_v15  ;;  %v7926_v13 = vld [vmem:[#allocation58_spill] sm:$0xff]  ;;  %v7932_v50 = vld [vmem:[#allocation61_spill] sm:$0xff] }
 0x668   : > { %5154 = vpow.bf16 %v2941_v3  ;;  %v2878_v60 = vpack.c.bf16 %v2834_v51, %v2832_v31  ;;  %v2879_v11 = vpack.c.bf16 %v2835_v26, %v2833_v10  ;;  %3340 = vperm.xlu1 %5051, %v6945_v47   ;;  %v2839_v8 = vsub.f32 %v7926_v13, %v2744_v15  ;;  %v7927_v26 = vld [vmem:[#allocation55_spill] sm:$0xff]  ;;  %v7928_v3 = vld [vmem:[#allocation56_spill] sm:$0xff]  ;;  %v7933_v15 = vld [vmem:[#allocation62_spill] sm:$0xff] }
 0x669   : > { %5156 = vpow.bf16 %v2944_v53  ;;  %v2739_v38 = vpop.permute.xlu1 %2738  ;;  %3365 = vperm.xlu0 %5050, %v6970_v61   ;;  %v7929_v10 = vld [vmem:[#allocation107_spill] sm:$0xff] }
 0x66a   : > { %v2947_v2 = vmul.bf16 1069105081, %v2878_v60  ;;  %v2950_v51 = vmul.bf16 1069105081, %v2879_v11  ;;  %v2836_v32 = vsub.f32 %v7927_v26, %v2739_v38  ;;  %v2837_v6 = vsub.f32 %v7928_v3, %v2739_v38  ;;  %v2754_v31 = vpop.permute.xlu0 %2753 }
 0x66b   : > { %v5143_v27 = vpop.eup %5142  ;;  %5158 = vpow2.f32 %v2622_v56  ;;  %v7931_v44 = vsub.f32 %v7929_v10, %v7930_v12  ;;  %v2842_v9 = vsub.f32 %v7932_v50, %v2754_v31  ;;  %v2843_v21 = vsub.f32 %v7933_v15, %v2754_v31  ;;  %v7935_v31 = vld [vmem:[#allocation59_spill] sm:$0xff]  ;;  %v7938_v15 = vld [vmem:[#allocation66_spill] sm:$0xff] }
 0x66c   : > { %v5145_v49 = vpop.eup %5144  ;;  %5160 = vpow.bf16 %v2947_v2  ;;  %v2880_v60 = vpack.c.bf16 %v2838_v18, %v2836_v32  ;;  %v2881_v11 = vpack.c.bf16 %v2839_v8, %v2837_v6  ;;  %3350 = vperm.xlu1 %5051, %v6957_v36   ;;  %v3076_v55 = vunpack.c.l.bf16 %v5143_v27  ;;  %v7936_v2 = vld [vmem:[#allocation60_spill] sm:$0xff]  ;;  %v7937_v6 = vld [vmem:[#allocation65_spill] sm:$0xff] }
 0x66d   : > { %v7027_v53 = vmul.f32 1.442695, %v7931_v44  ;;  %v7032_v13 = vpop.eup %5146  ;;  %5162 = vpow.bf16 %v2950_v51  ;;  %3580 = vmatprep.mubr.bf16.mxu0 %v5145_v49  ;;  %v2749_v56 = vpop.permute.xlu1 %2748  ;;  %3375 = vperm.xlu0 %5050, %v6979_v23   ;;  %v3077_v38 = vunpack.c.l.bf16 %v5145_v49  ;;  %v3078_v26 = vunpack.c.h.bf16 %v5143_v27 }
 0x66e   : > { %7934 = vst [vmem:[#allocation90_spill] sm:$0xff] %v7032_v13  ;;  %v3079_v3 = vunpack.c.h.bf16 %v5145_v49  ;;  %v2953_v10 = vmul.bf16 1069105081, %v2880_v60  ;;  %v2956_v12 = vmul.bf16 1069105081, %v2881_v11  ;;  %v2840_v44 = vsub.f32 %v7935_v31, %v2749_v56  ;;  %3581 = vmatmul.mubr.bf16.gmra.mrb[88].mxu0 %v5143_v27  ;;  %v2764_v8 = vpop.permute.xlu0 %2763 }
 0x66f   : > { %v2841_v18 = vsub.f32 %v7936_v2, %v2749_v56  ;;  %v5149_v32 = vpop.eup %5148  ;;  %v2846_v50 = vsub.f32 %v7937_v6, %v2764_v8  ;;  %v2847_v51 = vsub.f32 %v7938_v15, %v2764_v8  ;;  %v7039_v41 = vadd.f32 %v3077_v38, %v3076_v55  ;;  %v7943_v15 = vld [vmem:[#allocation70_spill] sm:$0xff] }
 0x670   : > { %v7041_v61 = vadd.f32 %v3079_v3, %v3078_v26  ;;  %v5151_v23 = vpop.eup %5150  ;;  %5164 = vpow.bf16 %v2953_v10  ;;  %v2882_v49 = vpack.c.bf16 %v2842_v9, %v2840_v44  ;;  %3360 = vperm.xlu1 %5051, %v6965_v24   ;;  %v3080_v11 = vunpack.c.l.bf16 %v5149_v32  ;;  %v7940_v3 = vld [vmem:[#allocation63_spill] sm:$0xff]  ;;  %v7941_v10 = vld [vmem:[#allocation64_spill] sm:$0xff] }
 0x671   : > { %v2883_v60 = vpack.c.bf16 %v2843_v21, %v2841_v18  ;;  %v7044_v31 = vpop.eup %5152  ;;  %5166 = vpow.bf16 %v2956_v12  ;;  %3588 = vmatprep.mubr.bf16.mxu0 %v5151_v23  ;;  %v2759_v27 = vpop.permute.xlu1 %2758  ;;  %3385 = vperm.xlu0 %5050, %v6987_v22   ;;  %v3081_v56 = vunpack.c.l.bf16 %v5151_v23  ;;  %v3082_v2 = vunpack.c.h.bf16 %v5149_v32  ;;  %v7942_v18 = vld [vmem:[#allocation69_spill] sm:$0xff] }
 0x672   : > { %7939 = vst [vmem:[#allocation89_spill] sm:$0xff] %v7044_v31  ;;  %v3083_v55 = vunpack.c.h.bf16 %v5151_v23  ;;  %v2959_v38 = vmul.bf16 1069105081, %v2882_v49  ;;  %v2844_v8 = vsub.f32 %v7940_v3, %v2759_v27  ;;  %v2845_v9 = vsub.f32 %v7941_v10, %v2759_v27  ;;  %v2774_v21 = vpop.permute.xlu0 %2773 }
 0x673   : > { %v2962_v26 = vmul.bf16 1069105081, %v2883_v60  ;;  %v7049_v44 = vpop.eup %5154  ;;  %v2850_v6 = vsub.f32 %v7942_v18, %v2774_v21  ;;  %v2851_v12 = vsub.f32 %v7943_v15, %v2774_v21  ;;  %v7053_v28 = vadd.f32 %v3081_v56, %v3080_v11  ;;  %v7945_v21 = vld [vmem:[#allocation67_spill] sm:$0xff]  ;;  %v7947_v18 = vld [vmem:[#allocation73_spill] sm:$0xff]  ;;  %v7948_v15 = vld [vmem:[#allocation74_spill] sm:$0xff] }
 0x674   : > { %v7055_v54 = vadd.f32 %v3083_v55, %v3082_v2  ;;  %v5157_v22 = vpop.eup %5156  ;;  %5168 = vpow.bf16 %v2959_v38  ;;  %v2884_v23 = vpack.c.bf16 %v2846_v50, %v2844_v8  ;;  %v2885_v49 = vpack.c.bf16 %v2847_v51, %v2845_v9  ;;  %3370 = vperm.xlu1 %5051, %v6974_v4   ;;  %v7946_v50 = vld [vmem:[#allocation68_spill] sm:$0xff] }
 0x675   : > { %v3084_v60 = vunpack.c.l.bf16 %v7049_v44  ;;  %v7059_v27 = vpop.eup %5158  ;;  %5170 = vpow.bf16 %v2962_v26  ;;  %v2769_v3 = vpop.permute.xlu1 %2768  ;;  %3395 = vperm.xlu0 %5050, %v6997_v19   ;;  %v3085_v10 = vunpack.c.l.bf16 %v5157_v22  ;;  %v3086_v11 = vunpack.c.h.bf16 %v7049_v44 }
 0x676   : > { %7944 = vst [vmem:[#allocation91_spill] sm:$0xff] %v7059_v27  ;;  %v3087_v56 = vunpack.c.h.bf16 %v5157_v22  ;;  %v2965_v2 = vmul.bf16 1069105081, %v2884_v23  ;;  %v2968_v55 = vmul.bf16 1069105081, %v2885_v49  ;;  %v2848_v38 = vsub.f32 %v7945_v21, %v2769_v3  ;;  %3589 = vmatmul.mubr.bf16.gmra.mrb[92].mxu0 %v5149_v32  ;;  %v2784_v8 = vpop.permute.xlu0 %2783 }
 0x677   : > { %v2849_v51 = vsub.f32 %v7946_v50, %v2769_v3  ;;  %v7065_v9 = vpop.eup %5160  ;;  %3596 = vmatprep.mubr.bf16.mxu0 %v5157_v22  ;;  %v2854_v26 = vsub.f32 %v7947_v18, %v2784_v8  ;;  %v2855_v4 = vsub.f32 %v7948_v15, %v2784_v8  ;;  %v7069_v19 = vadd.f32 %v3085_v10, %v3084_v60  ;;  %v7950_v8 = vld [vmem:[#allocation72_spill] sm:$0xff] }
 0x678   : > { %v7071_v33 = vadd.f32 %v3087_v56, %v3086_v11  ;;  %v5163_v24 = vpop.eup %5162  ;;  %5172 = vpow.bf16 %v2965_v2  ;;  %v2886_v23 = vpack.c.bf16 %v2850_v6, %v2848_v38  ;;  %3380 = vperm.xlu1 %5051, %v6982_v42   ;;  %v3088_v32 = vunpack.c.l.bf16 %v7065_v9  ;;  %v7949_v11 = vld [vmem:[#allocation71_spill] sm:$0xff]  ;;  %v7952_v38 = vld [vmem:[#allocation104_spill] sm:$0xff] }
 0x679   : > { %v2887_v49 = vpack.c.bf16 %v2851_v12, %v2849_v51  ;;  %5174 = vpow.bf16 %v2968_v55  ;;  %v2779_v3 = vpop.permute.xlu1 %2778  ;;  %3405 = vperm.xlu0 %5050, %v7006_v34   ;;  %v3089_v22 = vunpack.c.l.bf16 %v5163_v24  ;;  %v3090_v21 = vunpack.c.h.bf16 %v7065_v9  ;;  %v7951_v12 = vld [vmem:[#allocation102_spill] sm:$0xff] }
 0x67a   : > { %v3091_v50 = vunpack.c.h.bf16 %v5163_v24  ;;  %v2971_v60 = vmul.bf16 1069105081, %v2886_v23  ;;  %v2852_v56 = vsub.f32 %v7949_v11, %v2779_v3  ;;  %v2853_v2 = vsub.f32 %v7950_v8, %v2779_v3 }
 0x67b   : > { %v2974_v10 = vmul.bf16 1069105081, %v2887_v49  ;;  %v7079_v6 = vpop.eup %5164  ;;  %5176 = vpow2.f32 %v7017_v48  ;;  %v7953_v55 = vsub.f32 %v7951_v12, %v7952_v38  ;;  %v7085_v18 = vadd.f32 %v3089_v22, %v3088_v32  ;;  %v7954_v32 = vld [vmem:[#allocation111_spill] sm:$0xff]  ;;  %v7955_v22 = vld [vmem:[#allocation113_spill] sm:$0xff]  ;;  %v7957_v12 = vld [vmem:[#allocation106_spill] sm:$0xff] }
 0x67c   : > { %v7087_v15 = vadd.f32 %v3091_v50, %v3090_v21  ;;  %v5167_v34 = vpop.eup %5166  ;;  %5178 = vpow.bf16 %v2971_v60  ;;  %v2888_v23 = vpack.c.bf16 %v2854_v26, %v2852_v56  ;;  %v2889_v49 = vpack.c.bf16 %v2855_v4, %v2853_v2  ;;  %3390 = vperm.xlu1 %5051, %v6991_v39   ;;  %v7958_v38 = vld [vmem:[#allocation108_spill] sm:$0xff] }
 0x67d   : > { %v2620_v51 = vmul.f32 1.442695, %v7953_v55  ;;  %v3092_v3 = vunpack.c.l.bf16 %v7079_v6  ;;  %5180 = vpow.bf16 %v2974_v10  ;;  %3415 = vperm.xlu0 %5050, %v7032_v13   ;;  %v3093_v48 = vunpack.c.l.bf16 %v5167_v34 }
 0x67e   : > { %v3094_v11 = vunpack.c.h.bf16 %v7079_v6  ;;  %v3095_v8 = vunpack.c.h.bf16 %v5167_v34  ;;  %5182 = vpow2.f32 %v7027_v53  ;;  %v7956_v21 = vsub.f32 %v7954_v32, %v7955_v22  ;;  %3597 = vmatmul.mubr.bf16.gmra.mrb[96].mxu0 %v7049_v44 }
 0x67f   : > { %v2977_v60 = vmul.bf16 1069105081, %v2888_v23  ;;  %v2980_v26 = vmul.bf16 1069105081, %v2889_v49  ;;  %v7098_v4 = vpop.eup %5168  ;;  %5184 = vpow2.f32 %v2620_v51  ;;  %3604 = vmatprep.mubr.bf16.mxu0 %v5163_v24  ;;  %v7100_v10 = vadd.f32 %v3093_v48, %v3092_v3 }
 0x680   : > { %v2630_v50 = vmul.f32 1.442695, %v7956_v21  ;;  %v7102_v56 = vadd.f32 %v3095_v8, %v3094_v11  ;;  %v5171_v2 = vpop.eup %5170  ;;  %v7959_v53 = vsub.f32 %v7957_v12, %v7958_v38  ;;  %3400 = vperm.xlu1 %5051, %v7002_v63   ;;  %v3096_v23 = vunpack.c.l.bf16 %v7098_v4  ;;  %v7960_v21 = vld [vmem:[#allocation110_spill] sm:$0xff] }
 0x681   : > { %5186 = vpow.bf16 %v2977_v60  ;;  %v3098_v44 = vunpack.c.h.bf16 %v7098_v4  ;;  %3425 = vperm.xlu0 %5050, %v7044_v31   ;;  %v3097_v24 = vunpack.c.l.bf16 %v5171_v2  ;;  %v3099_v51 = vunpack.c.h.bf16 %v5171_v2  ;;  %v7961_v60 = vld [vmem:[#allocation112_spill] sm:$0xff] }
 0x682   : > { %v2624_v55 = vmul.f32 1.442695, %v7959_v53  ;;  %5188 = vpow.bf16 %v2980_v26  ;;  %v7962_v26 = vsub.f32 %v7960_v21, %v7961_v60 }
 0x683   : > { %5190 = vpow2.f32 %v2630_v50  ;;  %v5173_v49 = vpop.eup %5172  ;;  %v7111_v3 = vadd.f32 %v3097_v24, %v3096_v23  ;;  %v7113_v48 = vadd.f32 %v3099_v51, %v3098_v44  ;;  %v2570_v50 = vsub.f32 %v6914_v58, %v6930_v20 }
 0x684   : > { %v5175_v11 = vpop.eup %5174  ;;  %5192 = vpow2.f32 %v2624_v55  ;;  %3410 = vperm.xlu1 %5051, %v7012_v0   ;;  %v3100_v8 = vunpack.c.l.bf16 %v5173_v49  ;;  %v3102_v32 = vunpack.c.h.bf16 %v5173_v49  ;;  %v2628_v12 = vmul.f32 1.442695, %v7962_v26 }
 0x685   : > { %v7116_v22 = vpop.eup %5176  ;;  %3435 = vperm.xlu0 %5050, %v7059_v27   ;;  %v3101_v38 = vunpack.c.l.bf16 %v5175_v11  ;;  %v3103_v53 = vunpack.c.h.bf16 %v5175_v11  ;;  %v2632_v20 = vmul.f32 1.442695, %v2570_v50 }
 0x686   : > { %3605 = vmatmul.mubr.bf16.gmra.mrb[100].mxu0 %v7065_v9  ;;  %5194 = vpow2.f32 %v2628_v12 }
 0x687   : > { %v5179_v55 = vpop.eup %5178  ;;  %3612 = vmatprep.mubr.bf16.mxu0 %v5167_v34  ;;  %v7125_v23 = vadd.f32 %v3101_v38, %v3100_v8  ;;  %v7127_v44 = vadd.f32 %v3103_v53, %v3102_v32  ;;  %5196 = vpow2.f32 %v2632_v20 }
 0x688   : > { %v5181_v24 = vpop.eup %5180  ;;  %3420 = vperm.xlu1 %5051, %v7116_v22   ;;  %v3104_v21 = vunpack.c.l.bf16 %v5179_v55  ;;  %v3106_v60 = vunpack.c.h.bf16 %v5179_v55 }
 0x689   : > { %v7129_v51 = vpop.eup %5182  ;;  %v3105_v9 = vunpack.c.l.bf16 %v5181_v24  ;;  %v3107_v26 = vunpack.c.h.bf16 %v5181_v24 }
 0x68a   : > { %v7132_v58 = vpop.eup %5184  ;;  %3445 = vperm.xlu0 %5050, %v7129_v51  }
 0x68b   : > { %v3194_v8 = vadd.f32 %v3105_v9, %v3104_v21  ;;  %v7135_v38 = vadd.f32 %v3107_v26, %v3106_v60 }
 0x68c   : > { %v5187_v34 = vpop.eup %5186  ;;  %3430 = vperm.xlu1 %5051, %v7132_v58  }
 0x68d   : > { %v5189_v32 = vpop.eup %5188  ;;  %v3108_v27 = vunpack.c.l.bf16 %v5187_v34  ;;  %v3110_v31 = vunpack.c.h.bf16 %v5187_v34 }
 0x68e   : > { %v7137_v53 = vpop.eup %5190  ;;  %v3109_v12 = vunpack.c.l.bf16 %v5189_v32  ;;  %v3111_v50 = vunpack.c.h.bf16 %v5189_v32  ;;  %3613 = vmatmul.mubr.bf16.gmra.mrb[104].mxu0 %v7079_v6 }
 0x68f   : > { %3455 = vperm.xlu0 %5050, %v7137_v53   ;;  %v7141_v13 = vpop.eup %5192  ;;  %3620 = vmatprep.mubr.bf16.mxu0 %v5171_v2 }
 0x690   : > { %v3200_v21 = vadd.f32 %v3109_v12, %v3108_v27  ;;  %v7144_v60 = vadd.f32 %v3111_v50, %v3110_v31  ;;  %3440 = vperm.xlu1 %5051, %v7141_v13   ;;  %v7147_v9 = vpop.eup %5194 }
 0x691   : > { %v7151_v20 = vpop.eup %5196 }
 0x694   : > { %3450 = vperm.xlu1 %5051, %v7147_v9  }
 0x696   : > { %3621 = vmatmul.mubr.bf16.gmra.mrb[108].mxu0 %v7098_v4 }
 0x697   : > { %3628 = vmatprep.mubr.bf16.mxu0 %v5175_v11 }
 0x698   : > { %3460 = vperm.xlu1 %5051, %v7151_v20  }
 0x69e   : > { %3629 = vmatmul.mubr.bf16.gmra.mrb[112].mxu0 %v5173_v49 }
 0x69f   : > { %3636 = vmatprep.mubr.bf16.mxu0 %v5181_v24 }
 0x6a6   : > { %3637 = vmatmul.mubr.bf16.gmra.mrb[116].mxu0 %v5179_v55 }
 0x6a7   : > { %3644 = vmatprep.mubr.bf16.mxu0 %v5189_v32 }
 0x6ae   : > { %3120 = vadd.xlane.f32.xlu0 %v6821_v46  ;;  %3645 = vmatmul.mubr.bf16.gmra.mrb[120].mxu0 %v5187_v34 }
 0x6b2   : > { %3123 = vadd.xlane.f32.xlu0 %v6829_v59 }
 0x6b6   : > { %3129 = vadd.xlane.f32.xlu0 %v6837_v29  ;;  %v7964_v29 = vld [vmem:[#allocation78_spill] sm:$0xff] }
 0x6ba   : > { %3135 = vadd.xlane.f32.xlu0 %v6845_v43  ;;  %v7965_v43 = vld [vmem:[#allocation75_spill] sm:$0xff] }
 0x6bc   : > { %3117 = vadd.xlane.f32.xlu1 %v6823_v25  ;;  %v7963_v25 = vld [vmem:[#allocation77_spill] sm:$0xff] }
 0x6be   : > { %3141 = vadd.xlane.f32.xlu0 %v6849_v16  ;;  %v7966_v16 = vld [vmem:[#allocation76_spill] sm:$0xff] }
 0x6c0   : > { %3126 = vadd.xlane.f32.xlu1 %v6831_v40 }
 0x6c2   : > { %3147 = vadd.xlane.f32.xlu0 %v6853_v62 }
 0x6c4   : > { %3132 = vadd.xlane.f32.xlu1 %v6839_v52 }
 0x6c6   : > { %3153 = vadd.xlane.f32.xlu0 %v7039_v41 }
 0x6c8   : > { %3138 = vadd.xlane.f32.xlu1 %v6847_v37 }
 0x6ca   : > { %3159 = vadd.xlane.f32.xlu0 %v7053_v28 }
 0x6cc   : > { %3144 = vadd.xlane.f32.xlu1 %v6851_v35 }
 0x6ce   : > { %3165 = vadd.xlane.f32.xlu0 %v7069_v19 }
 0x6d0   : > { %3150 = vadd.xlane.f32.xlu1 %v6855_v1  ;;  %v2794_v46 = vpop.permute.xlu0 %2793 }
 0x6d1   : > { %v2858_v59 = vsub.f32 %v7963_v25, %v2794_v46  ;;  %v2859_v52 = vsub.f32 %v7964_v29, %v2794_v46 }
 0x6d2   : > { %3171 = vadd.xlane.f32.xlu0 %v7085_v18 }
 0x6d4   : > { %3156 = vadd.xlane.f32.xlu1 %v7041_v61  ;;  %v3311_v61 = vpop.permute.xlu0 %3310 }
 0x6d6   : > { %3177 = vadd.xlane.f32.xlu0 %v7100_v10 }
 0x6d7   : > { %v2789_v40 = vpop.permute.xlu1 %2788 }
 0x6d8   : > { %v2856_v37 = vsub.f32 %v7965_v43, %v2789_v40  ;;  %v2857_v35 = vsub.f32 %v7966_v16, %v2789_v40  ;;  %3162 = vadd.xlane.f32.xlu1 %v7055_v54  ;;  %v3468_v54 = vmul.f32 0.0, %v3311_v61  ;;  %v3326_v10 = vpop.permute.xlu0 %3325 }
 0x6da   : > { %3183 = vadd.xlane.f32.xlu0 %v7111_v3  ;;  %v2890_v62 = vpack.c.bf16 %v2858_v59, %v2856_v37  ;;  %v2891_v1 = vpack.c.bf16 %v2859_v52, %v2857_v35  ;;  %v3471_v59 = vmul.f32 0.0, %v3326_v10  ;;  %v5060_v52 = vld [vmem:[%s7581_s5] sm:$0xff]  }
 0x6db   : > { %v3316_v31 = vpop.permute.xlu1 %3315  ;;  %4990 = vmatprep.subr.bf16.mxu1 %v5060_v52 }
 0x6dc   : > { %v2983_v41 = vmul.bf16 1069105081, %v2890_v62  ;;  %v2986_v28 = vmul.bf16 1069105081, %v2891_v1  ;;  %3168 = vadd.xlane.f32.xlu1 %v7071_v33  ;;  %v3469_v33 = vmul.f32 0.0, %v3316_v31  ;;  %v3336_v32 = vpop.permute.xlu0 %3335  ;;  %4991 = vmatpush3.bf16.msra.mxu1 %v5060_v52 }
 0x6de   : > { %3189 = vadd.xlane.f32.xlu0 %v7125_v23  ;;  %5198 = vpow.bf16 %v2983_v41 }
 0x6df   : > { %5200 = vpow.bf16 %v2986_v28  ;;  %v3321_v55 = vpop.permute.xlu1 %3320 }
 0x6e0   : > { %3174 = vadd.xlane.f32.xlu1 %v7087_v15  ;;  %v3470_v12 = vmul.f32 0.0, %v3321_v55  ;;  %v3346_v37 = vpop.permute.xlu0 %3345 }
 0x6e2   : > { %3195 = vadd.xlane.f32.xlu0 %v3194_v8 }
 0x6e3   : > { %v4834_v19 = vpop.f32.mrb[64].mxu0 }
 0x6e4   : > { %v4835_v27 = vpop.f32.mrb[65].mxu0  ;;  %3180 = vadd.xlane.f32.xlu1 %v7102_v56 }
 0x6e5   : > { %v4836_v6 = vadd.f32 %v4835_v27, %v4834_v19  ;;  %v4837_v18 = vpop.f32.mrb[66].mxu0  ;;  %v3473_v19 = vmul.f32 0.0, %v3336_v32 }
 0x6e6   : > { %3201 = vadd.xlane.f32.xlu0 %v3200_v21  ;;  %v4838_v4 = vpop.f32.mrb[67].mxu0 }
 0x6e7   : > { %v4839_v2 = vadd.f32 %v4838_v4, %v4837_v18  ;;  %v7182_v49 = vadd.f32 %v4836_v6, %v3468_v54  ;;  %v3356_v54 = vpop.permute.xlu0 %3355 }
 0x6e8   : > { %3186 = vadd.xlane.f32.xlu1 %v7113_v48 }
 0x6e9   : > { %v5199_v15 = vpop.eup %5198  ;;  %v7185_v3 = vadd.f32 %v4839_v2, %v3469_v33 }
 0x6ea   : > { %v5201_v11 = vpop.eup %5200  ;;  %v3112_v23 = vunpack.c.l.bf16 %v5199_v15  ;;  %v3114_v24 = vunpack.c.h.bf16 %v5199_v15 }
 0x6eb   : > { %v4840_v56 = vpop.f32.mrb[68].mxu0  ;;  %3652 = vmatprep.mubr.bf16.mxu0 %v5201_v11  ;;  %v3113_v26 = vunpack.c.l.bf16 %v5201_v11  ;;  %v3115_v34 = vunpack.c.h.bf16 %v5201_v11  ;;  %v3475_v11 = vmul.f32 0.0, %v3346_v37 }
 0x6ec   : > { %v4841_v8 = vpop.f32.mrb[69].mxu0  ;;  %3653 = vmatmul.mubr.bf16.gmra.mrb[124].mxu0 %v5199_v15  ;;  %3192 = vadd.xlane.f32.xlu1 %v7127_v44  ;;  %v3331_v44 = vpop.permute.xlu1 %3330 }
 0x6ed   : > { %v4842_v50 = vadd.f32 %v4841_v8, %v4840_v56  ;;  %v4843_v21 = vpop.f32.mrb[70].mxu0  ;;  %v3206_v48 = vadd.f32 %v3113_v26, %v3112_v23  ;;  %v3209_v46 = vadd.f32 %v3115_v34, %v3114_v24  ;;  %v3472_v62 = vmul.f32 0.0, %v3331_v44  ;;  %v5061_v23 = vld [vmem:[%s7581_s5 + $0x8] sm:$0xff]  }
 0x6ee   : > { %v4844_v25 = vpop.f32.mrb[71].mxu0  ;;  %4992 = vmatprep.subr.bf16.mxu1 %v5061_v23 }
 0x6ef   : > { %v4845_v40 = vadd.f32 %v4844_v25, %v4843_v21  ;;  %3207 = vadd.xlane.f32.xlu0 %v3206_v48  ;;  %v7188_v29 = vadd.f32 %v4842_v50, %v3470_v12  ;;  %4993 = vmatpush3.bf16.msra.mxu1 %v5061_v23 }
 0x6f0   : > { %3198 = vadd.xlane.f32.xlu1 %v7135_v38  ;;  %v7967_v38 = vsub.f32 %v6881_v30, %v6893_v5  ;;  %v3341_v18 = vpop.permute.xlu1 %3340  ;;  %v3366_v30 = vpop.permute.xlu0 %3365 }
 0x6f1   : > { %v7194_v43 = vadd.f32 %v4845_v40, %v3471_v59  ;;  %v3474_v10 = vmul.f32 0.0, %v3341_v18 }
 0x6f2   : > { %v2634_v28 = vmul.f32 1.442695, %v7967_v38  ;;  %v3479_v38 = vmul.f32 0.0, %v3366_v30 }
 0x6f3   : > { %v4846_v16 = vpop.f32.mrb[72].mxu0 }
 0x6f4   : > { %v4847_v35 = vpop.f32.mrb[73].mxu0  ;;  %3204 = vadd.xlane.f32.xlu1 %v7144_v60  ;;  %5202 = vpow2.f32 %v2634_v28  ;;  %v3351_v56 = vpop.permute.xlu1 %3350 }
 0x6f5   : > { %v4848_v1 = vadd.f32 %v4847_v35, %v4846_v16  ;;  %v4849_v41 = vpop.f32.mrb[74].mxu0  ;;  %v3476_v32 = vmul.f32 0.0, %v3351_v56  ;;  %v7213_v12 = vpop.permute.xlu0 %3375 }
 0x6f6   : > { %v4850_v61 = vpop.f32.mrb[75].mxu0 }
 0x6f7   : > { %v4851_v31 = vadd.f32 %v4850_v61, %v4849_v41  ;;  %v7200_v27 = vadd.f32 %v4848_v1, %v3472_v62 }
 0x6f8   : > { %3210 = vadd.xlane.f32.xlu1 %v3209_v46  ;;  %v3477_v46 = vmul.f32 0.0, %v3356_v54  ;;  %v3361_v40 = vpop.permute.xlu1 %3360 }
 0x6f9   : > { %v7202_v6 = vadd.f32 %v4851_v31, %v3473_v19  ;;  %v7220_v44 = vpop.permute.xlu0 %3385  ;;  %v3478_v35 = vmul.f32 0.0, %v3361_v40  ;;  %v5062_v31 = vld [vmem:[%s7581_s5 + $0x10] sm:$0xff]  }
 0x6fa   : > { %4994 = vmatprep.subr.bf16.mxu1 %v5062_v31  ;;  %v2990_v40 = vld [vmem:[#allocation5 + $0x10] sm:$0xff] }
 0x6fb   : > { %v4852_v60 = vpop.f32.mrb[76].mxu0  ;;  %4995 = vmatpush3.bf16.msra.mxu1 %v5062_v31  ;;  %v2994_v31 = vld [vmem:[#allocation5 + $0x30] sm:$0xff] }
 0x6fc   : > { %v4853_v4 = vpop.f32.mrb[77].mxu0  ;;  %v3371_v28 = vpop.permute.xlu1 %3370 }
 0x6fd   : > { %v4854_v33 = vadd.f32 %v4853_v4, %v4852_v60  ;;  %v4855_v2 = vpop.f32.mrb[78].mxu0  ;;  %v7227_v54 = vpop.permute.xlu0 %3395  ;;  %v5063_v60 = vld [vmem:[%s7581_s5 + $0x18] sm:$0xff]  }
 0x6fe   : > { %v4856_v15 = vpop.f32.mrb[79].mxu0  ;;  %v7211_v34 = vpop.eup %5202  ;;  %4996 = vmatprep.subr.bf16.mxu1 %v5063_v60 }
 0x6ff   : > { %v4857_v5 = vadd.f32 %v4856_v15, %v4855_v2  ;;  %v7204_v55 = vadd.f32 %v4854_v33, %v3474_v10  ;;  %4997 = vmatpush3.bf16.msra.mxu1 %v5063_v60  ;;  %v5064_v2 = vld [vmem:[%s7581_s5 + $0x20] sm:$0xff]   ;;  %v5065_v15 = vld [vmem:[%s7581_s5 + $0x28] sm:$0xff]  }
 0x700   : > { %v7234_v4 = vpop.permute.xlu1 %3380  ;;  %4998 = vmatprep.subr.bf16.mxu1 %v5064_v2 }
 0x701   : > { %v7209_v24 = vadd.f32 %v4857_v5, %v3475_v11  ;;  %v7236_v10 = vpop.permute.xlu0 %3405 }
 0x703   : > { %v4858_v26 = vpop.f32.mrb[80].mxu0  ;;  %4999 = vmatpush3.bf16.msra.mxu1 %v5064_v2 }
 0x704   : > { %v4859_v8 = vpop.f32.mrb[81].mxu0  ;;  %v7238_v33 = vpop.permute.xlu1 %3390  ;;  %5000 = vmatprep.subr.bf16.mxu1 %v5065_v15 }
 0x705   : > { %v4860_v50 = vadd.f32 %v4859_v8, %v4858_v26  ;;  %v4861_v21 = vpop.f32.mrb[82].mxu0  ;;  %3465 = vperm.xlu0 %5050, %v7211_v34   ;;  %v7246_v11 = vpop.permute.xlu0 %3415 }
 0x706   : > { %v4862_v48 = vpop.f32.mrb[83].mxu0 }
 0x707   : > { %v4863_v25 = vadd.f32 %v4862_v48, %v4861_v21  ;;  %v7216_v59 = vadd.f32 %v4860_v50, %v3476_v32  ;;  %5001 = vmatpush3.bf16.msra.mxu1 %v5065_v15  ;;  %v2989_v21 = vld [vmem:[#allocation5 + $0x8] sm:$0xff]  ;;  %v3480_v15 = vmul.f32 0.0, %v3371_v28  ;;  %v2988_v28 = vld [vmem:[#allocation5] sm:$0xff] }
 0x708   : > { %v7248_v30 = vpop.permute.xlu1 %3400  ;;  %v3021_v48 = vmul.f32 %v6916_v7, %v2989_v21 }
 0x709   : > { %v7218_v52 = vadd.f32 %v4863_v25, %v3477_v46  ;;  %v7250_v5 = vpop.permute.xlu0 %3425 }
 0x70b   : > { %v4864_v37 = vpop.f32.mrb[84].mxu0 }
 0x70c   : > { %v4865_v16 = vpop.f32.mrb[85].mxu0  ;;  %v7252_v23 = vpop.permute.xlu1 %3410 }
 0x70d   : > { %v4866_v62 = vadd.f32 %v4865_v16, %v4864_v37  ;;  %v4867_v1 = vpop.f32.mrb[86].mxu0  ;;  %v7254_v56 = vpop.permute.xlu0 %3435  ;;  %v3022_v16 = vmul.f32 %v6921_v45, %v2990_v40  ;;  %v5066_v45 = vld [vmem:[%s7581_s5 + $0x30] sm:$0xff]  }
 0x70e   : > { %v4868_v41 = vpop.f32.mrb[87].mxu0  ;;  %5002 = vmatprep.subr.bf16.mxu1 %v5066_v45 }
 0x70f   : > { %v4869_v61 = vadd.f32 %v4868_v41, %v4867_v1  ;;  %v7222_v19 = vadd.f32 %v4866_v62, %v3478_v35  ;;  %v2992_v62 = vld [vmem:[#allocation5 + $0x20] sm:$0xff]  ;;  %5003 = vmatpush3.bf16.msra.mxu1 %v5066_v45 }
 0x710   : > { %v7256_v26 = vpop.permute.xlu1 %3420 }
 0x711   : > { %v7229_v18 = vadd.f32 %v4869_v61, %v3479_v38  ;;  %v7258_v8 = vpop.permute.xlu0 %3445  ;;  %v3024_v38 = vmul.f32 %v6932_v17, %v2992_v62  ;;  %v3481_v17 = vmul.f32 0.0, %v7213_v12 }
 0x713   : > { %7968 = vst [vmem:[#allocation92_spill] sm:$0xff] %v7229_v18  ;;  %v2998_v18 = vld [vmem:[#allocation5 + $0x50] sm:$0xff] }
 0x714   : > { %v7260_v32 = vpop.permute.xlu1 %3430 }
 0x715   : > { %v7262_v50 = vpop.permute.xlu0 %3455 }
 0x718   : > { %v7265_v46 = vpop.permute.xlu1 %3440 }
 0x71c   : > { %v7269_v41 = vpop.permute.xlu1 %3450 }
 0x73b   : > { %v3121_v25 = vpop.xlane.xlu0 %3120 }
 0x73c   : > { %v3213_v37 = vadd.f32 %v3121_v25, %v3021_v48 }
 0x73e   : > { %3245 = vst.msk [vmem:[#allocation5 + $0x8] sm:$0xff] %vm2058_vm4, %v3213_v37  ;;  %v3026_v37 = vmul.f32 %v6945_v47, %v2994_v31 }
 0x73f   : > { %v3124_v35 = vpop.xlane.xlu0 %3123 }
 0x740   : > { %v3214_v1 = vadd.f32 %v3124_v35, %v3022_v16  ;;  %v7279_v16 = vpop.permute.xlu1 %3460 }
 0x741   : > { %v4870_v61 = vpop.f32.mrb[88].mxu0 }
 0x742   : > { %3246 = vst.msk [vmem:[#allocation5 + $0x10] sm:$0xff] %vm2058_vm4, %v3214_v1  ;;  %v4871_v60 = vpop.f32.mrb[89].mxu0 }
 0x743   : > { %v3130_v7 = vpop.xlane.xlu0 %3129  ;;  %v4872_v48 = vadd.f32 %v4871_v60, %v4870_v61  ;;  %v4873_v25 = vpop.f32.mrb[90].mxu0  ;;  %v2996_v61 = vld [vmem:[#allocation5 + $0x40] sm:$0xff]  ;;  %v3020_v60 = vmul.f32 %v6909_v14, %v2988_v28  ;;  %v3483_v14 = vmul.f32 0.0, %v7220_v44  ;;  %v7969_v28 = vld [vmem:[#allocation82_spill] sm:$0xff] }
 0x744   : > { %v3216_v2 = vadd.f32 %v3130_v7, %v3024_v38  ;;  %v4874_v40 = vpop.f32.mrb[91].mxu0  ;;  %v3028_v12 = vmul.f32 %v6957_v36, %v2996_v61  ;;  %v2993_v61 = vld [vmem:[#allocation5 + $0x28] sm:$0xff] }
 0x745   : > { %v3790_v21 = vld [vmem:[#allocation5 + $0x8] sm:$0xff]  ;;  %v4875_v35 = vadd.f32 %v4874_v40, %v4873_v25  ;;  %v7281_v1 = vadd.f32 %v4872_v48, %v3480_v15  ;;  %v3482_v15 = vmul.f32 0.0, %v7234_v4 }
 0x746   : > { %5204 = vrcp.f32 %v3790_v21  ;;  %3248 = vst.msk [vmem:[#allocation5 + $0x20] sm:$0xff] %vm2058_vm4, %v3216_v2  ;;  %v2991_v2 = vld [vmem:[#allocation5 + $0x18] sm:$0xff] }
 0x747   : > { %v3136_v62 = vpop.xlane.xlu0 %3135  ;;  %v7283_v7 = vadd.f32 %v4875_v35, %v3481_v17  ;;  %v3023_v35 = vmul.f32 %v6927_v57, %v2991_v2  ;;  %v5067_v57 = vld [vmem:[%s7581_s5 + $0x38] sm:$0xff]   ;;  %v7970_v2 = vld [vmem:[#allocation79_spill] sm:$0xff] }
 0x748   : > { %v3218_v38 = vadd.f32 %v3136_v62, %v3026_v37  ;;  %5004 = vmatprep.subr.bf16.mxu1 %v5067_v57 }
 0x749   : > { %v4876_v47 = vpop.f32.mrb[92].mxu0  ;;  %v3118_v31 = vpop.xlane.xlu1 %3117  ;;  %5005 = vmatpush3.bf16.msra.mxu1 %v5067_v57 }
 0x74a   : > { %3250 = vst.msk [vmem:[#allocation5 + $0x30] sm:$0xff] %vm2058_vm4, %v3218_v38  ;;  %v3212_v21 = vadd.f32 %v3118_v31, %v3020_v60  ;;  %v4877_v25 = vpop.f32.mrb[93].mxu0  ;;  %v3030_v38 = vmul.f32 %v7969_v28, %v2998_v18 }
 0x74b   : > { %v3142_v40 = vpop.xlane.xlu0 %3141  ;;  %v4878_v48 = vadd.f32 %v4877_v25, %v4876_v47  ;;  %v4879_v45 = vpop.f32.mrb[94].mxu0 }
 0x74c   : > { %v3220_v37 = vadd.f32 %v3142_v40, %v3028_v12  ;;  %3244 = vst.msk [vmem:[#allocation5] sm:$0xff] %vm2058_vm4, %v3212_v21  ;;  %v4880_v17 = vpop.f32.mrb[95].mxu0  ;;  %v3000_v12 = vld [vmem:[#allocation5 + $0x60] sm:$0xff]  ;;  %v3025_v21 = vmul.f32 %v7970_v2, %v2993_v61  ;;  %v3791_v61 = vld [vmem:[#allocation5 + $0x10] sm:$0xff] }
 0x74d   : > { %v4881_v36 = vadd.f32 %v4880_v17, %v4879_v45  ;;  %v3127_v62 = vpop.xlane.xlu1 %3126  ;;  %v7294_v60 = vadd.f32 %v4878_v48, %v3482_v15  ;;  %v7971_v15 = vld [vmem:[#allocation84_spill] sm:$0xff] }
 0x74e   : > { %3252 = vst.msk [vmem:[#allocation5 + $0x40] sm:$0xff] %vm2058_vm4, %v3220_v37  ;;  %v3215_v47 = vadd.f32 %v3127_v62, %v3023_v35  ;;  %v3032_v48 = vmul.f32 %v7971_v15, %v3000_v12  ;;  %v2995_v37 = vld [vmem:[#allocation5 + $0x38] sm:$0xff]  ;;  %v3002_v62 = vld [vmem:[#allocation5 + $0x70] sm:$0xff] }
 0x74f   : > { %v3148_v31 = vpop.xlane.xlu0 %3147  ;;  %v7299_v44 = vadd.f32 %v4881_v36, %v3483_v14  ;;  %v3484_v14 = vmul.f32 0.0, %v7238_v33  ;;  %v3034_v57 = vmul.f32 %v6982_v42, %v3002_v62  ;;  %v2997_v33 = vld [vmem:[#allocation5 + $0x48] sm:$0xff] }
 0x750   : > { %v5205_v4 = vpop.eup %5204  ;;  %v3222_v25 = vadd.f32 %v3148_v31, %v3030_v38  ;;  %3247 = vst.msk [vmem:[#allocation5 + $0x18] sm:$0xff] %vm2058_vm4, %v3215_v47  ;;  %v7972_v31 = vld [vmem:[#allocation81_spill] sm:$0xff] }
 0x751   : > { %3860 = vperm.xlu0 %5050, %v5205_v4   ;;  %v4882_v18 = vpop.f32.mrb[96].mxu0  ;;  %v3133_v40 = vpop.xlane.xlu1 %3132  ;;  %v3027_v12 = vmul.f32 %v7972_v31, %v2995_v37  ;;  %v3793_v37 = vld [vmem:[#allocation5 + $0x20] sm:$0xff]  ;;  %v3486_v31 = vmul.f32 0.0, %v7248_v30 }
 0x752   : > { %3254 = vst.msk [vmem:[#allocation5 + $0x50] sm:$0xff] %vm2058_vm4, %v3222_v25  ;;  %v3217_v45 = vadd.f32 %v3133_v40, %v3025_v21  ;;  %v4883_v17 = vpop.f32.mrb[97].mxu0  ;;  %v3485_v25 = vmul.f32 0.0, %v7227_v54  ;;  %v7973_v54 = vld [vmem:[#allocation80_spill] sm:$0xff] }
 0x753   : > { %v3154_v35 = vpop.xlane.xlu0 %3153  ;;  %v3789_v36 = vld [vmem:[#allocation5] sm:$0xff]  ;;  %v4884_v28 = vadd.f32 %v4883_v17, %v4882_v18  ;;  %v4885_v4 = vpop.f32.mrb[98].mxu0 }
 0x754   : > { %v3224_v38 = vadd.f32 %v3154_v35, %v3032_v48  ;;  %5206 = vrcp.f32 %v3789_v36  ;;  %3249 = vst.msk [vmem:[#allocation5 + $0x28] sm:$0xff] %vm2058_vm4, %v3217_v45  ;;  %v4886_v47 = vpop.f32.mrb[99].mxu0  ;;  %v3004_v48 = vld [vmem:[#allocation5 + $0x80] sm:$0xff]  ;;  %v3029_v36 = vmul.f32 %v7973_v54, %v2997_v33 }
 0x755   : > { %v4887_v2 = vadd.f32 %v4886_v47, %v4885_v4  ;;  %v3139_v21 = vpop.xlane.xlu1 %3138  ;;  %v7311_v40 = vadd.f32 %v4884_v28, %v3484_v14  ;;  %5208 = vrcp.f32 %v3791_v61  ;;  %v3036_v14 = vmul.f32 %v6991_v39, %v3004_v48  ;;  %v2999_v28 = vld [vmem:[#allocation5 + $0x58] sm:$0xff]  ;;  %v3006_v47 = vld [vmem:[#allocation5 + $0x90] sm:$0xff] }
 0x756   : > { %3256 = vst.msk [vmem:[#allocation5 + $0x60] sm:$0xff] %vm2058_vm4, %v3224_v38  ;;  %v3219_v18 = vadd.f32 %v3139_v21, %v3027_v12  ;;  %v3487_v39 = vmul.f32 0.0, %v7236_v10  ;;  %v3038_v30 = vmul.f32 %v7002_v63, %v3006_v47  ;;  %v3797_v10 = vld [vmem:[#allocation5 + $0x40] sm:$0xff] }
 0x757   : > { %v3160_v15 = vpop.xlane.xlu0 %3159  ;;  %v3792_v17 = vld [vmem:[#allocation5 + $0x18] sm:$0xff]  ;;  %v7313_v35 = vadd.f32 %v4887_v2, %v3485_v25 }
 0x758   : > { %v3226_v45 = vadd.f32 %v3160_v15, %v3034_v57  ;;  %5210 = vrcp.f32 %v3792_v17  ;;  %3251 = vst.msk [vmem:[#allocation5 + $0x38] sm:$0xff] %vm2058_vm4, %v3219_v18  ;;  %v3795_v57 = vld [vmem:[#allocation5 + $0x30] sm:$0xff]  ;;  %v7974_v18 = vld [vmem:[#allocation83_spill] sm:$0xff] }
 0x759   : > { %v4888_v42 = vpop.f32.mrb[100].mxu0  ;;  %v3145_v62 = vpop.xlane.xlu1 %3144  ;;  %5212 = vrcp.f32 %v3793_v37  ;;  %v3031_v15 = vmul.f32 %v7974_v18, %v2999_v28  ;;  %v3010_v18 = vld [vmem:[#allocation5 + $0xb0] sm:$0xff] }
 0x75a   : > { %3258 = vst.msk [vmem:[#allocation5 + $0x70] sm:$0xff] %vm2058_vm4, %v3226_v45  ;;  %v3221_v38 = vadd.f32 %v3145_v62, %v3029_v36  ;;  %v4889_v4 = vpop.f32.mrb[101].mxu0  ;;  %v3001_v45 = vld [vmem:[#allocation5 + $0x68] sm:$0xff]  ;;  %v3008_v62 = vld [vmem:[#allocation5 + $0xa0] sm:$0xff] }
 0x75b   : > { %v3166_v61 = vpop.xlane.xlu0 %3165  ;;  %v3794_v12 = vld [vmem:[#allocation5 + $0x28] sm:$0xff]  ;;  %v4890_v25 = vadd.f32 %v4889_v4, %v4888_v42  ;;  %v4891_v21 = vpop.f32.mrb[102].mxu0  ;;  %v7975_v4 = vld [vmem:[#allocation85_spill] sm:$0xff] }
 0x75c   : > { %v3228_v2 = vadd.f32 %v3166_v61, %v3036_v14  ;;  %5214 = vrcp.f32 %v3794_v12  ;;  %3253 = vst.msk [vmem:[#allocation5 + $0x48] sm:$0xff] %vm2058_vm4, %v3221_v38  ;;  %v4892_v33 = vpop.f32.mrb[103].mxu0  ;;  %v3033_v61 = vmul.f32 %v7975_v4, %v3001_v45  ;;  %v3040_v12 = vmul.f32 %v7012_v0, %v3008_v62  ;;  %v3799_v45 = vld [vmem:[#allocation5 + $0x50] sm:$0xff] }
 0x75d   : > { %v4893_v48 = vadd.f32 %v4892_v33, %v4891_v21  ;;  %v3151_v17 = vpop.xlane.xlu1 %3150  ;;  %v7325_v37 = vadd.f32 %v4890_v25, %v3486_v31  ;;  %5216 = vrcp.f32 %v3795_v57  ;;  %v3003_v25 = vld [vmem:[#allocation5 + $0x78] sm:$0xff]  ;;  %v3489_v62 = vmul.f32 0.0, %v7246_v11  ;;  %v3801_v11 = vld [vmem:[#allocation5 + $0x60] sm:$0xff] }
 0x75e   : > { %3260 = vst.msk [vmem:[#allocation5 + $0x80] sm:$0xff] %vm2058_vm4, %v3228_v2  ;;  %v5207_v54 = vpop.eup %5206  ;;  %v3223_v36 = vadd.f32 %v3151_v17, %v3031_v15  ;;  %v3488_v15 = vmul.f32 0.0, %v7252_v23 }
 0x75f   : > { %v3172_v42 = vpop.xlane.xlu0 %3171  ;;  %v3796_v14 = vld [vmem:[#allocation5 + $0x38] sm:$0xff]  ;;  %3855 = vperm.xlu1 %5051, %v5207_v54   ;;  %v7327_v28 = vadd.f32 %v4893_v48, %v3487_v39  ;;  %v5209_v63 = vpop.eup %5208 }
 0x760   : > { %v3230_v38 = vadd.f32 %v3172_v42, %v3038_v30  ;;  %5218 = vrcp.f32 %v3796_v14  ;;  %3255 = vst.msk [vmem:[#allocation5 + $0x58] sm:$0xff] %vm2058_vm4, %v3223_v36  ;;  %v7976_v54 = vld [vmem:[#allocation86_spill] sm:$0xff] }
 0x761   : > { %v4894_v47 = vpop.f32.mrb[104].mxu0  ;;  %v3157_v31 = vpop.xlane.xlu1 %3156  ;;  %5220 = vrcp.f32 %v3797_v10  ;;  %v3035_v36 = vmul.f32 %v7976_v54, %v3003_v25  ;;  %v3005_v10 = vld [vmem:[#allocation5 + $0x88] sm:$0xff]  ;;  %v3490_v54 = vmul.f32 0.0, %v7256_v26 }
 0x762   : > { %3262 = vst.msk [vmem:[#allocation5 + $0x90] sm:$0xff] %vm2058_vm4, %v3230_v38  ;;  %v5211_v2 = vpop.eup %5210  ;;  %v3225_v21 = vadd.f32 %v3157_v31, %v3033_v61  ;;  %v4895_v57 = vpop.f32.mrb[105].mxu0  ;;  %v3042_v38 = vmul.f32 %v7116_v22, %v3010_v18  ;;  %v3012_v31 = vld [vmem:[#allocation5 + $0xc0] sm:$0xff] }
 0x763   : > { %v3178_v33 = vpop.xlane.xlu0 %3177  ;;  %v3798_v39 = vld [vmem:[#allocation5 + $0x48] sm:$0xff]  ;;  %v4896_v48 = vadd.f32 %v4895_v57, %v4894_v47  ;;  %v4897_v30 = vpop.f32.mrb[106].mxu0  ;;  %3870 = vperm.xlu0 %5050, %v5211_v2   ;;  %3865 = vperm.xlu1 %5051, %v5209_v63  }
 0x764   : > { %v3232_v17 = vadd.f32 %v3178_v33, %v3040_v12  ;;  %5222 = vrcp.f32 %v3798_v39  ;;  %3257 = vst.msk [vmem:[#allocation5 + $0x68] sm:$0xff] %vm2058_vm4, %v3225_v21  ;;  %v4898_v0 = vpop.f32.mrb[107].mxu0  ;;  %v5213_v42 = vpop.eup %5212  ;;  %v7977_v21 = vld [vmem:[#allocation87_spill] sm:$0xff]  ;;  %v3007_v39 = vld [vmem:[#allocation5 + $0x98] sm:$0xff] }
 0x765   : > { %v4899_v23 = vadd.f32 %v4898_v0, %v4897_v30  ;;  %v3163_v14 = vpop.xlane.xlu1 %3162  ;;  %v7339_v4 = vadd.f32 %v4896_v48, %v3488_v15  ;;  %5224 = vrcp.f32 %v3799_v45  ;;  %v3037_v22 = vmul.f32 %v7977_v21, %v3005_v10  ;;  %v3014_v0 = vld [vmem:[#allocation5 + $0xd0] sm:$0xff] }
 0x766   : > { %3264 = vst.msk [vmem:[#allocation5 + $0xa0] sm:$0xff] %vm2058_vm4, %v3232_v17  ;;  %v5215_v61 = vpop.eup %5214  ;;  %v3227_v63 = vadd.f32 %v3163_v14, %v3035_v36  ;;  %v3044_v15 = vmul.f32 %v7132_v58, %v3012_v31  ;;  %v3803_v14 = vld [vmem:[#allocation5 + $0x70] sm:$0xff]  ;;  %v3046_v31 = vmul.f32 %v7141_v13, %v3014_v0  ;;  %v3011_v0 = vld [vmem:[#allocation5 + $0xb8] sm:$0xff] }
 0x767   : > { %v3184_v47 = vpop.xlane.xlu0 %3183  ;;  %v3800_v12 = vld [vmem:[#allocation5 + $0x58] sm:$0xff]  ;;  %3880 = vperm.xlu0 %5050, %v5215_v61   ;;  %3875 = vperm.xlu1 %5051, %v5213_v42   ;;  %v7341_v25 = vadd.f32 %v4899_v23, %v3489_v62  ;;  %v5217_v57 = vpop.eup %5216 }
 0x768   : > { %v3234_v2 = vadd.f32 %v3184_v47, %v3042_v38  ;;  %5226 = vrcp.f32 %v3800_v12  ;;  %3259 = vst.msk [vmem:[#allocation5 + $0x78] sm:$0xff] %vm2058_vm4, %v3227_v63  ;;  %v7978_v38 = vld [vmem:[#allocation88_spill] sm:$0xff]  ;;  %v3491_v63 = vmul.f32 0.0, %v7250_v5  ;;  %v3805_v5 = vld [vmem:[#allocation5 + $0x80] sm:$0xff] }
 0x769   : > { %v4900_v33 = vpop.f32.mrb[108].mxu0  ;;  %v3169_v18 = vpop.xlane.xlu1 %3168  ;;  %5228 = vrcp.f32 %v3801_v11  ;;  %v3039_v10 = vmul.f32 %v7978_v38, %v3007_v39  ;;  %v3009_v12 = vld [vmem:[#allocation5 + $0xa8] sm:$0xff]  ;;  %v7979_v39 = vld [vmem:[#allocation90_spill] sm:$0xff] }
 0x76a   : > { %3266 = vst.msk [vmem:[#allocation5 + $0xb0] sm:$0xff] %vm2058_vm4, %v3234_v2  ;;  %v5219_v48 = vpop.eup %5218  ;;  %v3229_v17 = vadd.f32 %v3169_v18, %v3037_v22  ;;  %v4901_v30 = vpop.f32.mrb[109].mxu0  ;;  %v3041_v13 = vmul.f32 %v7979_v39, %v3009_v12 }
 0x76b   : > { %v3190_v45 = vpop.xlane.xlu0 %3189  ;;  %v3802_v36 = vld [vmem:[#allocation5 + $0x68] sm:$0xff]  ;;  %v4902_v42 = vadd.f32 %v4901_v30, %v4900_v33  ;;  %v4903_v23 = vpop.f32.mrb[110].mxu0  ;;  %3890 = vperm.xlu0 %5050, %v5219_v48   ;;  %3885 = vperm.xlu1 %5051, %v5217_v57   ;;  %v3016_v57 = vld [vmem:[#allocation5 + $0xe0] sm:$0xff] }
 0x76c   : > { %v3236_v62 = vadd.f32 %v3190_v45, %v3044_v15  ;;  %5230 = vrcp.f32 %v3802_v36  ;;  %3261 = vst.msk [vmem:[#allocation5 + $0x88] sm:$0xff] %vm2058_vm4, %v3229_v17  ;;  %v4904_v58 = vpop.f32.mrb[111].mxu0  ;;  %v5221_v61 = vpop.eup %5220  ;;  %v3048_v45 = vmul.f32 %v7147_v9, %v3016_v57  ;;  %v7980_v9 = vld [vmem:[#allocation89_spill] sm:$0xff] }
 0x76d   : > { %v4905_v26 = vadd.f32 %v4904_v58, %v4903_v23  ;;  %v3175_v47 = vpop.xlane.xlu1 %3174  ;;  %v7353_v2 = vadd.f32 %v4902_v42, %v3490_v54  ;;  %5232 = vrcp.f32 %v3803_v14  ;;  %v3492_v23 = vmul.f32 0.0, %v7260_v32 }
 0x76e   : > { %3268 = vst.msk [vmem:[#allocation5 + $0xc0] sm:$0xff] %vm2058_vm4, %v3236_v62  ;;  %v5223_v11 = vpop.eup %5222  ;;  %v3231_v21 = vadd.f32 %v3175_v47, %v3039_v10 }
 0x76f   : > { %v3196_v22 = vpop.xlane.xlu0 %3195  ;;  %v3804_v33 = vld [vmem:[#allocation5 + $0x78] sm:$0xff]  ;;  %3900 = vperm.xlu0 %5050, %v5223_v11   ;;  %3895 = vperm.xlu1 %5051, %v5221_v61   ;;  %v7355_v15 = vadd.f32 %v4905_v26, %v3491_v63  ;;  %v5225_v48 = vpop.eup %5224  ;;  %v3807_v61 = vld [vmem:[#allocation5 + $0x90] sm:$0xff]  ;;  %v3043_v26 = vmul.f32 %v7980_v9, %v3011_v0  ;;  %v3013_v11 = vld [vmem:[#allocation5 + $0xc8] sm:$0xff] }
 0x770   : > { %v3238_v18 = vadd.f32 %v3196_v22, %v3046_v31  ;;  %5234 = vrcp.f32 %v3804_v33  ;;  %3263 = vst.msk [vmem:[#allocation5 + $0x98] sm:$0xff] %vm2058_vm4, %v3231_v21  ;;  %v3493_v31 = vmul.f32 0.0, %v7254_v56  ;;  %v7981_v56 = vld [vmem:[#allocation91_spill] sm:$0xff] }
 0x771   : > { %v4906_v17 = vpop.f32.mrb[112].mxu0  ;;  %v3181_v30 = vpop.xlane.xlu1 %3180  ;;  %5236 = vrcp.f32 %v3805_v5  ;;  %v3809_v5 = vld [vmem:[#allocation5 + $0xa0] sm:$0xff]  ;;  %v3045_v39 = vmul.f32 %v7981_v56, %v3013_v11 }
 0x772   : > { %3270 = vst.msk [vmem:[#allocation5 + $0xd0] sm:$0xff] %vm2058_vm4, %v3238_v18  ;;  %v5227_v54 = vpop.eup %5226  ;;  %v3233_v36 = vadd.f32 %v3181_v30, %v3041_v13  ;;  %v4907_v42 = vpop.f32.mrb[113].mxu0  ;;  %v3018_v13 = vld [vmem:[#allocation5 + $0xf0] sm:$0xff] }
 0x773   : > { %v3202_v62 = vpop.xlane.xlu0 %3201  ;;  %v3806_v14 = vld [vmem:[#allocation5 + $0x88] sm:$0xff]  ;;  %v4908_v58 = vadd.f32 %v4907_v42, %v4906_v17  ;;  %v4909_v10 = vpop.f32.mrb[114].mxu0  ;;  %3910 = vperm.xlu0 %5050, %v5227_v54   ;;  %3905 = vperm.xlu1 %5051, %v5225_v48   ;;  %v3494_v42 = vmul.f32 0.0, %v7265_v46 }
 0x774   : > { %v3240_v38 = vadd.f32 %v3202_v62, %v3048_v45  ;;  %5238 = vrcp.f32 %v3806_v14  ;;  %3265 = vst.msk [vmem:[#allocation5 + $0xa8] sm:$0xff] %vm2058_vm4, %v3233_v36  ;;  %v4910_v63 = vpop.f32.mrb[115].mxu0  ;;  %v5229_v47 = vpop.eup %5228  ;;  %v3015_v45 = vld [vmem:[#allocation5 + $0xd8] sm:$0xff] }
 0x775   : > { %v4911_v32 = vadd.f32 %v4910_v63, %v4909_v10  ;;  %v3187_v12 = vpop.xlane.xlu1 %3186  ;;  %v7366_v21 = vadd.f32 %v4908_v58, %v3492_v23  ;;  %5240 = vrcp.f32 %v3807_v61  ;;  %v3050_v58 = vmul.f32 %v7151_v20, %v3018_v13 }
 0x776   : > { %3272 = vst.msk [vmem:[#allocation5 + $0xe0] sm:$0xff] %vm2058_vm4, %v3240_v38  ;;  %v5231_v22 = vpop.eup %5230  ;;  %v3235_v57 = vadd.f32 %v3187_v12, %v3043_v26  ;;  %v3811_v38 = vld [vmem:[#allocation5 + $0xb0] sm:$0xff]  ;;  %v3047_v63 = vmul.f32 %v7129_v51, %v3015_v45  ;;  %v3495_v26 = vmul.f32 0.0, %v7258_v8  ;;  %v3813_v51 = vld [vmem:[#allocation5 + $0xc0] sm:$0xff] }
 0x777   : > { %v3808_v33 = vld [vmem:[#allocation5 + $0x98] sm:$0xff]  ;;  %3920 = vperm.xlu0 %5050, %v5231_v22   ;;  %3915 = vperm.xlu1 %5051, %v5229_v47   ;;  %v7368_v18 = vadd.f32 %v4911_v32, %v3493_v31  ;;  %v5233_v48 = vpop.eup %5232  ;;  %v3017_v32 = vld [vmem:[#allocation5 + $0xe8] sm:$0xff] }
 0x778   : > { %5242 = vrcp.f32 %v3808_v33  ;;  %3267 = vst.msk [vmem:[#allocation5 + $0xb8] sm:$0xff] %vm2058_vm4, %v3235_v57  ;;  %v3049_v8 = vmul.f32 %v7137_v53, %v3017_v32 }
 0x779   : > { %v4912_v17 = vpop.f32.mrb[116].mxu0  ;;  %v3193_v30 = vpop.xlane.xlu1 %3192  ;;  %5244 = vrcp.f32 %v3809_v5 }
 0x77a   : > { %v5235_v0 = vpop.eup %5234  ;;  %v3237_v54 = vadd.f32 %v3193_v30, %v3045_v39  ;;  %v4913_v36 = vpop.f32.mrb[117].mxu0  ;;  %v3019_v39 = vld [vmem:[#allocation5 + $0xf8] sm:$0xff]  ;;  %v3496_v30 = vmul.f32 0.0, %v7269_v41 }
 0x77b   : > { %v3810_v62 = vld [vmem:[#allocation5 + $0xa8] sm:$0xff]  ;;  %v4914_v23 = vadd.f32 %v4913_v36, %v4912_v17  ;;  %v4915_v14 = vpop.f32.mrb[118].mxu0  ;;  %3930 = vperm.xlu0 %5050, %v5235_v0   ;;  %3925 = vperm.xlu1 %5051, %v5233_v48   ;;  %v5237_v9 = vpop.eup %5236  ;;  %v3815_v36 = vld [vmem:[#allocation5 + $0xd0] sm:$0xff] }
 0x77c   : > { %5246 = vrcp.f32 %v3810_v62  ;;  %3269 = vst.msk [vmem:[#allocation5 + $0xc8] sm:$0xff] %vm2058_vm4, %v3237_v54  ;;  %v4916_v10 = vpop.f32.mrb[119].mxu0  ;;  %v3208_v61 = vpop.xlane.xlu0 %3207 }
 0x77d   : > { %v4917_v46 = vadd.f32 %v4916_v10, %v4915_v14  ;;  %v3242_v47 = vadd.f32 %v3208_v61, %v3050_v58  ;;  %v3199_v31 = vpop.xlane.xlu1 %3198  ;;  %v7377_v12 = vadd.f32 %v4914_v23, %v3494_v42  ;;  %5248 = vrcp.f32 %v3811_v38 }
 0x77e   : > { %v5239_v11 = vpop.eup %5238  ;;  %v3239_v22 = vadd.f32 %v3199_v31, %v3047_v63  ;;  %v3051_v42 = vmul.f32 %v7211_v34, %v3019_v39  ;;  %v3497_v23 = vmul.f32 0.0, %v7262_v50  ;;  %v3498_v39 = vmul.f32 0.0, %v7279_v16 }
 0x77f   : > { %v3812_v20 = vld [vmem:[#allocation5 + $0xb8] sm:$0xff]  ;;  %3274 = vst.msk [vmem:[#allocation5 + $0xf0] sm:$0xff] %vm2058_vm4, %v3242_v47  ;;  %3940 = vperm.xlu0 %5050, %v5239_v11   ;;  %3935 = vperm.xlu1 %5051, %v5237_v9   ;;  %v7380_v57 = vadd.f32 %v4917_v46, %v3495_v26  ;;  %v5241_v33 = vpop.eup %5240  ;;  %v3817_v9 = vld [vmem:[#allocation5 + $0xe0] sm:$0xff] }
 0x780   : > { %5250 = vrcp.f32 %v3812_v20  ;;  %3271 = vst.msk [vmem:[#allocation5 + $0xd8] sm:$0xff] %vm2058_vm4, %v3239_v22 }
 0x781   : > { %v4918_v5 = vpop.f32.mrb[120].mxu0  ;;  %v3205_v56 = vpop.xlane.xlu1 %3204  ;;  %5252 = vrcp.f32 %v3813_v51 }
 0x782   : > { %v5243_v13 = vpop.eup %5242  ;;  %v4919_v48 = vpop.f32.mrb[121].mxu0  ;;  %v3241_v17 = vadd.f32 %v3205_v56, %v3049_v8 }
 0x783   : > { %v3814_v45 = vld [vmem:[#allocation5 + $0xc8] sm:$0xff]  ;;  %v4920_v0 = vadd.f32 %v4919_v48, %v4918_v5  ;;  %v4921_v54 = vpop.f32.mrb[122].mxu0  ;;  %3950 = vperm.xlu0 %5050, %v5243_v13   ;;  %3945 = vperm.xlu1 %5051, %v5241_v33   ;;  %v5245_v62 = vpop.eup %5244 }
 0x784   : > { %5254 = vrcp.f32 %v3814_v45  ;;  %3273 = vst.msk [vmem:[#allocation5 + $0xe8] sm:$0xff] %vm2058_vm4, %v3241_v17  ;;  %v4922_v53 = vpop.f32.mrb[123].mxu0 }
 0x785   : > { %v4923_v14 = vadd.f32 %v4922_v53, %v4921_v54  ;;  %v3211_v58 = vpop.xlane.xlu1 %3210  ;;  %v7388_v38 = vadd.f32 %v4920_v0, %v3496_v30  ;;  %5256 = vrcp.f32 %v3815_v36  ;;  %v7398_v0 = vpop.permute.xlu0 %3465 }
 0x786   : > { %v5247_v41 = vpop.eup %5246  ;;  %v3243_v10 = vadd.f32 %v3211_v58, %v3051_v42  ;;  %v3819_v46 = vld [vmem:[#allocation5 + $0xf0] sm:$0xff] }
 0x787   : > { %v3816_v61 = vld [vmem:[#allocation5 + $0xd8] sm:$0xff]  ;;  %3960 = vperm.xlu0 %5050, %v5247_v41   ;;  %3955 = vperm.xlu1 %5051, %v5245_v62   ;;  %v7390_v63 = vadd.f32 %v4923_v14, %v3497_v23  ;;  %v5249_v34 = vpop.eup %5248 }
 0x788   : > { %5258 = vrcp.f32 %v3816_v61  ;;  %3275 = vst.msk [vmem:[#allocation5 + $0xf8] sm:$0xff] %vm2058_vm4, %v3243_v10 }
 0x789   : > { %5260 = vrcp.f32 %v3817_v9 }
 0x78a   : > { %v5251_v26 = vpop.eup %5250 }
 0x78b   : > { %v3818_v50 = vld [vmem:[#allocation5 + $0xe8] sm:$0xff]  ;;  %3970 = vperm.xlu0 %5050, %v5251_v26   ;;  %3965 = vperm.xlu1 %5051, %v5249_v34   ;;  %v5253_v47 = vpop.eup %5252 }
 0x78c   : > { %5262 = vrcp.f32 %v3818_v50 }
 0x78d   : > { %5264 = vrcp.f32 %v3819_v46 }
 0x78e   : > { %v5255_v31 = vpop.eup %5254 }
 0x78f   : > { %v3820_v32 = vld [vmem:[#allocation5 + $0xf8] sm:$0xff]  ;;  %3980 = vperm.xlu0 %5050, %v5255_v31   ;;  %3975 = vperm.xlu1 %5051, %v5253_v47   ;;  %v5257_v11 = vpop.eup %5256 }
 0x790   : > { %5266 = vrcp.f32 %v3820_v32 }
 0x792   : > { %v5259_v22 = vpop.eup %5258 }
 0x793   : > { %3990 = vperm.xlu0 %5050, %v5259_v22   ;;  %3985 = vperm.xlu1 %5051, %v5257_v11   ;;  %v5261_v20 = vpop.eup %5260 }
 0x796   : > { %v5263_v51 = vpop.eup %5262 }
 0x797   : > { %4000 = vperm.xlu0 %5050, %v5263_v51   ;;  %3995 = vperm.xlu1 %5051, %v5261_v20   ;;  %v5265_v8 = vpop.eup %5264  ;;  %v7982_v20 = vld [vmem:[#allocation92_spill] sm:$0xff] }
 0x79a   : > { %v5267_v33 = vpop.eup %5266 }
 0x79b   : > { %4010 = vperm.xlu0 %5050, %v5267_v33   ;;  %4005 = vperm.xlu1 %5051, %v5265_v8  }
 0x7bf   : > { %v4924_v5 = vpop.f32.mrb[124].mxu0 }
 0x7c0   : > { %v4925_v56 = vpop.f32.mrb[125].mxu0 }
 0x7c1   : > { %v4926_v13 = vadd.f32 %v4925_v56, %v4924_v5  ;;  %v4927_v48 = vpop.f32.mrb[126].mxu0 }
 0x7c2   : > { %v4928_v17 = vpop.f32.mrb[127].mxu0 }
 0x7c3   : > { %v7394_v30 = vadd.f32 %v4928_v17, %v4927_v48  ;;  %v7396_v45 = vadd.f32 %v4926_v13, %v3498_v39 }
 0x7d0   : > { %v3861_v54 = vpop.permute.xlu0 %3860 }
 0x7d1   : > { %v4014_v53 = vmul.f32 %v3861_v54, %v7185_v3 }
 0x7de   : > { %v3856_v36 = vpop.permute.xlu1 %3855 }
 0x7df   : > { %v4013_v42 = vmul.f32 %v3856_v36, %v7182_v49 }
 0x7e1   : > { %v4045_v62 = vpack.c.bf16 %v4014_v53, %v4013_v42 }
 0x7e2   : > { %v3866_v23 = vpop.permute.xlu1 %3865  ;;  %v3871_v14 = vpop.permute.xlu0 %3870 }
 0x7e3   : > { %v4015_v16 = vmul.f32 %v3866_v23, %v7188_v29  ;;  %v4016_v58 = vmul.f32 %v3871_v14, %v7194_v43  ;;  %5006 = vmatprep.mubr.bf16.mxu1 %v4045_v62 }
 0x7e5   : > { %v4046_v41 = vpack.c.bf16 %v4016_v58, %v4015_v16 }
 0x7e6   : > { %v3876_v10 = vpop.permute.xlu1 %3875  ;;  %v3881_v61 = vpop.permute.xlu0 %3880 }
 0x7e7   : > { %v4017_v9 = vmul.f32 %v3876_v10, %v7200_v27  ;;  %v4018_v34 = vmul.f32 %v3881_v61, %v7202_v6  ;;  %5007 = vmatmul.mubr.bf16.vlgmr.msra.gmra.mrb[96].mxu1 %v4046_v41 }
 0x7e9   : > { %v4047_v26 = vpack.c.bf16 %v4018_v34, %v4017_v9 }
 0x7ea   : > { %v3886_v3 = vpop.permute.xlu1 %3885  ;;  %v3891_v50 = vpop.permute.xlu0 %3890 }
 0x7eb   : > { %v4019_v49 = vmul.f32 %v3886_v3, %v7204_v55  ;;  %v4020_v46 = vmul.f32 %v3891_v50, %v7209_v24  ;;  %5010 = vmatprep.mubr.bf16.mxu1 %v4047_v26 }
 0x7ed   : > { %v4048_v29 = vpack.c.bf16 %v4020_v46, %v4019_v49  ;;  %v3499_v46 = vmul.f32 0.0, %v7398_v0  ;;  %v7436_v0 = vld [vmem:[%s7582_s6] ss:$0 sm:$0xff] }
 0x7ee   : > { %v3896_v47 = vpop.permute.xlu1 %3895  ;;  %v3901_v43 = vpop.permute.xlu0 %3900 }
 0x7ef   : > { %v4021_v31 = vmul.f32 %v3896_v47, %v7216_v59  ;;  %v4022_v32 = vmul.f32 %v3901_v43, %v7218_v52  ;;  %5011 = vmatmul.mubr.bf16.gmra.mrb[100].mxu1 %v4048_v29  ;;  %v3692_v47 = vadd.f32 %v7394_v30, %v3499_v46  ;;  %v7993_v46 = vld [vmem:[#allocation18_spill] sm:$0xff] }
 0x7f1   : > { %v4049_v27 = vpack.c.bf16 %v4022_v32, %v4021_v31 }
 0x7f2   : > { %v3906_v11 = vpop.permute.xlu1 %3905  ;;  %v3911_v6 = vpop.permute.xlu0 %3910 }
 0x7f3   : > { %v4023_v22 = vmul.f32 %v3906_v11, %v7222_v19  ;;  %v4024_v51 = vmul.f32 %v3911_v6, %v7982_v20  ;;  %5014 = vmatprep.mubr.bf16.mxu1 %v4049_v27  ;;  %v7983_v6 = vld [vmem:[#allocation9_spill] sm:$0xff] }
 0x7f5   : > { %v4050_v55 = vpack.c.bf16 %v4024_v51, %v4023_v22  ;;  %v7984_v51 = vld [vmem:[#allocation7_spill] sm:$0xff] }
 0x7f6   : > { %v3916_v8 = vpop.permute.xlu1 %3915  ;;  %v3921_v24 = vpop.permute.xlu0 %3920 }
 0x7f7   : > { %v4025_v33 = vmul.f32 %v3916_v8, %v7281_v1  ;;  %v4026_v5 = vmul.f32 %v3921_v24, %v7283_v7  ;;  %5015 = vmatmul.mubr.bf16.gmra.mrb[104].mxu1 %v4050_v55 }
 0x7f9   : > { %v4051_v59 = vpack.c.bf16 %v4026_v5, %v4025_v33  ;;  %v7985_v33 = vld [vmem:[#allocation10_spill] sm:$0xff] }
 0x7fa   : > { %v3926_v56 = vpop.permute.xlu1 %3925  ;;  %v3931_v52 = vpop.permute.xlu0 %3930 }
 0x7fb   : > { %v4027_v39 = vmul.f32 %v3926_v56, %v7294_v60  ;;  %v4028_v13 = vmul.f32 %v3931_v52, %v7299_v44  ;;  %5018 = vmatprep.mubr.bf16.mxu1 %v4051_v59  ;;  %v7986_v56 = vld [vmem:[#allocation8_spill] sm:$0xff] }
 0x7fd   : > { %v4052_v19 = vpack.c.bf16 %v4028_v13, %v4027_v39 }
 0x7fe   : > { %v3936_v48 = vpop.permute.xlu1 %3935  ;;  %v3941_v17 = vpop.permute.xlu0 %3940 }
 0x7ff   : > { %v4029_v54 = vmul.f32 %v3936_v48, %v7311_v40  ;;  %v4030_v36 = vmul.f32 %v3941_v17, %v7313_v35  ;;  %5019 = vmatmul.mubr.bf16.gmra.mrb[108].mxu1 %v4052_v19 }
 0x801   : > { %v4053_v1 = vpack.c.bf16 %v4030_v36, %v4029_v54 }
 0x802   : > { %v3946_v53 = vpop.permute.xlu1 %3945  ;;  %v3951_v7 = vpop.permute.xlu0 %3950 }
 0x803   : > { %v4031_v42 = vmul.f32 %v3946_v53, %v7325_v37  ;;  %v4032_v62 = vmul.f32 %v3951_v7, %v7327_v28  ;;  %5022 = vmatprep.mubr.bf16.mxu1 %v4053_v1  ;;  %v7987_v1 = vld [vmem:[#allocation13_spill] sm:$0xff] }
 0x805   : > { %v4054_v60 = vpack.c.bf16 %v4032_v62, %v4031_v42  ;;  %v7988_v62 = vld [vmem:[#allocation11_spill] sm:$0xff] }
 0x806   : > { %v3956_v23 = vpop.permute.xlu1 %3955  ;;  %v3961_v44 = vpop.permute.xlu0 %3960 }
 0x807   : > { %v4033_v14 = vmul.f32 %v3956_v23, %v7339_v4  ;;  %v4034_v16 = vmul.f32 %v3961_v44, %v7341_v25  ;;  %5023 = vmatmul.mubr.bf16.gmra.mrb[112].mxu1 %v4054_v60 }
 0x809   : > { %v4055_v40 = vpack.c.bf16 %v4034_v16, %v4033_v14  ;;  %v7989_v14 = vld [vmem:[#allocation14_spill] sm:$0xff] }
 0x80a   : > { %v3966_v58 = vpop.permute.xlu1 %3965  ;;  %v3971_v35 = vpop.permute.xlu0 %3970 }
 0x80b   : > { %v4035_v41 = vmul.f32 %v3966_v58, %v7353_v2  ;;  %v4036_v10 = vmul.f32 %v3971_v35, %v7355_v15  ;;  %5026 = vmatprep.mubr.bf16.mxu1 %v4055_v40  ;;  %v7990_v58 = vld [vmem:[#allocation12_spill] sm:$0xff] }
 0x80d   : > { %v4056_v37 = vpack.c.bf16 %v4036_v10, %v4035_v41 }
 0x80e   : > { %v3976_v61 = vpop.permute.xlu1 %3975  ;;  %v3981_v28 = vpop.permute.xlu0 %3980 }
 0x80f   : > { %v4037_v9 = vmul.f32 %v3976_v61, %v7366_v21  ;;  %v4038_v34 = vmul.f32 %v3981_v28, %v7368_v18  ;;  %5027 = vmatmul.mubr.bf16.gmra.mrb[116].mxu1 %v4056_v37 }
 0x811   : > { %v4057_v4 = vpack.c.bf16 %v4038_v34, %v4037_v9 }
 0x812   : > { %v3986_v26 = vpop.permute.xlu1 %3985  ;;  %v3991_v25 = vpop.permute.xlu0 %3990 }
 0x813   : > { %v4039_v3 = vmul.f32 %v3986_v26, %v7377_v12  ;;  %v4040_v50 = vmul.f32 %v3991_v25, %v7380_v57  ;;  %5030 = vmatprep.mubr.bf16.mxu1 %v4057_v4  ;;  %v7991_v4 = vld [vmem:[#allocation17_spill] sm:$0xff] }
 0x815   : > { %v4058_v2 = vpack.c.bf16 %v4040_v50, %v4039_v3  ;;  %v7992_v50 = vld [vmem:[#allocation15_spill] sm:$0xff] }
 0x816   : > { %v3996_v49 = vpop.permute.xlu1 %3995  ;;  %v4001_v15 = vpop.permute.xlu0 %4000 }
 0x817   : > { %v4041_v29 = vmul.f32 %v3996_v49, %v7388_v38  ;;  %v4042_v21 = vmul.f32 %v4001_v15, %v7390_v63  ;;  %5031 = vmatmul.mubr.bf16.gmra.mrb[120].mxu1 %v4058_v2 }
 0x819   : > { %v4059_v18 = vpack.c.bf16 %v4042_v21, %v4041_v29 }
 0x81a   : > { %v4006_v43 = vpop.permute.xlu1 %4005  ;;  %v4011_v31 = vpop.permute.xlu0 %4010 }
 0x81b   : > { %v4043_v12 = vmul.f32 %v4006_v43, %v7396_v45  ;;  %v4044_v57 = vmul.f32 %v4011_v31, %v3692_v47  ;;  %5034 = vmatprep.mubr.bf16.mxu1 %v4059_v18  ;;  %v7994_v18 = vld [vmem:[#allocation16_spill] sm:$0xff] }
 0x81d   : > { %v4060_v32 = vpack.c.bf16 %v4044_v57, %v4043_v12 }
 0x81f   : > { %5035 = vmatmul.mubr.bf16.gmra.mrb[124].mxu1 %v4060_v32 }
 0x8ba   : > { %v5008_v38 = vpop.f32.mrb[96].mxu1 }
 0x8bb   : > { %v4175_v63 = vadd.f32 %v5008_v38, %v7436_v0  ;;  %v4166_v27 = vpop.f32.mrb[97].mxu1 }
 0x8bc   : > { %v4167_v30 = vadd.f32 %v7436_v0, %v4166_v27  ;;  %v5009_v11 = vpop.f32.mrb[98].mxu1  ;;  %v7995_v27 = vld [vmem:[#allocation21_spill] sm:$0xff] }
 0x8bd   : > { %v4295_v22 = vadd.f32 %v7983_v6, %v4175_v63  ;;  %v4178_v45 = vadd.f32 %v5009_v11, %v7436_v0  ;;  %v4169_v20 = vpop.f32.mrb[99].mxu1 }
 0x8be   : > { %v4293_v55 = vadd.f32 %v7984_v51, %v4167_v30  ;;  %v4170_v8 = vadd.f32 %v7436_v0, %v4169_v20 }
 0x8bf   : > { %v4643_v24 = vpack.c.bf16 %v4295_v22, %v4295_v22  ;;  %v4296_v5 = vadd.f32 %v7985_v33, %v4178_v45  ;;  %v7996_v22 = vld [vmem:[#allocation19_spill] sm:$0xff]  ;;  %v7998_v33 = vld [vmem:[#allocation20_spill] sm:$0xff] }
 0x8c0   : > { %v4641_v59 = vpack.c.bf16 %v4293_v55, %v4293_v55  ;;  %v4294_v52 = vadd.f32 %v7986_v56, %v4170_v8  ;;  %v7997_v55 = vld [vmem:[#allocation22_spill] sm:$0xff] }
 0x8c1   : > { %4456 = vst.msk [vmem:[%s7447_s28 + $0x8] sm:$0xf] %vm4453_vm5, %v4643_v24  ;;  %v4644_v39 = vpack.c.bf16 %v4296_v5, %v4296_v5 }
 0x8c2   : > { %4454 = vst.msk [vmem:[%s7447_s28] sm:$0xf] %vm4453_vm5, %v4641_v59  ;;  %v4642_v13 = vpack.c.bf16 %v4294_v52, %v4294_v52  ;;  %v5012_v19 = vpop.f32.mrb[100].mxu1 }
 0x8c3   : > { %4457 = vst.msk [vmem:[%s7447_s28 + $0xc] sm:$0xf] %vm4453_vm5, %v4644_v39  ;;  %v4191_v48 = vadd.f32 %v5012_v19, %v7436_v0  ;;  %v4182_v17 = vpop.f32.mrb[101].mxu1 }
 0x8c4   : > { %4455 = vst.msk [vmem:[%s7447_s28 + $0x4] sm:$0xf] %vm4453_vm5, %v4642_v13  ;;  %v4183_v54 = vadd.f32 %v7436_v0, %v4182_v17  ;;  %v5013_v36 = vpop.f32.mrb[102].mxu1  ;;  %v7999_v17 = vld [vmem:[#allocation25_spill] sm:$0xff] }
 0x8c5   : > { %v4299_v53 = vadd.f32 %v7987_v1, %v4191_v48  ;;  %v4194_v7 = vadd.f32 %v5013_v36, %v7436_v0  ;;  %v4185_v42 = vpop.f32.mrb[103].mxu1 }
 0x8c6   : > { %v4297_v60 = vadd.f32 %v7988_v62, %v4183_v54  ;;  %v4186_v23 = vadd.f32 %v7436_v0, %v4185_v42 }
 0x8c7   : > { %v4647_v44 = vpack.c.bf16 %v4299_v53, %v4299_v53  ;;  %v4300_v16 = vadd.f32 %v7989_v14, %v4194_v7  ;;  %v8000_v53 = vld [vmem:[#allocation23_spill] sm:$0xff]  ;;  %v8002_v14 = vld [vmem:[#allocation24_spill] sm:$0xff] }
 0x8c8   : > { %v4645_v40 = vpack.c.bf16 %v4297_v60, %v4297_v60  ;;  %v4298_v35 = vadd.f32 %v7990_v58, %v4186_v23  ;;  %v8001_v60 = vld [vmem:[#allocation26_spill] sm:$0xff] }
 0x8c9   : > { %4460 = vst.msk [vmem:[%s7447_s28 + $0x18] sm:$0xf] %vm4453_vm5, %v4647_v44  ;;  %v4648_v41 = vpack.c.bf16 %v4300_v16, %v4300_v16 }
 0x8ca   : > { %4458 = vst.msk [vmem:[%s7447_s28 + $0x10] sm:$0xf] %vm4453_vm5, %v4645_v40  ;;  %v4646_v10 = vpack.c.bf16 %v4298_v35, %v4298_v35  ;;  %v5016_v37 = vpop.f32.mrb[104].mxu1 }
 0x8cb   : > { %4461 = vst.msk [vmem:[%s7447_s28 + $0x1c] sm:$0xf] %vm4453_vm5, %v4648_v41  ;;  %v4207_v61 = vadd.f32 %v5016_v37, %v7436_v0  ;;  %v4198_v28 = vpop.f32.mrb[105].mxu1 }
 0x8cc   : > { %4459 = vst.msk [vmem:[%s7447_s28 + $0x14] sm:$0xf] %vm4453_vm5, %v4646_v10  ;;  %v4199_v9 = vadd.f32 %v7436_v0, %v4198_v28  ;;  %v5017_v34 = vpop.f32.mrb[106].mxu1  ;;  %v8003_v28 = vld [vmem:[#allocation29_spill] sm:$0xff] }
 0x8cd   : > { %v4303_v26 = vadd.f32 %v7991_v4, %v4207_v61  ;;  %v4210_v25 = vadd.f32 %v5017_v34, %v7436_v0  ;;  %v4201_v3 = vpop.f32.mrb[107].mxu1 }
 0x8ce   : > { %v4301_v2 = vadd.f32 %v7992_v50, %v4199_v9  ;;  %v4202_v49 = vadd.f32 %v7436_v0, %v4201_v3 }
 0x8cf   : > { %v4651_v15 = vpack.c.bf16 %v4303_v26, %v4303_v26  ;;  %v4304_v29 = vadd.f32 %v7993_v46, %v4210_v25  ;;  %v8004_v26 = vld [vmem:[#allocation27_spill] sm:$0xff]  ;;  %v8006_v46 = vld [vmem:[#allocation28_spill] sm:$0xff] }
 0x8d0   : > { %v4649_v21 = vpack.c.bf16 %v4301_v2, %v4301_v2  ;;  %v4302_v47 = vadd.f32 %v7994_v18, %v4202_v49  ;;  %v8005_v2 = vld [vmem:[#allocation30_spill] sm:$0xff] }
 0x8d1   : > { %4464 = vst.msk [vmem:[%s7447_s28 + $0x28] sm:$0xf] %vm4453_vm5, %v4651_v15  ;;  %v4652_v43 = vpack.c.bf16 %v4304_v29, %v4304_v29 }
 0x8d2   : > { %4462 = vst.msk [vmem:[%s7447_s28 + $0x20] sm:$0xf] %vm4453_vm5, %v4649_v21  ;;  %v4650_v31 = vpack.c.bf16 %v4302_v47, %v4302_v47  ;;  %v5020_v12 = vpop.f32.mrb[108].mxu1 }
 0x8d3   : > { %4465 = vst.msk [vmem:[%s7447_s28 + $0x2c] sm:$0xf] %vm4453_vm5, %v4652_v43  ;;  %v4223_v57 = vadd.f32 %v5020_v12, %v7436_v0  ;;  %v4214_v32 = vpop.f32.mrb[109].mxu1 }
 0x8d4   : > { %4463 = vst.msk [vmem:[%s7447_s28 + $0x24] sm:$0xf] %vm4453_vm5, %v4650_v31  ;;  %v4215_v38 = vadd.f32 %v7436_v0, %v4214_v32  ;;  %v5021_v63 = vpop.f32.mrb[110].mxu1  ;;  %v8007_v32 = vld [vmem:[#allocation33_spill] sm:$0xff] }
 0x8d5   : > { %v4307_v30 = vadd.f32 %v7995_v27, %v4223_v57  ;;  %v4226_v11 = vadd.f32 %v5021_v63, %v7436_v0  ;;  %v4217_v6 = vpop.f32.mrb[111].mxu1 }
 0x8d6   : > { %v4305_v45 = vadd.f32 %v7996_v22, %v4215_v38  ;;  %v4218_v20 = vadd.f32 %v7436_v0, %v4217_v6 }
 0x8d7   : > { %v4655_v51 = vpack.c.bf16 %v4307_v30, %v4307_v30  ;;  %v4308_v8 = vadd.f32 %v7997_v55, %v4226_v11  ;;  %v8008_v30 = vld [vmem:[#allocation31_spill] sm:$0xff]  ;;  %v8010_v55 = vld [vmem:[#allocation32_spill] sm:$0xff] }
 0x8d8   : > { %v4653_v24 = vpack.c.bf16 %v4305_v45, %v4305_v45  ;;  %v4306_v5 = vadd.f32 %v7998_v33, %v4218_v20  ;;  %v8009_v45 = vld [vmem:[#allocation34_spill] sm:$0xff] }
 0x8d9   : > { %4468 = vst.msk [vmem:[%s7447_s28 + $0x38] sm:$0xf] %vm4453_vm5, %v4655_v51  ;;  %v4656_v59 = vpack.c.bf16 %v4308_v8, %v4308_v8 }
 0x8da   : > { %4466 = vst.msk [vmem:[%s7447_s28 + $0x30] sm:$0xf] %vm4453_vm5, %v4653_v24  ;;  %v4654_v56 = vpack.c.bf16 %v4306_v5, %v4306_v5  ;;  %v5024_v52 = vpop.f32.mrb[112].mxu1 }
 0x8db   : > { %4469 = vst.msk [vmem:[%s7447_s28 + $0x3c] sm:$0xf] %vm4453_vm5, %v4656_v59  ;;  %v4239_v39 = vadd.f32 %v5024_v52, %v7436_v0  ;;  %v4230_v13 = vpop.f32.mrb[113].mxu1 }
 0x8dc   : > { %4467 = vst.msk [vmem:[%s7447_s28 + $0x34] sm:$0xf] %vm4453_vm5, %v4654_v56  ;;  %v4231_v19 = vadd.f32 %v7436_v0, %v4230_v13  ;;  %v5025_v48 = vpop.f32.mrb[114].mxu1  ;;  %v8011_v13 = vld [vmem:[#allocation37_spill] sm:$0xff] }
 0x8dd   : > { %v4311_v54 = vadd.f32 %v7999_v17, %v4239_v39  ;;  %v4242_v36 = vadd.f32 %v5025_v48, %v7436_v0  ;;  %v4233_v1 = vpop.f32.mrb[115].mxu1 }
 0x8de   : > { %v4309_v7 = vadd.f32 %v8000_v53, %v4231_v19  ;;  %v4234_v42 = vadd.f32 %v7436_v0, %v4233_v1 }
 0x8df   : > { %v4659_v62 = vpack.c.bf16 %v4311_v54, %v4311_v54  ;;  %v4312_v23 = vadd.f32 %v8001_v60, %v4242_v36  ;;  %v8012_v54 = vld [vmem:[#allocation35_spill] sm:$0xff]  ;;  %v8014_v60 = vld [vmem:[#allocation36_spill] sm:$0xff] }
 0x8e0   : > { %v4657_v44 = vpack.c.bf16 %v4309_v7, %v4309_v7  ;;  %v4310_v16 = vadd.f32 %v8002_v14, %v4234_v42  ;;  %v8013_v7 = vld [vmem:[#allocation38_spill] sm:$0xff] }
 0x8e1   : > { %4472 = vst.msk [vmem:[%s7447_s28 + $0x48] sm:$0xf] %vm4453_vm5, %v4659_v62  ;;  %v4660_v40 = vpack.c.bf16 %v4312_v23, %v4312_v23 }
 0x8e2   : > { %4470 = vst.msk [vmem:[%s7447_s28 + $0x40] sm:$0xf] %vm4453_vm5, %v4657_v44  ;;  %v4658_v58 = vpack.c.bf16 %v4310_v16, %v4310_v16  ;;  %v5028_v35 = vpop.f32.mrb[116].mxu1 }
 0x8e3   : > { %4473 = vst.msk [vmem:[%s7447_s28 + $0x4c] sm:$0xf] %vm4453_vm5, %v4660_v40  ;;  %v4255_v41 = vadd.f32 %v5028_v35, %v7436_v0  ;;  %v4246_v10 = vpop.f32.mrb[117].mxu1 }
 0x8e4   : > { %4471 = vst.msk [vmem:[%s7447_s28 + $0x44] sm:$0xf] %vm4453_vm5, %v4658_v58  ;;  %v4247_v37 = vadd.f32 %v7436_v0, %v4246_v10  ;;  %v5029_v61 = vpop.f32.mrb[118].mxu1 }
 0x8e5   : > { %v4315_v9 = vadd.f32 %v8003_v28, %v4255_v41  ;;  %v4258_v34 = vadd.f32 %v5029_v61, %v7436_v0  ;;  %v4249_v4 = vpop.f32.mrb[119].mxu1 }
 0x8e6   : > { %v4313_v25 = vadd.f32 %v8004_v26, %v4247_v37  ;;  %v4250_v3 = vadd.f32 %v7436_v0, %v4249_v4 }
 0x8e7   : > { %v4663_v50 = vpack.c.bf16 %v4315_v9, %v4315_v9  ;;  %v4316_v49 = vadd.f32 %v8005_v2, %v4258_v34 }
 0x8e8   : > { %v4661_v15 = vpack.c.bf16 %v4313_v25, %v4313_v25  ;;  %v4314_v29 = vadd.f32 %v8006_v46, %v4250_v3 }
 0x8e9   : > { %4476 = vst.msk [vmem:[%s7447_s28 + $0x58] sm:$0xf] %vm4453_vm5, %v4663_v50  ;;  %v4664_v21 = vpack.c.bf16 %v4316_v49, %v4316_v49 }
 0x8ea   : > { %4474 = vst.msk [vmem:[%s7447_s28 + $0x50] sm:$0xf] %vm4453_vm5, %v4661_v15  ;;  %v4662_v18 = vpack.c.bf16 %v4314_v29, %v4314_v29  ;;  %v5032_v47 = vpop.f32.mrb[120].mxu1 }
 0x8eb   : > { %4477 = vst.msk [vmem:[%s7447_s28 + $0x5c] sm:$0xf] %vm4453_vm5, %v4664_v21  ;;  %v4271_v43 = vadd.f32 %v5032_v47, %v7436_v0  ;;  %v4262_v31 = vpop.f32.mrb[121].mxu1 }
 0x8ec   : > { %4475 = vst.msk [vmem:[%s7447_s28 + $0x54] sm:$0xf] %vm4453_vm5, %v4662_v18  ;;  %v4263_v12 = vadd.f32 %v7436_v0, %v4262_v31  ;;  %v5033_v57 = vpop.f32.mrb[122].mxu1 }
 0x8ed   : > { %v4319_v38 = vadd.f32 %v8007_v32, %v4271_v43  ;;  %v4274_v63 = vadd.f32 %v5033_v57, %v7436_v0  ;;  %v4265_v27 = vpop.f32.mrb[123].mxu1 }
 0x8ee   : > { %v4317_v11 = vadd.f32 %v8008_v30, %v4263_v12  ;;  %v4266_v6 = vadd.f32 %v7436_v0, %v4265_v27 }
 0x8ef   : > { %v4667_v22 = vpack.c.bf16 %v4319_v38, %v4319_v38  ;;  %v4320_v20 = vadd.f32 %v8009_v45, %v4274_v63 }
 0x8f0   : > { %v4665_v51 = vpack.c.bf16 %v4317_v11, %v4317_v11  ;;  %v4318_v8 = vadd.f32 %v8010_v55, %v4266_v6 }
 0x8f1   : > { %4480 = vst.msk [vmem:[%s7447_s28 + $0x68] sm:$0xf] %vm4453_vm5, %v4667_v22  ;;  %v4668_v24 = vpack.c.bf16 %v4320_v20, %v4320_v20 }
 0x8f2   : > { %4478 = vst.msk [vmem:[%s7447_s28 + $0x60] sm:$0xf] %vm4453_vm5, %v4665_v51  ;;  %v4666_v33 = vpack.c.bf16 %v4318_v8, %v4318_v8  ;;  %v5036_v5 = vpop.f32.mrb[124].mxu1 }
 0x8f3   : > { %4481 = vst.msk [vmem:[%s7447_s28 + $0x6c] sm:$0xf] %vm4453_vm5, %v4668_v24  ;;  %v4287_v59 = vadd.f32 %v5036_v5, %v7436_v0  ;;  %v4278_v56 = vpop.f32.mrb[125].mxu1 }
 0x8f4   : > { %4479 = vst.msk [vmem:[%s7447_s28 + $0x64] sm:$0xf] %vm4453_vm5, %v4666_v33  ;;  %v4279_v52 = vadd.f32 %v7436_v0, %v4278_v56  ;;  %v5037_v39 = vpop.f32.mrb[126].mxu1 }
 0x8f5   : > { %v4323_v19 = vadd.f32 %v8011_v13, %v4287_v59  ;;  %v4290_v48 = vadd.f32 %v5037_v39, %v7436_v0  ;;  %v4281_v17 = vpop.f32.mrb[127].mxu1 }
 0x8f6   : > { %v4321_v36 = vadd.f32 %v8012_v54, %v4279_v52  ;;  %v4282_v1 = vadd.f32 %v7436_v0, %v4281_v17 }
 0x8f7   : > { %v4671_v53 = vpack.c.bf16 %v4323_v19, %v4323_v19  ;;  %v4324_v42 = vadd.f32 %v8013_v7, %v4290_v48 }
 0x8f8   : > { %v4669_v62 = vpack.c.bf16 %v4321_v36, %v4321_v36  ;;  %v4322_v23 = vadd.f32 %v8014_v60, %v4282_v1 }
 0x8f9   : > { %4484 = vst.msk [vmem:[%s7447_s28 + $0x78] sm:$0xf] %vm4453_vm5, %v4671_v53  ;;  %v4672_v44 = vpack.c.bf16 %v4324_v42, %v4324_v42 }
 0x8fa   : > { %4482 = vst.msk [vmem:[%s7447_s28 + $0x70] sm:$0xf] %vm4453_vm5, %v4669_v62  ;;  %v4670_v14 = vpack.c.bf16 %v4322_v23, %v4322_v23 }
 0x8fb   : > { %4485 = vst.msk [vmem:[%s7447_s28 + $0x7c] sm:$0xf] %vm4453_vm5, %v4672_v44 }
 0x8fc   : > { %4483 = vst.msk [vmem:[%s7447_s28 + $0x74] sm:$0xf] %vm4453_vm5, %v4670_v14 }
 0x8fd PF: > { %s17_s24 = sadd.s32 1, %s5274_s24  }
 0x8fe   : > { %p14_p4 = scmp.ge.s32.totalorder %s17_s24, 4  }
 0x900   :  { %16 = sbr.rel (!%p14_p4) target bundleno = 1 (0x1), region = 78 }

</bundles_post_ra>
